<compile_context>
chip_gen: v7x
topology: tpu7x:2x2x1
jax: 0.10.0
libtpu: 0.0.40
codegen_flags: <defaults>
</compile_context>

<pallas_src>
import jax
import jax.numpy as jnp
from jax.experimental import pallas as pl
from jax.experimental.pallas import tpu as pltpu

# ----------------------------- configuration --------------------------------
B, S = 2, 8                       # batch, sequence length
VOCAB, MAX_POS = 128, 16
HIDDEN, N_HEADS, D_HEAD, FFN = 32, 2, 16, 64
N_LAYERS = 4                      # >= 4 so hidden_states[-4:] is well defined
RNN_SIZE = 16
NUM_LABELS = 5
LN_EPS = 1e-12
G = 4 * RNN_SIZE                  # gate width per direction (64); 2 dirs -> 128 lanes

_VMEM = pl.BlockSpec(memory_space=pltpu.MemorySpace.VMEM)


def _gelu(x):
    # tanh-approximate GELU (EUP-friendly)
    # TODO(synk): HF BERT default 'gelu' is the exact erf form; tanh approx has tiny drift.
    return 0.5 * x * (1.0 + jnp.tanh(0.7978845608028654 * (x + 0.044715 * x * x * x)))


def _ln(x, g, b):
    mu = jnp.mean(x, axis=-1, keepdims=True)
    var = jnp.mean((x - mu) ** 2, axis=-1, keepdims=True)
    return (x - mu) * jax.lax.rsqrt(var + LN_EPS) * g + b


# ------------------------- fused forward kernel ------------------------------
def _fused_forward_kernel(
        emb_ref, amask_ref, pred_ref, labels_ref,
        emb_ln_g_ref, emb_ln_b_ref,
        wqkv_ref, bqkv_ref, wo_ref, bo_ref, ln1_g_ref, ln1_b_ref,
        w1_ref, b1_ref, w2_ref, b2_ref, ln2_g_ref, ln2_b_ref,
        wih_h_ref, wih_p_ref, bih_ref, whh_ref, lin_w_ref,
        logits_ref, preds_ref, loss_ref):
    f32 = jnp.float32

    # --- embeddings + LN (hidden_states[0]) ---
    x = _ln(emb_ref[...], emb_ln_g_ref[...], emb_ln_b_ref[...])        # (B*S, H)
    neg_mask = (1.0 - amask_ref[...]) * -1e9                           # (B, S)

    # --- transformer layers (static unroll; weights indexed by layer) ---
    layer_outs = []
    for l in range(N_LAYERS):
        qkv = jnp.dot(x, wqkv_ref[l], preferred_element_type=f32) + bqkv_ref[l]  # (B*S, 3H)
        ctx_rows = []
        for b in range(B):
            mrow = neg_mask[b:b + 1, :]                                # (1, S)
            heads = []
            for hd in range(N_HEADS):
                q = qkv[b * S:(b + 1) * S, hd * D_HEAD:(hd + 1) * D_HEAD]
                k = qkv[b * S:(b + 1) * S, HIDDEN + hd * D_HEAD:HIDDEN + (hd + 1) * D_HEAD]
                v = qkv[b * S:(b + 1) * S, 2 * HIDDEN + hd * D_HEAD:2 * HIDDEN + (hd + 1) * D_HEAD]
                # scores: contract the head dim of q and k (no transpose needed)
                s = jax.lax.dot_general(q, k, (((1,), (1,)), ((), ())),
                                        preferred_element_type=f32) + mrow       # (S, S)
                s = s - jnp.max(s, axis=-1, keepdims=True)
                p = jnp.exp(s)
                p = p / jnp.sum(p, axis=-1, keepdims=True)
                heads.append(jnp.dot(p, v, preferred_element_type=f32))          # (S, Dh)
            ctx_rows.append(jnp.concatenate(heads, axis=1))                      # (S, H)
        ctx = jnp.concatenate(ctx_rows, axis=0)                                  # (B*S, H)

        attn_out = jnp.dot(ctx, wo_ref[l], preferred_element_type=f32) + bo_ref[l]
        h1 = _ln(attn_out + x, ln1_g_ref[l], ln1_b_ref[l])
        ffn = _gelu(jnp.dot(h1, w1_ref[l], preferred_element_type=f32) + b1_ref[l])
        ffn = jnp.dot(ffn, w2_ref[l], preferred_element_type=f32) + b2_ref[l]
        x = _ln(ffn + h1, ln2_g_ref[l], ln2_b_ref[l])
        layer_outs.append(x)

    # --- sum of the last 4 hidden states ---
    hs4 = layer_outs[-4:]
    hsum = hs4[0] + hs4[1] + hs4[2] + hs4[3]                           # (B*S, H)

    # --- bidirectional LSTM (1 layer), predicate folded into input projection ---
    # xp columns: [fwd gates 0:G | bwd gates G:2G], PyTorch gate order i,f,g,o
    xp = (jnp.dot(hsum, wih_h_ref[...], preferred_element_type=f32)
          + pred_ref[...] * wih_p_ref[...] + bih_ref[...])             # (B*S, 2G=128)

    h = jnp.zeros((2 * B, RNN_SIZE), f32)                              # rows 0..B-1 fwd, B..2B-1 bwd
    c = jnp.zeros((2 * B, RNN_SIZE), f32)
    row = jax.lax.broadcasted_iota(jnp.int32, (2 * B, G), 0)
    outs_f = [None] * S
    outs_b = [None] * S
    for t in range(S):                                                 # static unroll (S=8)
        xf = jnp.concatenate([xp[b * S + t:b * S + t + 1, 0:G] for b in range(B)], axis=0)
        xb = jnp.concatenate([xp[b * S + (S - 1 - t):b * S + (S - t), G:2 * G] for b in range(B)], axis=0)
        gx = jnp.concatenate([xf, xb], axis=0)                         # (2B, G)
        hh = jnp.dot(h, whh_ref[...], preferred_element_type=f32)      # (2B, 2G)
        gates = gx + jnp.where(row < B, hh[:, 0:G], hh[:, G:2 * G])
        i_g = jax.nn.sigmoid(gates[:, 0 * RNN_SIZE:1 * RNN_SIZE])
        f_g = jax.nn.sigmoid(gates[:, 1 * RNN_SIZE:2 * RNN_SIZE])
        g_g = jnp.tanh(gates[:, 2 * RNN_SIZE:3 * RNN_SIZE])
        o_g = jax.nn.sigmoid(gates[:, 3 * RNN_SIZE:4 * RNN_SIZE])
        c = f_g * c + i_g * g_g
        h = o_g * jnp.tanh(c)
        outs_f[t] = h[0:B, :]                                          # fwd hidden @ time t
        outs_b[S - 1 - t] = h[B:2 * B, :]                              # bwd hidden @ time S-1-t

    # time-major rows (row = t*B + b): [fwd | bwd] hidden per token
    rnn_tm = jnp.concatenate(
        [jnp.concatenate([outs_f[t], outs_b[t]], axis=1) for t in range(S)], axis=0)  # (S*B, 2*RNN)

    # TODO(synk): dropout is eval-mode identity here (training-mode RNG dropout not implemented)

    # --- classifier (bias=False), argmax, masked-mean cross-entropy ---
    logits = jnp.dot(rnn_tm, lin_w_ref[...], preferred_element_type=f32)   # (S*B, NUM_LABELS)
    logits_ref[...] = logits

    cols = jax.lax.broadcasted_iota(jnp.int32, logits.shape, 1)
    maxv = jnp.max(logits, axis=-1, keepdims=True)
    preds_ref[...] = jnp.min(jnp.where(logits == maxv, cols, NUM_LABELS),
                             axis=-1, keepdims=True)                       # (S*B, 1) int32

    labels = labels_ref[...]                                               # (S*B, 1) int32
    lse = maxv + jnp.log(jnp.sum(jnp.exp(logits - maxv), axis=-1, keepdims=True))
    correct = jnp.sum(jnp.where(cols == labels, logits, 0.0), axis=-1, keepdims=True)
    valid = (labels != -100).astype(f32)
    per = (lse - correct) * valid
    denom = jnp.maximum(jnp.sum(valid, axis=0, keepdims=True), 1.0)
    loss_ref[...] = jnp.sum(per, axis=0, keepdims=True) / denom


# ------------------------------ parameters -----------------------------------
def init_params(key):
    def normal(k, shape, scale=0.02):
        return scale * jax.random.normal(k, shape, jnp.float32)

    keys = iter(jax.random.split(key, 32))

    # fused Q/K/V weight; 1/sqrt(D_HEAD) folded into the q columns
    wqkv = normal(next(keys), (N_LAYERS, HIDDEN, 3 * HIDDEN))
    q_scale = 1.0 / float(D_HEAD) ** 0.5
    col_scale = jnp.concatenate([jnp.full((HIDDEN,), q_scale, jnp.float32),
                                 jnp.ones((2 * HIDDEN,), jnp.float32)])
    wqkv = wqkv * col_scale[None, None, :]

    params = {
        'word_emb': normal(next(keys), (VOCAB, HIDDEN)),
        'pos_emb': normal(next(keys), (MAX_POS, HIDDEN)),
        'emb_ln_g': jnp.ones((1, HIDDEN), jnp.float32),
        'emb_ln_b': jnp.zeros((1, HIDDEN), jnp.float32),
        'wqkv': wqkv,
        'bqkv': jnp.zeros((N_LAYERS, 1, 3 * HIDDEN), jnp.float32),
        'wo': normal(next(keys), (N_LAYERS, HIDDEN, HIDDEN)),
        'bo': jnp.zeros((N_LAYERS, 1, HIDDEN), jnp.float32),
        'ln1_g': jnp.ones((N_LAYERS, 1, HIDDEN), jnp.float32),
        'ln1_b': jnp.zeros((N_LAYERS, 1, HIDDEN), jnp.float32),
        'w1': normal(next(keys), (N_LAYERS, HIDDEN, FFN)),
        'b1': jnp.zeros((N_LAYERS, 1, FFN), jnp.float32),
        'w2': normal(next(keys), (N_LAYERS, FFN, HIDDEN)),
        'b2': jnp.zeros((N_LAYERS, 1, HIDDEN), jnp.float32),
        'ln2_g': jnp.ones((N_LAYERS, 1, HIDDEN), jnp.float32),
        'ln2_b': jnp.zeros((N_LAYERS, 1, HIDDEN), jnp.float32),
    }

    # LSTM (1 layer, bidirectional).  PyTorch input is cat((predicates, bert_sum)),
    # so W_ih row 0 is the predicate column.  b = b_ih + b_hh (zeros here).
    # Both directions are packed along the lane axis: [fwd 4*RNN | bwd 4*RNN] = 128.
    w_ih = normal(next(keys), (2, HIDDEN + 1, 4 * RNN_SIZE), 0.1)
    w_hh = normal(next(keys), (2, RNN_SIZE, 4 * RNN_SIZE), 0.1)
    params['wih_p'] = jnp.concatenate([w_ih[0, 0:1, :], w_ih[1, 0:1, :]], axis=1)   # (1, 128)
    params['wih_h'] = jnp.concatenate([w_ih[0, 1:, :], w_ih[1, 1:, :]], axis=1)     # (H, 128)
    params['bih'] = jnp.zeros((1, 2 * 4 * RNN_SIZE), jnp.float32)
    params['whh'] = jnp.concatenate([w_hh[0], w_hh[1]], axis=1)                      # (RNN, 128)

    params['linear_w'] = normal(next(keys), (2 * RNN_SIZE, NUM_LABELS), 0.1)         # bias=False
    return params


# ------------------------------ forward pass ----------------------------------
def bert_ohe_forward(params, input_ids, attention_mask, predicates, labels,
                     compute_predictions=True, compute_loss=True):
    Bb, Ss = input_ids.shape

    # XLA glue (tiny): embedding gather + layout prep for the fused kernel.
    emb2d = (params['word_emb'][input_ids]
             + params['pos_emb'][None, :Ss, :]).reshape(Bb * Ss, HIDDEN)
    amask = attention_mask.astype(jnp.float32)                       # (B, S)
    pred2d = predicates.reshape(Bb * Ss, 1).astype(jnp.float32)      # (B*S, 1)
    labels_tm = labels.transpose(1, 0).reshape(Ss * Bb, 1).astype(jnp.int32)  # time-major

    logits_tm, preds_tm, loss = pl.pallas_call(
        _fused_forward_kernel,
        out_shape=(jax.ShapeDtypeStruct((Ss * Bb, NUM_LABELS), jnp.float32),
                   jax.ShapeDtypeStruct((Ss * Bb, 1), jnp.int32),
                   jax.ShapeDtypeStruct((1, 1), jnp.float32)),
        in_specs=[_VMEM] * 23,
        out_specs=(_VMEM, _VMEM, _VMEM),
    )(emb2d, amask, pred2d, labels_tm,
      params['emb_ln_g'], params['emb_ln_b'],
      params['wqkv'], params['bqkv'], params['wo'], params['bo'],
      params['ln1_g'], params['ln1_b'],
      params['w1'], params['b1'], params['w2'], params['b2'],
      params['ln2_g'], params['ln2_b'],
      params['wih_h'], params['wih_p'], params['bih'], params['whh'],
      params['linear_w'])

    logits = logits_tm.reshape(Ss, Bb, NUM_LABELS).transpose(1, 0, 2)   # (B, S, L)
    output = {'logits': logits}
    if compute_predictions:
        output['preds'] = preds_tm.reshape(Ss, Bb).transpose(1, 0)      # (B, S)
    if compute_loss:
        output['loss'] = loss[0, 0]
    return output


# --------------------------------- main ---------------------------------------
if __name__ == "__main__":
    key = jax.random.PRNGKey(0)
    k_ids, k_pred, k_lab, k_params = jax.random.split(key, 4)

    params = init_params(k_params)

    input_ids = jax.random.randint(k_ids, (B, S), 0, VOCAB, dtype=jnp.int32)
    attention_mask = jnp.ones((B, S), jnp.int32).at[1, -2:].set(0)
    predicates = jax.random.bernoulli(k_pred, 0.3, (B, S, 1)).astype(jnp.float32)
    labels = jax.random.randint(k_lab, (B, S), 0, NUM_LABELS, dtype=jnp.int32)
    labels = labels.at[1, -2:].set(-100)   # ignore_index positions

    fwd = jax.jit(bert_ohe_forward)
    out = fwd(params, input_ids, attention_mask, predicates, labels)
    out = jax.block_until_ready(out)

    assert out['logits'].shape == (B, S, NUM_LABELS)
    assert out['preds'].shape == (B, S)
    assert bool(jnp.isfinite(out['loss']))
    print("KERNEL_OK")
</pallas_src>

<mosaic_0001>
module attributes {stable_mosaic.version = 11 : i64} {
  func.func @_fused_forward_kernel(%arg0: memref<16x32xf32, #tpu.memory_space<vmem>>, %arg1: memref<2x8xf32, #tpu.memory_space<vmem>>, %arg2: memref<16x1xf32, #tpu.memory_space<vmem>>, %arg3: memref<16x1xi32, #tpu.memory_space<vmem>>, %arg4: memref<1x32xf32, #tpu.memory_space<vmem>>, %arg5: memref<1x32xf32, #tpu.memory_space<vmem>>, %arg6: memref<4x32x96xf32, #tpu.memory_space<vmem>>, %arg7: memref<4x1x96xf32, #tpu.memory_space<vmem>>, %arg8: memref<4x32x32xf32, #tpu.memory_space<vmem>>, %arg9: memref<4x1x32xf32, #tpu.memory_space<vmem>>, %arg10: memref<4x1x32xf32, #tpu.memory_space<vmem>>, %arg11: memref<4x1x32xf32, #tpu.memory_space<vmem>>, %arg12: memref<4x32x64xf32, #tpu.memory_space<vmem>>, %arg13: memref<4x1x64xf32, #tpu.memory_space<vmem>>, %arg14: memref<4x64x32xf32, #tpu.memory_space<vmem>>, %arg15: memref<4x1x32xf32, #tpu.memory_space<vmem>>, %arg16: memref<4x1x32xf32, #tpu.memory_space<vmem>>, %arg17: memref<4x1x32xf32, #tpu.memory_space<vmem>>, %arg18: memref<32x128xf32, #tpu.memory_space<vmem>>, %arg19: memref<1x128xf32, #tpu.memory_space<vmem>>, %arg20: memref<1x128xf32, #tpu.memory_space<vmem>>, %arg21: memref<16x128xf32, #tpu.memory_space<vmem>>, %arg22: memref<32x5xf32, #tpu.memory_space<vmem>>, %arg23: memref<16x5xf32, #tpu.memory_space<vmem>>, %arg24: memref<16x1xi32, #tpu.memory_space<vmem>>, %arg25: memref<1x1xf32, #tpu.memory_space<vmem>>) attributes {dimension_semantics = [], scalar_prefetch = 0 : i64, scratch_operands = 0 : i64, tpu.core_type = #tpu.core_type<tc>} {
    %c0 = arith.constant 0 : index
    %c0_0 = arith.constant 0 : index
    %0 = vector.load %arg0[%c0, %c0_0] : memref<16x32xf32, #tpu.memory_space<vmem>>, vector<16x32xf32>
    %c0_1 = arith.constant 0 : index
    %c0_2 = arith.constant 0 : index
    %1 = vector.load %arg4[%c0_1, %c0_2] : memref<1x32xf32, #tpu.memory_space<vmem>>, vector<1x32xf32>
    %c0_3 = arith.constant 0 : index
    %c0_4 = arith.constant 0 : index
    %2 = vector.load %arg5[%c0_3, %c0_4] : memref<1x32xf32, #tpu.memory_space<vmem>>, vector<1x32xf32>
    %cst = arith.constant dense<0.000000e+00> : vector<16xf32>
    %3 = vector.multi_reduction <add>, %0, %cst [1] : vector<16x32xf32> to vector<16xf32>
    %4 = vector.shape_cast %3 : vector<16xf32> to vector<16x1xf32>
    %cst_5 = arith.constant 3.200000e+01 : f32
    %5 = vector.broadcast %cst_5 : f32 to vector<16x1xf32>
    %6 = arith.divf %4, %5 : vector<16x1xf32>
    %7 = vector.broadcast %6 : vector<16x1xf32> to vector<16x32xf32>
    %8 = arith.subf %0, %7 : vector<16x32xf32>
    %9 = arith.mulf %8, %8 : vector<16x32xf32>
    %cst_6 = arith.constant dense<0.000000e+00> : vector<16xf32>
    %10 = vector.multi_reduction <add>, %9, %cst_6 [1] : vector<16x32xf32> to vector<16xf32>
    %11 = vector.shape_cast %10 : vector<16xf32> to vector<16x1xf32>
    %cst_7 = arith.constant 3.200000e+01 : f32
    %12 = vector.broadcast %cst_7 : f32 to vector<16x1xf32>
    %13 = arith.divf %11, %12 : vector<16x1xf32>
    %14 = vector.broadcast %6 : vector<16x1xf32> to vector<16x32xf32>
    %15 = arith.subf %0, %14 : vector<16x32xf32>
    %cst_8 = arith.constant 9.99999996E-13 : f32
    %16 = vector.broadcast %cst_8 : f32 to vector<16x1xf32>
    %17 = arith.addf %13, %16 : vector<16x1xf32>
    %18 = math.rsqrt %17 : vector<16x1xf32>
    %19 = vector.broadcast %18 : vector<16x1xf32> to vector<16x32xf32>
    %20 = arith.mulf %15, %19 : vector<16x32xf32>
    %21 = vector.broadcast %1 : vector<1x32xf32> to vector<16x32xf32>
    %22 = arith.mulf %20, %21 : vector<16x32xf32>
    %23 = vector.broadcast %2 : vector<1x32xf32> to vector<16x32xf32>
    %24 = arith.addf %22, %23 : vector<16x32xf32>
    %c0_9 = arith.constant 0 : index
    %c0_10 = arith.constant 0 : index
    %25 = vector.load %arg1[%c0_9, %c0_10] : memref<2x8xf32, #tpu.memory_space<vmem>>, vector<2x8xf32>
    %cst_11 = arith.constant 1.000000e+00 : f32
    %26 = vector.broadcast %cst_11 : f32 to vector<2x8xf32>
    %27 = arith.subf %26, %25 : vector<2x8xf32>
    %cst_12 = arith.constant -1.000000e+09 : f32
    %28 = vector.broadcast %cst_12 : f32 to vector<2x8xf32>
    %29 = arith.mulf %27, %28 : vector<2x8xf32>
    %c0_13 = arith.constant 0 : index
    %c0_14 = arith.constant 0 : index
    %c0_15 = arith.constant 0 : index
    %30 = vector.load %arg6[%c0_13, %c0_14, %c0_15] : memref<4x32x96xf32, #tpu.memory_space<vmem>>, vector<1x32x96xf32>
    %31 = vector.shape_cast %30 : vector<1x32x96xf32> to vector<32x96xf32>
    %cst_16 = arith.constant dense<0.000000e+00> : vector<16x96xf32>
    %32 = tpu.matmul %24, %31, %cst_16 {dimension_numbers = #tpu.dot_dimension_numbers<[1], [0], [0], [1], [0, 0, 1, 1], [], []>} : vector<16x32xf32>, vector<32x96xf32>, vector<16x96xf32> -> vector<16x96xf32>
    %c0_17 = arith.constant 0 : index
    %c0_18 = arith.constant 0 : index
    %c0_19 = arith.constant 0 : index
    %33 = vector.load %arg7[%c0_17, %c0_18, %c0_19] : memref<4x1x96xf32, #tpu.memory_space<vmem>>, vector<1x1x96xf32>
    %34 = vector.shape_cast %33 : vector<1x1x96xf32> to vector<1x96xf32>
    %35 = vector.broadcast %34 : vector<1x96xf32> to vector<16x96xf32>
    %36 = arith.addf %32, %35 : vector<16x96xf32>
    %37 = vector.extract_strided_slice %29 {offsets = [0, 0], sizes = [1, 8], strides = [1, 1]} : vector<2x8xf32> to vector<1x8xf32>
    %38 = vector.extract_strided_slice %36 {offsets = [0, 0], sizes = [8, 16], strides = [1, 1]} : vector<16x96xf32> to vector<8x16xf32>
    %39 = vector.extract_strided_slice %36 {offsets = [0, 32], sizes = [8, 16], strides = [1, 1]} : vector<16x96xf32> to vector<8x16xf32>
    %40 = vector.extract_strided_slice %36 {offsets = [0, 64], sizes = [8, 16], strides = [1, 1]} : vector<16x96xf32> to vector<8x16xf32>
    %cst_20 = arith.constant dense<0.000000e+00> : vector<8x8xf32>
    %41 = tpu.matmul %38, %39, %cst_20 {dimension_numbers = #tpu.dot_dimension_numbers<[1], [1], [0], [0], [0, 0, 1, 0], [], []>} : vector<8x16xf32>, vector<8x16xf32>, vector<8x8xf32> -> vector<8x8xf32>
    %42 = vector.broadcast %37 : vector<1x8xf32> to vector<8x8xf32>
    %43 = arith.addf %41, %42 : vector<8x8xf32>
    %cst_21 = arith.constant dense<0xFF800000> : vector<8xf32>
    %44 = vector.multi_reduction <maximumf>, %43, %cst_21 [1] : vector<8x8xf32> to vector<8xf32>
    %45 = vector.shape_cast %44 : vector<8xf32> to vector<8x1xf32>
    %46 = vector.broadcast %45 : vector<8x1xf32> to vector<8x8xf32>
    %47 = arith.subf %43, %46 : vector<8x8xf32>
    %48 = math.exp %47 : vector<8x8xf32>
    %cst_22 = arith.constant dense<0.000000e+00> : vector<8xf32>
    %49 = vector.multi_reduction <add>, %48, %cst_22 [1] : vector<8x8xf32> to vector<8xf32>
    %50 = vector.shape_cast %49 : vector<8xf32> to vector<8x1xf32>
    %51 = vector.broadcast %50 : vector<8x1xf32> to vector<8x8xf32>
    %52 = arith.divf %48, %51 : vector<8x8xf32>
    %cst_23 = arith.constant dense<0.000000e+00> : vector<8x16xf32>
    %53 = tpu.matmul %52, %40, %cst_23 {dimension_numbers = #tpu.dot_dimension_numbers<[1], [0], [0], [1], [0, 0, 1, 1], [], []>} : vector<8x8xf32>, vector<8x16xf32>, vector<8x16xf32> -> vector<8x16xf32>
    %54 = vector.extract_strided_slice %36 {offsets = [0, 16], sizes = [8, 16], strides = [1, 1]} : vector<16x96xf32> to vector<8x16xf32>
    %55 = vector.extract_strided_slice %36 {offsets = [0, 48], sizes = [8, 16], strides = [1, 1]} : vector<16x96xf32> to vector<8x16xf32>
    %56 = vector.extract_strided_slice %36 {offsets = [0, 80], sizes = [8, 16], strides = [1, 1]} : vector<16x96xf32> to vector<8x16xf32>
    %cst_24 = arith.constant dense<0.000000e+00> : vector<8x8xf32>
    %57 = tpu.matmul %54, %55, %cst_24 {dimension_numbers = #tpu.dot_dimension_numbers<[1], [1], [0], [0], [0, 0, 1, 0], [], []>} : vector<8x16xf32>, vector<8x16xf32>, vector<8x8xf32> -> vector<8x8xf32>
    %58 = vector.broadcast %37 : vector<1x8xf32> to vector<8x8xf32>
    %59 = arith.addf %57, %58 : vector<8x8xf32>
    %cst_25 = arith.constant dense<0xFF800000> : vector<8xf32>
    %60 = vector.multi_reduction <maximumf>, %59, %cst_25 [1] : vector<8x8xf32> to vector<8xf32>
    %61 = vector.shape_cast %60 : vector<8xf32> to vector<8x1xf32>
    %62 = vector.broadcast %61 : vector<8x1xf32> to vector<8x8xf32>
    %63 = arith.subf %59, %62 : vector<8x8xf32>
    %64 = math.exp %63 : vector<8x8xf32>
    %cst_26 = arith.constant dense<0.000000e+00> : vector<8xf32>
    %65 = vector.multi_reduction <add>, %64, %cst_26 [1] : vector<8x8xf32> to vector<8xf32>
    %66 = vector.shape_cast %65 : vector<8xf32> to vector<8x1xf32>
    %67 = vector.broadcast %66 : vector<8x1xf32> to vector<8x8xf32>
    %68 = arith.divf %64, %67 : vector<8x8xf32>
    %cst_27 = arith.constant dense<0.000000e+00> : vector<8x16xf32>
    %69 = tpu.matmul %68, %56, %cst_27 {dimension_numbers = #tpu.dot_dimension_numbers<[1], [0], [0], [1], [0, 0, 1, 1], [], []>} : vector<8x8xf32>, vector<8x16xf32>, vector<8x16xf32> -> vector<8x16xf32>
    %70 = tpu.concatenate %53, %69 in 1 : vector<8x16xf32>, vector<8x16xf32> -> vector<8x32xf32>
    %71 = vector.extract_strided_slice %29 {offsets = [1, 0], sizes = [1, 8], strides = [1, 1]} : vector<2x8xf32> to vector<1x8xf32>
    %72 = vector.extract_strided_slice %36 {offsets = [8, 0], sizes = [8, 16], strides = [1, 1]} : vector<16x96xf32> to vector<8x16xf32>
    %73 = vector.extract_strided_slice %36 {offsets = [8, 32], sizes = [8, 16], strides = [1, 1]} : vector<16x96xf32> to vector<8x16xf32>
    %74 = vector.extract_strided_slice %36 {offsets = [8, 64], sizes = [8, 16], strides = [1, 1]} : vector<16x96xf32> to vector<8x16xf32>
    %cst_28 = arith.constant dense<0.000000e+00> : vector<8x8xf32>
    %75 = tpu.matmul %72, %73, %cst_28 {dimension_numbers = #tpu.dot_dimension_numbers<[1], [1], [0], [0], [0, 0, 1, 0], [], []>} : vector<8x16xf32>, vector<8x16xf32>, vector<8x8xf32> -> vector<8x8xf32>
    %76 = vector.broadcast %71 : vector<1x8xf32> to vector<8x8xf32>
    %77 = arith.addf %75, %76 : vector<8x8xf32>
    %cst_29 = arith.constant dense<0xFF800000> : vector<8xf32>
    %78 = vector.multi_reduction <maximumf>, %77, %cst_29 [1] : vector<8x8xf32> to vector<8xf32>
    %79 = vector.shape_cast %78 : vector<8xf32> to vector<8x1xf32>
    %80 = vector.broadcast %79 : vector<8x1xf32> to vector<8x8xf32>
    %81 = arith.subf %77, %80 : vector<8x8xf32>
    %82 = math.exp %81 : vector<8x8xf32>
    %cst_30 = arith.constant dense<0.000000e+00> : vector<8xf32>
    %83 = vector.multi_reduction <add>, %82, %cst_30 [1] : vector<8x8xf32> to vector<8xf32>
    %84 = vector.shape_cast %83 : vector<8xf32> to vector<8x1xf32>
    %85 = vector.broadcast %84 : vector<8x1xf32> to vector<8x8xf32>
    %86 = arith.divf %82, %85 : vector<8x8xf32>
    %cst_31 = arith.constant dense<0.000000e+00> : vector<8x16xf32>
    %87 = tpu.matmul %86, %74, %cst_31 {dimension_numbers = #tpu.dot_dimension_numbers<[1], [0], [0], [1], [0, 0, 1, 1], [], []>} : vector<8x8xf32>, vector<8x16xf32>, vector<8x16xf32> -> vector<8x16xf32>
    %88 = vector.extract_strided_slice %36 {offsets = [8, 16], sizes = [8, 16], strides = [1, 1]} : vector<16x96xf32> to vector<8x16xf32>
    %89 = vector.extract_strided_slice %36 {offsets = [8, 48], sizes = [8, 16], strides = [1, 1]} : vector<16x96xf32> to vector<8x16xf32>
    %90 = vector.extract_strided_slice %36 {offsets = [8, 80], sizes = [8, 16], strides = [1, 1]} : vector<16x96xf32> to vector<8x16xf32>
    %cst_32 = arith.constant dense<0.000000e+00> : vector<8x8xf32>
    %91 = tpu.matmul %88, %89, %cst_32 {dimension_numbers = #tpu.dot_dimension_numbers<[1], [1], [0], [0], [0, 0, 1, 0], [], []>} : vector<8x16xf32>, vector<8x16xf32>, vector<8x8xf32> -> vector<8x8xf32>
    %92 = vector.broadcast %71 : vector<1x8xf32> to vector<8x8xf32>
    %93 = arith.addf %91, %92 : vector<8x8xf32>
    %cst_33 = arith.constant dense<0xFF800000> : vector<8xf32>
    %94 = vector.multi_reduction <maximumf>, %93, %cst_33 [1] : vector<8x8xf32> to vector<8xf32>
    %95 = vector.shape_cast %94 : vector<8xf32> to vector<8x1xf32>
    %96 = vector.broadcast %95 : vector<8x1xf32> to vector<8x8xf32>
    %97 = arith.subf %93, %96 : vector<8x8xf32>
    %98 = math.exp %97 : vector<8x8xf32>
    %cst_34 = arith.constant dense<0.000000e+00> : vector<8xf32>
    %99 = vector.multi_reduction <add>, %98, %cst_34 [1] : vector<8x8xf32> to vector<8xf32>
    %100 = vector.shape_cast %99 : vector<8xf32> to vector<8x1xf32>
    %101 = vector.broadcast %100 : vector<8x1xf32> to vector<8x8xf32>
    %102 = arith.divf %98, %101 : vector<8x8xf32>
    %cst_35 = arith.constant dense<0.000000e+00> : vector<8x16xf32>
    %103 = tpu.matmul %102, %90, %cst_35 {dimension_numbers = #tpu.dot_dimension_numbers<[1], [0], [0], [1], [0, 0, 1, 1], [], []>} : vector<8x8xf32>, vector<8x16xf32>, vector<8x16xf32> -> vector<8x16xf32>
    %104 = tpu.concatenate %87, %103 in 1 : vector<8x16xf32>, vector<8x16xf32> -> vector<8x32xf32>
    %105 = tpu.concatenate %70, %104 in 0 : vector<8x32xf32>, vector<8x32xf32> -> vector<16x32xf32>
    %c0_36 = arith.constant 0 : index
    %c0_37 = arith.constant 0 : index
    %c0_38 = arith.constant 0 : index
    %106 = vector.load %arg8[%c0_36, %c0_37, %c0_38] : memref<4x32x32xf32, #tpu.memory_space<vmem>>, vector<1x32x32xf32>
    %107 = vector.shape_cast %106 : vector<1x32x32xf32> to vector<32x32xf32>
    %cst_39 = arith.constant dense<0.000000e+00> : vector<16x32xf32>
    %108 = tpu.matmul %105, %107, %cst_39 {dimension_numbers = #tpu.dot_dimension_numbers<[1], [0], [0], [1], [0, 0, 1, 1], [], []>} : vector<16x32xf32>, vector<32x32xf32>, vector<16x32xf32> -> vector<16x32xf32>
    %c0_40 = arith.constant 0 : index
    %c0_41 = arith.constant 0 : index
    %c0_42 = arith.constant 0 : index
    %109 = vector.load %arg9[%c0_40, %c0_41, %c0_42] : memref<4x1x32xf32, #tpu.memory_space<vmem>>, vector<1x1x32xf32>
    %110 = vector.shape_cast %109 : vector<1x1x32xf32> to vector<1x32xf32>
    %111 = vector.broadcast %110 : vector<1x32xf32> to vector<16x32xf32>
    %112 = arith.addf %108, %111 : vector<16x32xf32>
    %113 = arith.addf %112, %24 : vector<16x32xf32>
    %c0_43 = arith.constant 0 : index
    %c0_44 = arith.constant 0 : index
    %c0_45 = arith.constant 0 : index
    %114 = vector.load %arg10[%c0_43, %c0_44, %c0_45] : memref<4x1x32xf32, #tpu.memory_space<vmem>>, vector<1x1x32xf32>
    %115 = vector.shape_cast %114 : vector<1x1x32xf32> to vector<1x32xf32>
    %c0_46 = arith.constant 0 : index
    %c0_47 = arith.constant 0 : index
    %c0_48 = arith.constant 0 : index
    %116 = vector.load %arg11[%c0_46, %c0_47, %c0_48] : memref<4x1x32xf32, #tpu.memory_space<vmem>>, vector<1x1x32xf32>
    %117 = vector.shape_cast %116 : vector<1x1x32xf32> to vector<1x32xf32>
    %cst_49 = arith.constant dense<0.000000e+00> : vector<16xf32>
    %118 = vector.multi_reduction <add>, %113, %cst_49 [1] : vector<16x32xf32> to vector<16xf32>
    %119 = vector.shape_cast %118 : vector<16xf32> to vector<16x1xf32>
    %cst_50 = arith.constant 3.200000e+01 : f32
    %120 = vector.broadcast %cst_50 : f32 to vector<16x1xf32>
    %121 = arith.divf %119, %120 : vector<16x1xf32>
    %122 = vector.broadcast %121 : vector<16x1xf32> to vector<16x32xf32>
    %123 = arith.subf %113, %122 : vector<16x32xf32>
    %124 = arith.mulf %123, %123 : vector<16x32xf32>
    %cst_51 = arith.constant dense<0.000000e+00> : vector<16xf32>
    %125 = vector.multi_reduction <add>, %124, %cst_51 [1] : vector<16x32xf32> to vector<16xf32>
    %126 = vector.shape_cast %125 : vector<16xf32> to vector<16x1xf32>
    %cst_52 = arith.constant 3.200000e+01 : f32
    %127 = vector.broadcast %cst_52 : f32 to vector<16x1xf32>
    %128 = arith.divf %126, %127 : vector<16x1xf32>
    %129 = vector.broadcast %121 : vector<16x1xf32> to vector<16x32xf32>
    %130 = arith.subf %113, %129 : vector<16x32xf32>
    %cst_53 = arith.constant 9.99999996E-13 : f32
    %131 = vector.broadcast %cst_53 : f32 to vector<16x1xf32>
    %132 = arith.addf %128, %131 : vector<16x1xf32>
    %133 = math.rsqrt %132 : vector<16x1xf32>
    %134 = vector.broadcast %133 : vector<16x1xf32> to vector<16x32xf32>
    %135 = arith.mulf %130, %134 : vector<16x32xf32>
    %136 = vector.broadcast %115 : vector<1x32xf32> to vector<16x32xf32>
    %137 = arith.mulf %135, %136 : vector<16x32xf32>
    %138 = vector.broadcast %117 : vector<1x32xf32> to vector<16x32xf32>
    %139 = arith.addf %137, %138 : vector<16x32xf32>
    %c0_54 = arith.constant 0 : index
    %c0_55 = arith.constant 0 : index
    %c0_56 = arith.constant 0 : index
    %140 = vector.load %arg12[%c0_54, %c0_55, %c0_56] : memref<4x32x64xf32, #tpu.memory_space<vmem>>, vector<1x32x64xf32>
    %141 = vector.shape_cast %140 : vector<1x32x64xf32> to vector<32x64xf32>
    %cst_57 = arith.constant dense<0.000000e+00> : vector<16x64xf32>
    %142 = tpu.matmul %139, %141, %cst_57 {dimension_numbers = #tpu.dot_dimension_numbers<[1], [0], [0], [1], [0, 0, 1, 1], [], []>} : vector<16x32xf32>, vector<32x64xf32>, vector<16x64xf32> -> vector<16x64xf32>
    %c0_58 = arith.constant 0 : index
    %c0_59 = arith.constant 0 : index
    %c0_60 = arith.constant 0 : index
    %143 = vector.load %arg13[%c0_58, %c0_59, %c0_60] : memref<4x1x64xf32, #tpu.memory_space<vmem>>, vector<1x1x64xf32>
    %144 = vector.shape_cast %143 : vector<1x1x64xf32> to vector<1x64xf32>
    %145 = vector.broadcast %144 : vector<1x64xf32> to vector<16x64xf32>
    %146 = arith.addf %142, %145 : vector<16x64xf32>
    %cst_61 = arith.constant 5.000000e-01 : f32
    %147 = vector.broadcast %cst_61 : f32 to vector<16x64xf32>
    %148 = arith.mulf %147, %146 : vector<16x64xf32>
    %cst_62 = arith.constant 4.471500e-02 : f32
    %149 = vector.broadcast %cst_62 : f32 to vector<16x64xf32>
    %150 = arith.mulf %149, %146 : vector<16x64xf32>
    %151 = arith.mulf %150, %146 : vector<16x64xf32>
    %152 = arith.mulf %151, %146 : vector<16x64xf32>
    %153 = arith.addf %146, %152 : vector<16x64xf32>
    %cst_63 = arith.constant 0.797884583 : f32
    %154 = vector.broadcast %cst_63 : f32 to vector<16x64xf32>
    %155 = arith.mulf %154, %153 : vector<16x64xf32>
    %156 = math.tanh %155 : vector<16x64xf32>
    %cst_64 = arith.constant 1.000000e+00 : f32
    %157 = vector.broadcast %cst_64 : f32 to vector<16x64xf32>
    %158 = arith.addf %157, %156 : vector<16x64xf32>
    %159 = arith.mulf %148, %158 : vector<16x64xf32>
    %c0_65 = arith.constant 0 : index
    %c0_66 = arith.constant 0 : index
    %c0_67 = arith.constant 0 : index
    %160 = vector.load %arg14[%c0_65, %c0_66, %c0_67] : memref<4x64x32xf32, #tpu.memory_space<vmem>>, vector<1x64x32xf32>
    %161 = vector.shape_cast %160 : vector<1x64x32xf32> to vector<64x32xf32>
    %cst_68 = arith.constant dense<0.000000e+00> : vector<16x32xf32>
    %162 = tpu.matmul %159, %161, %cst_68 {dimension_numbers = #tpu.dot_dimension_numbers<[1], [0], [0], [1], [0, 0, 1, 1], [], []>} : vector<16x64xf32>, vector<64x32xf32>, vector<16x32xf32> -> vector<16x32xf32>
    %c0_69 = arith.constant 0 : index
    %c0_70 = arith.constant 0 : index
    %c0_71 = arith.constant 0 : index
    %163 = vector.load %arg15[%c0_69, %c0_70, %c0_71] : memref<4x1x32xf32, #tpu.memory_space<vmem>>, vector<1x1x32xf32>
    %164 = vector.shape_cast %163 : vector<1x1x32xf32> to vector<1x32xf32>
    %165 = vector.broadcast %164 : vector<1x32xf32> to vector<16x32xf32>
    %166 = arith.addf %162, %165 : vector<16x32xf32>
    %167 = arith.addf %166, %139 : vector<16x32xf32>
    %c0_72 = arith.constant 0 : index
    %c0_73 = arith.constant 0 : index
    %c0_74 = arith.constant 0 : index
    %168 = vector.load %arg16[%c0_72, %c0_73, %c0_74] : memref<4x1x32xf32, #tpu.memory_space<vmem>>, vector<1x1x32xf32>
    %169 = vector.shape_cast %168 : vector<1x1x32xf32> to vector<1x32xf32>
    %c0_75 = arith.constant 0 : index
    %c0_76 = arith.constant 0 : index
    %c0_77 = arith.constant 0 : index
    %170 = vector.load %arg17[%c0_75, %c0_76, %c0_77] : memref<4x1x32xf32, #tpu.memory_space<vmem>>, vector<1x1x32xf32>
    %171 = vector.shape_cast %170 : vector<1x1x32xf32> to vector<1x32xf32>
    %cst_78 = arith.constant dense<0.000000e+00> : vector<16xf32>
    %172 = vector.multi_reduction <add>, %167, %cst_78 [1] : vector<16x32xf32> to vector<16xf32>
    %173 = vector.shape_cast %172 : vector<16xf32> to vector<16x1xf32>
    %cst_79 = arith.constant 3.200000e+01 : f32
    %174 = vector.broadcast %cst_79 : f32 to vector<16x1xf32>
    %175 = arith.divf %173, %174 : vector<16x1xf32>
    %176 = vector.broadcast %175 : vector<16x1xf32> to vector<16x32xf32>
    %177 = arith.subf %167, %176 : vector<16x32xf32>
    %178 = arith.mulf %177, %177 : vector<16x32xf32>
    %cst_80 = arith.constant dense<0.000000e+00> : vector<16xf32>
    %179 = vector.multi_reduction <add>, %178, %cst_80 [1] : vector<16x32xf32> to vector<16xf32>
    %180 = vector.shape_cast %179 : vector<16xf32> to vector<16x1xf32>
    %cst_81 = arith.constant 3.200000e+01 : f32
    %181 = vector.broadcast %cst_81 : f32 to vector<16x1xf32>
    %182 = arith.divf %180, %181 : vector<16x1xf32>
    %183 = vector.broadcast %175 : vector<16x1xf32> to vector<16x32xf32>
    %184 = arith.subf %167, %183 : vector<16x32xf32>
    %cst_82 = arith.constant 9.99999996E-13 : f32
    %185 = vector.broadcast %cst_82 : f32 to vector<16x1xf32>
    %186 = arith.addf %182, %185 : vector<16x1xf32>
    %187 = math.rsqrt %186 : vector<16x1xf32>
    %188 = vector.broadcast %187 : vector<16x1xf32> to vector<16x32xf32>
    %189 = arith.mulf %184, %188 : vector<16x32xf32>
    %190 = vector.broadcast %169 : vector<1x32xf32> to vector<16x32xf32>
    %191 = arith.mulf %189, %190 : vector<16x32xf32>
    %192 = vector.broadcast %171 : vector<1x32xf32> to vector<16x32xf32>
    %193 = arith.addf %191, %192 : vector<16x32xf32>
    %c1 = arith.constant 1 : index
    %c0_83 = arith.constant 0 : index
    %c0_84 = arith.constant 0 : index
    %194 = vector.load %arg6[%c1, %c0_83, %c0_84] : memref<4x32x96xf32, #tpu.memory_space<vmem>>, vector<1x32x96xf32>
    %195 = vector.shape_cast %194 : vector<1x32x96xf32> to vector<32x96xf32>
    %cst_85 = arith.constant dense<0.000000e+00> : vector<16x96xf32>
    %196 = tpu.matmul %193, %195, %cst_85 {dimension_numbers = #tpu.dot_dimension_numbers<[1], [0], [0], [1], [0, 0, 1, 1], [], []>} : vector<16x32xf32>, vector<32x96xf32>, vector<16x96xf32> -> vector<16x96xf32>
    %c1_86 = arith.constant 1 : index
    %c0_87 = arith.constant 0 : index
    %c0_88 = arith.constant 0 : index
    %197 = vector.load %arg7[%c1_86, %c0_87, %c0_88] : memref<4x1x96xf32, #tpu.memory_space<vmem>>, vector<1x1x96xf32>
    %198 = vector.shape_cast %197 : vector<1x1x96xf32> to vector<1x96xf32>
    %199 = vector.broadcast %198 : vector<1x96xf32> to vector<16x96xf32>
    %200 = arith.addf %196, %199 : vector<16x96xf32>
    %201 = vector.extract_strided_slice %29 {offsets = [0, 0], sizes = [1, 8], strides = [1, 1]} : vector<2x8xf32> to vector<1x8xf32>
    %202 = vector.extract_strided_slice %200 {offsets = [0, 0], sizes = [8, 16], strides = [1, 1]} : vector<16x96xf32> to vector<8x16xf32>
    %203 = vector.extract_strided_slice %200 {offsets = [0, 32], sizes = [8, 16], strides = [1, 1]} : vector<16x96xf32> to vector<8x16xf32>
    %204 = vector.extract_strided_slice %200 {offsets = [0, 64], sizes = [8, 16], strides = [1, 1]} : vector<16x96xf32> to vector<8x16xf32>
    %cst_89 = arith.constant dense<0.000000e+00> : vector<8x8xf32>
    %205 = tpu.matmul %202, %203, %cst_89 {dimension_numbers = #tpu.dot_dimension_numbers<[1], [1], [0], [0], [0, 0, 1, 0], [], []>} : vector<8x16xf32>, vector<8x16xf32>, vector<8x8xf32> -> vector<8x8xf32>
    %206 = vector.broadcast %201 : vector<1x8xf32> to vector<8x8xf32>
    %207 = arith.addf %205, %206 : vector<8x8xf32>
    %cst_90 = arith.constant dense<0xFF800000> : vector<8xf32>
    %208 = vector.multi_reduction <maximumf>, %207, %cst_90 [1] : vector<8x8xf32> to vector<8xf32>
    %209 = vector.shape_cast %208 : vector<8xf32> to vector<8x1xf32>
    %210 = vector.broadcast %209 : vector<8x1xf32> to vector<8x8xf32>
    %211 = arith.subf %207, %210 : vector<8x8xf32>
    %212 = math.exp %211 : vector<8x8xf32>
    %cst_91 = arith.constant dense<0.000000e+00> : vector<8xf32>
    %213 = vector.multi_reduction <add>, %212, %cst_91 [1] : vector<8x8xf32> to vector<8xf32>
    %214 = vector.shape_cast %213 : vector<8xf32> to vector<8x1xf32>
    %215 = vector.broadcast %214 : vector<8x1xf32> to vector<8x8xf32>
    %216 = arith.divf %212, %215 : vector<8x8xf32>
    %cst_92 = arith.constant dense<0.000000e+00> : vector<8x16xf32>
    %217 = tpu.matmul %216, %204, %cst_92 {dimension_numbers = #tpu.dot_dimension_numbers<[1], [0], [0], [1], [0, 0, 1, 1], [], []>} : vector<8x8xf32>, vector<8x16xf32>, vector<8x16xf32> -> vector<8x16xf32>
    %218 = vector.extract_strided_slice %200 {offsets = [0, 16], sizes = [8, 16], strides = [1, 1]} : vector<16x96xf32> to vector<8x16xf32>
    %219 = vector.extract_strided_slice %200 {offsets = [0, 48], sizes = [8, 16], strides = [1, 1]} : vector<16x96xf32> to vector<8x16xf32>
    %220 = vector.extract_strided_slice %200 {offsets = [0, 80], sizes = [8, 16], strides = [1, 1]} : vector<16x96xf32> to vector<8x16xf32>
    %cst_93 = arith.constant dense<0.000000e+00> : vector<8x8xf32>
    %221 = tpu.matmul %218, %219, %cst_93 {dimension_numbers = #tpu.dot_dimension_numbers<[1], [1], [0], [0], [0, 0, 1, 0], [], []>} : vector<8x16xf32>, vector<8x16xf32>, vector<8x8xf32> -> vector<8x8xf32>
    %222 = vector.broadcast %201 : vector<1x8xf32> to vector<8x8xf32>
    %223 = arith.addf %221, %222 : vector<8x8xf32>
    %cst_94 = arith.constant dense<0xFF800000> : vector<8xf32>
    %224 = vector.multi_reduction <maximumf>, %223, %cst_94 [1] : vector<8x8xf32> to vector<8xf32>
    %225 = vector.shape_cast %224 : vector<8xf32> to vector<8x1xf32>
    %226 = vector.broadcast %225 : vector<8x1xf32> to vector<8x8xf32>
    %227 = arith.subf %223, %226 : vector<8x8xf32>
    %228 = math.exp %227 : vector<8x8xf32>
    %cst_95 = arith.constant dense<0.000000e+00> : vector<8xf32>
    %229 = vector.multi_reduction <add>, %228, %cst_95 [1] : vector<8x8xf32> to vector<8xf32>
    %230 = vector.shape_cast %229 : vector<8xf32> to vector<8x1xf32>
    %231 = vector.broadcast %230 : vector<8x1xf32> to vector<8x8xf32>
    %232 = arith.divf %228, %231 : vector<8x8xf32>
    %cst_96 = arith.constant dense<0.000000e+00> : vector<8x16xf32>
    %233 = tpu.matmul %232, %220, %cst_96 {dimension_numbers = #tpu.dot_dimension_numbers<[1], [0], [0], [1], [0, 0, 1, 1], [], []>} : vector<8x8xf32>, vector<8x16xf32>, vector<8x16xf32> -> vector<8x16xf32>
    %234 = tpu.concatenate %217, %233 in 1 : vector<8x16xf32>, vector<8x16xf32> -> vector<8x32xf32>
    %235 = vector.extract_strided_slice %29 {offsets = [1, 0], sizes = [1, 8], strides = [1, 1]} : vector<2x8xf32> to vector<1x8xf32>
    %236 = vector.extract_strided_slice %200 {offsets = [8, 0], sizes = [8, 16], strides = [1, 1]} : vector<16x96xf32> to vector<8x16xf32>
    %237 = vector.extract_strided_slice %200 {offsets = [8, 32], sizes = [8, 16], strides = [1, 1]} : vector<16x96xf32> to vector<8x16xf32>
    %238 = vector.extract_strided_slice %200 {offsets = [8, 64], sizes = [8, 16], strides = [1, 1]} : vector<16x96xf32> to vector<8x16xf32>
    %cst_97 = arith.constant dense<0.000000e+00> : vector<8x8xf32>
    %239 = tpu.matmul %236, %237, %cst_97 {dimension_numbers = #tpu.dot_dimension_numbers<[1], [1], [0], [0], [0, 0, 1, 0], [], []>} : vector<8x16xf32>, vector<8x16xf32>, vector<8x8xf32> -> vector<8x8xf32>
    %240 = vector.broadcast %235 : vector<1x8xf32> to vector<8x8xf32>
    %241 = arith.addf %239, %240 : vector<8x8xf32>
    %cst_98 = arith.constant dense<0xFF800000> : vector<8xf32>
    %242 = vector.multi_reduction <maximumf>, %241, %cst_98 [1] : vector<8x8xf32> to vector<8xf32>
    %243 = vector.shape_cast %242 : vector<8xf32> to vector<8x1xf32>
    %244 = vector.broadcast %243 : vector<8x1xf32> to vector<8x8xf32>
    %245 = arith.subf %241, %244 : vector<8x8xf32>
    %246 = math.exp %245 : vector<8x8xf32>
    %cst_99 = arith.constant dense<0.000000e+00> : vector<8xf32>
    %247 = vector.multi_reduction <add>, %246, %cst_99 [1] : vector<8x8xf32> to vector<8xf32>
    %248 = vector.shape_cast %247 : vector<8xf32> to vector<8x1xf32>
    %249 = vector.broadcast %248 : vector<8x1xf32> to vector<8x8xf32>
    %250 = arith.divf %246, %249 : vector<8x8xf32>
    %cst_100 = arith.constant dense<0.000000e+00> : vector<8x16xf32>
    %251 = tpu.matmul %250, %238, %cst_100 {dimension_numbers = #tpu.dot_dimension_numbers<[1], [0], [0], [1], [0, 0, 1, 1], [], []>} : vector<8x8xf32>, vector<8x16xf32>, vector<8x16xf32> -> vector<8x16xf32>
    %252 = vector.extract_strided_slice %200 {offsets = [8, 16], sizes = [8, 16], strides = [1, 1]} : vector<16x96xf32> to vector<8x16xf32>
    %253 = vector.extract_strided_slice %200 {offsets = [8, 48], sizes = [8, 16], strides = [1, 1]} : vector<16x96xf32> to vector<8x16xf32>
    %254 = vector.extract_strided_slice %200 {offsets = [8, 80], sizes = [8, 16], strides = [1, 1]} : vector<16x96xf32> to vector<8x16xf32>
    %cst_101 = arith.constant dense<0.000000e+00> : vector<8x8xf32>
    %255 = tpu.matmul %252, %253, %cst_101 {dimension_numbers = #tpu.dot_dimension_numbers<[1], [1], [0], [0], [0, 0, 1, 0], [], []>} : vector<8x16xf32>, vector<8x16xf32>, vector<8x8xf32> -> vector<8x8xf32>
    %256 = vector.broadcast %235 : vector<1x8xf32> to vector<8x8xf32>
    %257 = arith.addf %255, %256 : vector<8x8xf32>
    %cst_102 = arith.constant dense<0xFF800000> : vector<8xf32>
    %258 = vector.multi_reduction <maximumf>, %257, %cst_102 [1] : vector<8x8xf32> to vector<8xf32>
    %259 = vector.shape_cast %258 : vector<8xf32> to vector<8x1xf32>
    %260 = vector.broadcast %259 : vector<8x1xf32> to vector<8x8xf32>
    %261 = arith.subf %257, %260 : vector<8x8xf32>
    %262 = math.exp %261 : vector<8x8xf32>
    %cst_103 = arith.constant dense<0.000000e+00> : vector<8xf32>
    %263 = vector.multi_reduction <add>, %262, %cst_103 [1] : vector<8x8xf32> to vector<8xf32>
    %264 = vector.shape_cast %263 : vector<8xf32> to vector<8x1xf32>
    %265 = vector.broadcast %264 : vector<8x1xf32> to vector<8x8xf32>
    %266 = arith.divf %262, %265 : vector<8x8xf32>
    %cst_104 = arith.constant dense<0.000000e+00> : vector<8x16xf32>
    %267 = tpu.matmul %266, %254, %cst_104 {dimension_numbers = #tpu.dot_dimension_numbers<[1], [0], [0], [1], [0, 0, 1, 1], [], []>} : vector<8x8xf32>, vector<8x16xf32>, vector<8x16xf32> -> vector<8x16xf32>
    %268 = tpu.concatenate %251, %267 in 1 : vector<8x16xf32>, vector<8x16xf32> -> vector<8x32xf32>
    %269 = tpu.concatenate %234, %268 in 0 : vector<8x32xf32>, vector<8x32xf32> -> vector<16x32xf32>
    %c1_105 = arith.constant 1 : index
    %c0_106 = arith.constant 0 : index
    %c0_107 = arith.constant 0 : index
    %270 = vector.load %arg8[%c1_105, %c0_106, %c0_107] : memref<4x32x32xf32, #tpu.memory_space<vmem>>, vector<1x32x32xf32>
    %271 = vector.shape_cast %270 : vector<1x32x32xf32> to vector<32x32xf32>
    %cst_108 = arith.constant dense<0.000000e+00> : vector<16x32xf32>
    %272 = tpu.matmul %269, %271, %cst_108 {dimension_numbers = #tpu.dot_dimension_numbers<[1], [0], [0], [1], [0, 0, 1, 1], [], []>} : vector<16x32xf32>, vector<32x32xf32>, vector<16x32xf32> -> vector<16x32xf32>
    %c1_109 = arith.constant 1 : index
    %c0_110 = arith.constant 0 : index
    %c0_111 = arith.constant 0 : index
    %273 = vector.load %arg9[%c1_109, %c0_110, %c0_111] : memref<4x1x32xf32, #tpu.memory_space<vmem>>, vector<1x1x32xf32>
    %274 = vector.shape_cast %273 : vector<1x1x32xf32> to vector<1x32xf32>
    %275 = vector.broadcast %274 : vector<1x32xf32> to vector<16x32xf32>
    %276 = arith.addf %272, %275 : vector<16x32xf32>
    %277 = arith.addf %276, %193 : vector<16x32xf32>
    %c1_112 = arith.constant 1 : index
    %c0_113 = arith.constant 0 : index
    %c0_114 = arith.constant 0 : index
    %278 = vector.load %arg10[%c1_112, %c0_113, %c0_114] : memref<4x1x32xf32, #tpu.memory_space<vmem>>, vector<1x1x32xf32>
    %279 = vector.shape_cast %278 : vector<1x1x32xf32> to vector<1x32xf32>
    %c1_115 = arith.constant 1 : index
    %c0_116 = arith.constant 0 : index
    %c0_117 = arith.constant 0 : index
    %280 = vector.load %arg11[%c1_115, %c0_116, %c0_117] : memref<4x1x32xf32, #tpu.memory_space<vmem>>, vector<1x1x32xf32>
    %281 = vector.shape_cast %280 : vector<1x1x32xf32> to vector<1x32xf32>
    %cst_118 = arith.constant dense<0.000000e+00> : vector<16xf32>
    %282 = vector.multi_reduction <add>, %277, %cst_118 [1] : vector<16x32xf32> to vector<16xf32>
    %283 = vector.shape_cast %282 : vector<16xf32> to vector<16x1xf32>
    %cst_119 = arith.constant 3.200000e+01 : f32
    %284 = vector.broadcast %cst_119 : f32 to vector<16x1xf32>
    %285 = arith.divf %283, %284 : vector<16x1xf32>
    %286 = vector.broadcast %285 : vector<16x1xf32> to vector<16x32xf32>
    %287 = arith.subf %277, %286 : vector<16x32xf32>
    %288 = arith.mulf %287, %287 : vector<16x32xf32>
    %cst_120 = arith.constant dense<0.000000e+00> : vector<16xf32>
    %289 = vector.multi_reduction <add>, %288, %cst_120 [1] : vector<16x32xf32> to vector<16xf32>
    %290 = vector.shape_cast %289 : vector<16xf32> to vector<16x1xf32>
    %cst_121 = arith.constant 3.200000e+01 : f32
    %291 = vector.broadcast %cst_121 : f32 to vector<16x1xf32>
    %292 = arith.divf %290, %291 : vector<16x1xf32>
    %293 = vector.broadcast %285 : vector<16x1xf32> to vector<16x32xf32>
    %294 = arith.subf %277, %293 : vector<16x32xf32>
    %cst_122 = arith.constant 9.99999996E-13 : f32
    %295 = vector.broadcast %cst_122 : f32 to vector<16x1xf32>
    %296 = arith.addf %292, %295 : vector<16x1xf32>
    %297 = math.rsqrt %296 : vector<16x1xf32>
    %298 = vector.broadcast %297 : vector<16x1xf32> to vector<16x32xf32>
    %299 = arith.mulf %294, %298 : vector<16x32xf32>
    %300 = vector.broadcast %279 : vector<1x32xf32> to vector<16x32xf32>
    %301 = arith.mulf %299, %300 : vector<16x32xf32>
    %302 = vector.broadcast %281 : vector<1x32xf32> to vector<16x32xf32>
    %303 = arith.addf %301, %302 : vector<16x32xf32>
    %c1_123 = arith.constant 1 : index
    %c0_124 = arith.constant 0 : index
    %c0_125 = arith.constant 0 : index
    %304 = vector.load %arg12[%c1_123, %c0_124, %c0_125] : memref<4x32x64xf32, #tpu.memory_space<vmem>>, vector<1x32x64xf32>
    %305 = vector.shape_cast %304 : vector<1x32x64xf32> to vector<32x64xf32>
    %cst_126 = arith.constant dense<0.000000e+00> : vector<16x64xf32>
    %306 = tpu.matmul %303, %305, %cst_126 {dimension_numbers = #tpu.dot_dimension_numbers<[1], [0], [0], [1], [0, 0, 1, 1], [], []>} : vector<16x32xf32>, vector<32x64xf32>, vector<16x64xf32> -> vector<16x64xf32>
    %c1_127 = arith.constant 1 : index
    %c0_128 = arith.constant 0 : index
    %c0_129 = arith.constant 0 : index
    %307 = vector.load %arg13[%c1_127, %c0_128, %c0_129] : memref<4x1x64xf32, #tpu.memory_space<vmem>>, vector<1x1x64xf32>
    %308 = vector.shape_cast %307 : vector<1x1x64xf32> to vector<1x64xf32>
    %309 = vector.broadcast %308 : vector<1x64xf32> to vector<16x64xf32>
    %310 = arith.addf %306, %309 : vector<16x64xf32>
    %cst_130 = arith.constant 5.000000e-01 : f32
    %311 = vector.broadcast %cst_130 : f32 to vector<16x64xf32>
    %312 = arith.mulf %311, %310 : vector<16x64xf32>
    %cst_131 = arith.constant 4.471500e-02 : f32
    %313 = vector.broadcast %cst_131 : f32 to vector<16x64xf32>
    %314 = arith.mulf %313, %310 : vector<16x64xf32>
    %315 = arith.mulf %314, %310 : vector<16x64xf32>
    %316 = arith.mulf %315, %310 : vector<16x64xf32>
    %317 = arith.addf %310, %316 : vector<16x64xf32>
    %cst_132 = arith.constant 0.797884583 : f32
    %318 = vector.broadcast %cst_132 : f32 to vector<16x64xf32>
    %319 = arith.mulf %318, %317 : vector<16x64xf32>
    %320 = math.tanh %319 : vector<16x64xf32>
    %cst_133 = arith.constant 1.000000e+00 : f32
    %321 = vector.broadcast %cst_133 : f32 to vector<16x64xf32>
    %322 = arith.addf %321, %320 : vector<16x64xf32>
    %323 = arith.mulf %312, %322 : vector<16x64xf32>
    %c1_134 = arith.constant 1 : index
    %c0_135 = arith.constant 0 : index
    %c0_136 = arith.constant 0 : index
    %324 = vector.load %arg14[%c1_134, %c0_135, %c0_136] : memref<4x64x32xf32, #tpu.memory_space<vmem>>, vector<1x64x32xf32>
    %325 = vector.shape_cast %324 : vector<1x64x32xf32> to vector<64x32xf32>
    %cst_137 = arith.constant dense<0.000000e+00> : vector<16x32xf32>
    %326 = tpu.matmul %323, %325, %cst_137 {dimension_numbers = #tpu.dot_dimension_numbers<[1], [0], [0], [1], [0, 0, 1, 1], [], []>} : vector<16x64xf32>, vector<64x32xf32>, vector<16x32xf32> -> vector<16x32xf32>
    %c1_138 = arith.constant 1 : index
    %c0_139 = arith.constant 0 : index
    %c0_140 = arith.constant 0 : index
    %327 = vector.load %arg15[%c1_138, %c0_139, %c0_140] : memref<4x1x32xf32, #tpu.memory_space<vmem>>, vector<1x1x32xf32>
    %328 = vector.shape_cast %327 : vector<1x1x32xf32> to vector<1x32xf32>
    %329 = vector.broadcast %328 : vector<1x32xf32> to vector<16x32xf32>
    %330 = arith.addf %326, %329 : vector<16x32xf32>
    %331 = arith.addf %330, %303 : vector<16x32xf32>
    %c1_141 = arith.constant 1 : index
    %c0_142 = arith.constant 0 : index
    %c0_143 = arith.constant 0 : index
    %332 = vector.load %arg16[%c1_141, %c0_142, %c0_143] : memref<4x1x32xf32, #tpu.memory_space<vmem>>, vector<1x1x32xf32>
    %333 = vector.shape_cast %332 : vector<1x1x32xf32> to vector<1x32xf32>
    %c1_144 = arith.constant 1 : index
    %c0_145 = arith.constant 0 : index
    %c0_146 = arith.constant 0 : index
    %334 = vector.load %arg17[%c1_144, %c0_145, %c0_146] : memref<4x1x32xf32, #tpu.memory_space<vmem>>, vector<1x1x32xf32>
    %335 = vector.shape_cast %334 : vector<1x1x32xf32> to vector<1x32xf32>
    %cst_147 = arith.constant dense<0.000000e+00> : vector<16xf32>
    %336 = vector.multi_reduction <add>, %331, %cst_147 [1] : vector<16x32xf32> to vector<16xf32>
    %337 = vector.shape_cast %336 : vector<16xf32> to vector<16x1xf32>
    %cst_148 = arith.constant 3.200000e+01 : f32
    %338 = vector.broadcast %cst_148 : f32 to vector<16x1xf32>
    %339 = arith.divf %337, %338 : vector<16x1xf32>
    %340 = vector.broadcast %339 : vector<16x1xf32> to vector<16x32xf32>
    %341 = arith.subf %331, %340 : vector<16x32xf32>
    %342 = arith.mulf %341, %341 : vector<16x32xf32>
    %cst_149 = arith.constant dense<0.000000e+00> : vector<16xf32>
    %343 = vector.multi_reduction <add>, %342, %cst_149 [1] : vector<16x32xf32> to vector<16xf32>
    %344 = vector.shape_cast %343 : vector<16xf32> to vector<16x1xf32>
    %cst_150 = arith.constant 3.200000e+01 : f32
    %345 = vector.broadcast %cst_150 : f32 to vector<16x1xf32>
    %346 = arith.divf %344, %345 : vector<16x1xf32>
    %347 = vector.broadcast %339 : vector<16x1xf32> to vector<16x32xf32>
    %348 = arith.subf %331, %347 : vector<16x32xf32>
    %cst_151 = arith.constant 9.99999996E-13 : f32
    %349 = vector.broadcast %cst_151 : f32 to vector<16x1xf32>
    %350 = arith.addf %346, %349 : vector<16x1xf32>
    %351 = math.rsqrt %350 : vector<16x1xf32>
    %352 = vector.broadcast %351 : vector<16x1xf32> to vector<16x32xf32>
    %353 = arith.mulf %348, %352 : vector<16x32xf32>
    %354 = vector.broadcast %333 : vector<1x32xf32> to vector<16x32xf32>
    %355 = arith.mulf %353, %354 : vector<16x32xf32>
    %356 = vector.broadcast %335 : vector<1x32xf32> to vector<16x32xf32>
    %357 = arith.addf %355, %356 : vector<16x32xf32>
    %c2 = arith.constant 2 : index
    %c0_152 = arith.constant 0 : index
    %c0_153 = arith.constant 0 : index
    %358 = vector.load %arg6[%c2, %c0_152, %c0_153] : memref<4x32x96xf32, #tpu.memory_space<vmem>>, vector<1x32x96xf32>
    %359 = vector.shape_cast %358 : vector<1x32x96xf32> to vector<32x96xf32>
    %cst_154 = arith.constant dense<0.000000e+00> : vector<16x96xf32>
    %360 = tpu.matmul %357, %359, %cst_154 {dimension_numbers = #tpu.dot_dimension_numbers<[1], [0], [0], [1], [0, 0, 1, 1], [], []>} : vector<16x32xf32>, vector<32x96xf32>, vector<16x96xf32> -> vector<16x96xf32>
    %c2_155 = arith.constant 2 : index
    %c0_156 = arith.constant 0 : index
    %c0_157 = arith.constant 0 : index
    %361 = vector.load %arg7[%c2_155, %c0_156, %c0_157] : memref<4x1x96xf32, #tpu.memory_space<vmem>>, vector<1x1x96xf32>
    %362 = vector.shape_cast %361 : vector<1x1x96xf32> to vector<1x96xf32>
    %363 = vector.broadcast %362 : vector<1x96xf32> to vector<16x96xf32>
    %364 = arith.addf %360, %363 : vector<16x96xf32>
    %365 = vector.extract_strided_slice %29 {offsets = [0, 0], sizes = [1, 8], strides = [1, 1]} : vector<2x8xf32> to vector<1x8xf32>
    %366 = vector.extract_strided_slice %364 {offsets = [0, 0], sizes = [8, 16], strides = [1, 1]} : vector<16x96xf32> to vector<8x16xf32>
    %367 = vector.extract_strided_slice %364 {offsets = [0, 32], sizes = [8, 16], strides = [1, 1]} : vector<16x96xf32> to vector<8x16xf32>
    %368 = vector.extract_strided_slice %364 {offsets = [0, 64], sizes = [8, 16], strides = [1, 1]} : vector<16x96xf32> to vector<8x16xf32>
    %cst_158 = arith.constant dense<0.000000e+00> : vector<8x8xf32>
    %369 = tpu.matmul %366, %367, %cst_158 {dimension_numbers = #tpu.dot_dimension_numbers<[1], [1], [0], [0], [0, 0, 1, 0], [], []>} : vector<8x16xf32>, vector<8x16xf32>, vector<8x8xf32> -> vector<8x8xf32>
    %370 = vector.broadcast %365 : vector<1x8xf32> to vector<8x8xf32>
    %371 = arith.addf %369, %370 : vector<8x8xf32>
    %cst_159 = arith.constant dense<0xFF800000> : vector<8xf32>
    %372 = vector.multi_reduction <maximumf>, %371, %cst_159 [1] : vector<8x8xf32> to vector<8xf32>
    %373 = vector.shape_cast %372 : vector<8xf32> to vector<8x1xf32>
    %374 = vector.broadcast %373 : vector<8x1xf32> to vector<8x8xf32>
    %375 = arith.subf %371, %374 : vector<8x8xf32>
    %376 = math.exp %375 : vector<8x8xf32>
    %cst_160 = arith.constant dense<0.000000e+00> : vector<8xf32>
    %377 = vector.multi_reduction <add>, %376, %cst_160 [1] : vector<8x8xf32> to vector<8xf32>
    %378 = vector.shape_cast %377 : vector<8xf32> to vector<8x1xf32>
    %379 = vector.broadcast %378 : vector<8x1xf32> to vector<8x8xf32>
    %380 = arith.divf %376, %379 : vector<8x8xf32>
    %cst_161 = arith.constant dense<0.000000e+00> : vector<8x16xf32>
    %381 = tpu.matmul %380, %368, %cst_161 {dimension_numbers = #tpu.dot_dimension_numbers<[1], [0], [0], [1], [0, 0, 1, 1], [], []>} : vector<8x8xf32>, vector<8x16xf32>, vector<8x16xf32> -> vector<8x16xf32>
    %382 = vector.extract_strided_slice %364 {offsets = [0, 16], sizes = [8, 16], strides = [1, 1]} : vector<16x96xf32> to vector<8x16xf32>
    %383 = vector.extract_strided_slice %364 {offsets = [0, 48], sizes = [8, 16], strides = [1, 1]} : vector<16x96xf32> to vector<8x16xf32>
    %384 = vector.extract_strided_slice %364 {offsets = [0, 80], sizes = [8, 16], strides = [1, 1]} : vector<16x96xf32> to vector<8x16xf32>
    %cst_162 = arith.constant dense<0.000000e+00> : vector<8x8xf32>
    %385 = tpu.matmul %382, %383, %cst_162 {dimension_numbers = #tpu.dot_dimension_numbers<[1], [1], [0], [0], [0, 0, 1, 0], [], []>} : vector<8x16xf32>, vector<8x16xf32>, vector<8x8xf32> -> vector<8x8xf32>
    %386 = vector.broadcast %365 : vector<1x8xf32> to vector<8x8xf32>
    %387 = arith.addf %385, %386 : vector<8x8xf32>
    %cst_163 = arith.constant dense<0xFF800000> : vector<8xf32>
    %388 = vector.multi_reduction <maximumf>, %387, %cst_163 [1] : vector<8x8xf32> to vector<8xf32>
    %389 = vector.shape_cast %388 : vector<8xf32> to vector<8x1xf32>
    %390 = vector.broadcast %389 : vector<8x1xf32> to vector<8x8xf32>
    %391 = arith.subf %387, %390 : vector<8x8xf32>
    %392 = math.exp %391 : vector<8x8xf32>
    %cst_164 = arith.constant dense<0.000000e+00> : vector<8xf32>
    %393 = vector.multi_reduction <add>, %392, %cst_164 [1] : vector<8x8xf32> to vector<8xf32>
    %394 = vector.shape_cast %393 : vector<8xf32> to vector<8x1xf32>
    %395 = vector.broadcast %394 : vector<8x1xf32> to vector<8x8xf32>
    %396 = arith.divf %392, %395 : vector<8x8xf32>
    %cst_165 = arith.constant dense<0.000000e+00> : vector<8x16xf32>
    %397 = tpu.matmul %396, %384, %cst_165 {dimension_numbers = #tpu.dot_dimension_numbers<[1], [0], [0], [1], [0, 0, 1, 1], [], []>} : vector<8x8xf32>, vector<8x16xf32>, vector<8x16xf32> -> vector<8x16xf32>
    %398 = tpu.concatenate %381, %397 in 1 : vector<8x16xf32>, vector<8x16xf32> -> vector<8x32xf32>
    %399 = vector.extract_strided_slice %29 {offsets = [1, 0], sizes = [1, 8], strides = [1, 1]} : vector<2x8xf32> to vector<1x8xf32>
    %400 = vector.extract_strided_slice %364 {offsets = [8, 0], sizes = [8, 16], strides = [1, 1]} : vector<16x96xf32> to vector<8x16xf32>
    %401 = vector.extract_strided_slice %364 {offsets = [8, 32], sizes = [8, 16], strides = [1, 1]} : vector<16x96xf32> to vector<8x16xf32>
    %402 = vector.extract_strided_slice %364 {offsets = [8, 64], sizes = [8, 16], strides = [1, 1]} : vector<16x96xf32> to vector<8x16xf32>
    %cst_166 = arith.constant dense<0.000000e+00> : vector<8x8xf32>
    %403 = tpu.matmul %400, %401, %cst_166 {dimension_numbers = #tpu.dot_dimension_numbers<[1], [1], [0], [0], [0, 0, 1, 0], [], []>} : vector<8x16xf32>, vector<8x16xf32>, vector<8x8xf32> -> vector<8x8xf32>
    %404 = vector.broadcast %399 : vector<1x8xf32> to vector<8x8xf32>
    %405 = arith.addf %403, %404 : vector<8x8xf32>
    %cst_167 = arith.constant dense<0xFF800000> : vector<8xf32>
    %406 = vector.multi_reduction <maximumf>, %405, %cst_167 [1] : vector<8x8xf32> to vector<8xf32>
    %407 = vector.shape_cast %406 : vector<8xf32> to vector<8x1xf32>
    %408 = vector.broadcast %407 : vector<8x1xf32> to vector<8x8xf32>
    %409 = arith.subf %405, %408 : vector<8x8xf32>
    %410 = math.exp %409 : vector<8x8xf32>
    %cst_168 = arith.constant dense<0.000000e+00> : vector<8xf32>
    %411 = vector.multi_reduction <add>, %410, %cst_168 [1] : vector<8x8xf32> to vector<8xf32>
    %412 = vector.shape_cast %411 : vector<8xf32> to vector<8x1xf32>
    %413 = vector.broadcast %412 : vector<8x1xf32> to vector<8x8xf32>
    %414 = arith.divf %410, %413 : vector<8x8xf32>
    %cst_169 = arith.constant dense<0.000000e+00> : vector<8x16xf32>
    %415 = tpu.matmul %414, %402, %cst_169 {dimension_numbers = #tpu.dot_dimension_numbers<[1], [0], [0], [1], [0, 0, 1, 1], [], []>} : vector<8x8xf32>, vector<8x16xf32>, vector<8x16xf32> -> vector<8x16xf32>
    %416 = vector.extract_strided_slice %364 {offsets = [8, 16], sizes = [8, 16], strides = [1, 1]} : vector<16x96xf32> to vector<8x16xf32>
    %417 = vector.extract_strided_slice %364 {offsets = [8, 48], sizes = [8, 16], strides = [1, 1]} : vector<16x96xf32> to vector<8x16xf32>
    %418 = vector.extract_strided_slice %364 {offsets = [8, 80], sizes = [8, 16], strides = [1, 1]} : vector<16x96xf32> to vector<8x16xf32>
    %cst_170 = arith.constant dense<0.000000e+00> : vector<8x8xf32>
    %419 = tpu.matmul %416, %417, %cst_170 {dimension_numbers = #tpu.dot_dimension_numbers<[1], [1], [0], [0], [0, 0, 1, 0], [], []>} : vector<8x16xf32>, vector<8x16xf32>, vector<8x8xf32> -> vector<8x8xf32>
    %420 = vector.broadcast %399 : vector<1x8xf32> to vector<8x8xf32>
    %421 = arith.addf %419, %420 : vector<8x8xf32>
    %cst_171 = arith.constant dense<0xFF800000> : vector<8xf32>
    %422 = vector.multi_reduction <maximumf>, %421, %cst_171 [1] : vector<8x8xf32> to vector<8xf32>
    %423 = vector.shape_cast %422 : vector<8xf32> to vector<8x1xf32>
    %424 = vector.broadcast %423 : vector<8x1xf32> to vector<8x8xf32>
    %425 = arith.subf %421, %424 : vector<8x8xf32>
    %426 = math.exp %425 : vector<8x8xf32>
    %cst_172 = arith.constant dense<0.000000e+00> : vector<8xf32>
    %427 = vector.multi_reduction <add>, %426, %cst_172 [1] : vector<8x8xf32> to vector<8xf32>
    %428 = vector.shape_cast %427 : vector<8xf32> to vector<8x1xf32>
    %429 = vector.broadcast %428 : vector<8x1xf32> to vector<8x8xf32>
    %430 = arith.divf %426, %429 : vector<8x8xf32>
    %cst_173 = arith.constant dense<0.000000e+00> : vector<8x16xf32>
    %431 = tpu.matmul %430, %418, %cst_173 {dimension_numbers = #tpu.dot_dimension_numbers<[1], [0], [0], [1], [0, 0, 1, 1], [], []>} : vector<8x8xf32>, vector<8x16xf32>, vector<8x16xf32> -> vector<8x16xf32>
    %432 = tpu.concatenate %415, %431 in 1 : vector<8x16xf32>, vector<8x16xf32> -> vector<8x32xf32>
    %433 = tpu.concatenate %398, %432 in 0 : vector<8x32xf32>, vector<8x32xf32> -> vector<16x32xf32>
    %c2_174 = arith.constant 2 : index
    %c0_175 = arith.constant 0 : index
    %c0_176 = arith.constant 0 : index
    %434 = vector.load %arg8[%c2_174, %c0_175, %c0_176] : memref<4x32x32xf32, #tpu.memory_space<vmem>>, vector<1x32x32xf32>
    %435 = vector.shape_cast %434 : vector<1x32x32xf32> to vector<32x32xf32>
    %cst_177 = arith.constant dense<0.000000e+00> : vector<16x32xf32>
    %436 = tpu.matmul %433, %435, %cst_177 {dimension_numbers = #tpu.dot_dimension_numbers<[1], [0], [0], [1], [0, 0, 1, 1], [], []>} : vector<16x32xf32>, vector<32x32xf32>, vector<16x32xf32> -> vector<16x32xf32>
    %c2_178 = arith.constant 2 : index
    %c0_179 = arith.constant 0 : index
    %c0_180 = arith.constant 0 : index
    %437 = vector.load %arg9[%c2_178, %c0_179, %c0_180] : memref<4x1x32xf32, #tpu.memory_space<vmem>>, vector<1x1x32xf32>
    %438 = vector.shape_cast %437 : vector<1x1x32xf32> to vector<1x32xf32>
    %439 = vector.broadcast %438 : vector<1x32xf32> to vector<16x32xf32>
    %440 = arith.addf %436, %439 : vector<16x32xf32>
    %441 = arith.addf %440, %357 : vector<16x32xf32>
    %c2_181 = arith.constant 2 : index
    %c0_182 = arith.constant 0 : index
    %c0_183 = arith.constant 0 : index
    %442 = vector.load %arg10[%c2_181, %c0_182, %c0_183] : memref<4x1x32xf32, #tpu.memory_space<vmem>>, vector<1x1x32xf32>
    %443 = vector.shape_cast %442 : vector<1x1x32xf32> to vector<1x32xf32>
    %c2_184 = arith.constant 2 : index
    %c0_185 = arith.constant 0 : index
    %c0_186 = arith.constant 0 : index
    %444 = vector.load %arg11[%c2_184, %c0_185, %c0_186] : memref<4x1x32xf32, #tpu.memory_space<vmem>>, vector<1x1x32xf32>
    %445 = vector.shape_cast %444 : vector<1x1x32xf32> to vector<1x32xf32>
    %cst_187 = arith.constant dense<0.000000e+00> : vector<16xf32>
    %446 = vector.multi_reduction <add>, %441, %cst_187 [1] : vector<16x32xf32> to vector<16xf32>
    %447 = vector.shape_cast %446 : vector<16xf32> to vector<16x1xf32>
    %cst_188 = arith.constant 3.200000e+01 : f32
    %448 = vector.broadcast %cst_188 : f32 to vector<16x1xf32>
    %449 = arith.divf %447, %448 : vector<16x1xf32>
    %450 = vector.broadcast %449 : vector<16x1xf32> to vector<16x32xf32>
    %451 = arith.subf %441, %450 : vector<16x32xf32>
    %452 = arith.mulf %451, %451 : vector<16x32xf32>
    %cst_189 = arith.constant dense<0.000000e+00> : vector<16xf32>
    %453 = vector.multi_reduction <add>, %452, %cst_189 [1] : vector<16x32xf32> to vector<16xf32>
    %454 = vector.shape_cast %453 : vector<16xf32> to vector<16x1xf32>
    %cst_190 = arith.constant 3.200000e+01 : f32
    %455 = vector.broadcast %cst_190 : f32 to vector<16x1xf32>
    %456 = arith.divf %454, %455 : vector<16x1xf32>
    %457 = vector.broadcast %449 : vector<16x1xf32> to vector<16x32xf32>
    %458 = arith.subf %441, %457 : vector<16x32xf32>
    %cst_191 = arith.constant 9.99999996E-13 : f32
    %459 = vector.broadcast %cst_191 : f32 to vector<16x1xf32>
    %460 = arith.addf %456, %459 : vector<16x1xf32>
    %461 = math.rsqrt %460 : vector<16x1xf32>
    %462 = vector.broadcast %461 : vector<16x1xf32> to vector<16x32xf32>
    %463 = arith.mulf %458, %462 : vector<16x32xf32>
    %464 = vector.broadcast %443 : vector<1x32xf32> to vector<16x32xf32>
    %465 = arith.mulf %463, %464 : vector<16x32xf32>
    %466 = vector.broadcast %445 : vector<1x32xf32> to vector<16x32xf32>
    %467 = arith.addf %465, %466 : vector<16x32xf32>
    %c2_192 = arith.constant 2 : index
    %c0_193 = arith.constant 0 : index
    %c0_194 = arith.constant 0 : index
    %468 = vector.load %arg12[%c2_192, %c0_193, %c0_194] : memref<4x32x64xf32, #tpu.memory_space<vmem>>, vector<1x32x64xf32>
    %469 = vector.shape_cast %468 : vector<1x32x64xf32> to vector<32x64xf32>
    %cst_195 = arith.constant dense<0.000000e+00> : vector<16x64xf32>
    %470 = tpu.matmul %467, %469, %cst_195 {dimension_numbers = #tpu.dot_dimension_numbers<[1], [0], [0], [1], [0, 0, 1, 1], [], []>} : vector<16x32xf32>, vector<32x64xf32>, vector<16x64xf32> -> vector<16x64xf32>
    %c2_196 = arith.constant 2 : index
    %c0_197 = arith.constant 0 : index
    %c0_198 = arith.constant 0 : index
    %471 = vector.load %arg13[%c2_196, %c0_197, %c0_198] : memref<4x1x64xf32, #tpu.memory_space<vmem>>, vector<1x1x64xf32>
    %472 = vector.shape_cast %471 : vector<1x1x64xf32> to vector<1x64xf32>
    %473 = vector.broadcast %472 : vector<1x64xf32> to vector<16x64xf32>
    %474 = arith.addf %470, %473 : vector<16x64xf32>
    %cst_199 = arith.constant 5.000000e-01 : f32
    %475 = vector.broadcast %cst_199 : f32 to vector<16x64xf32>
    %476 = arith.mulf %475, %474 : vector<16x64xf32>
    %cst_200 = arith.constant 4.471500e-02 : f32
    %477 = vector.broadcast %cst_200 : f32 to vector<16x64xf32>
    %478 = arith.mulf %477, %474 : vector<16x64xf32>
    %479 = arith.mulf %478, %474 : vector<16x64xf32>
    %480 = arith.mulf %479, %474 : vector<16x64xf32>
    %481 = arith.addf %474, %480 : vector<16x64xf32>
    %cst_201 = arith.constant 0.797884583 : f32
    %482 = vector.broadcast %cst_201 : f32 to vector<16x64xf32>
    %483 = arith.mulf %482, %481 : vector<16x64xf32>
    %484 = math.tanh %483 : vector<16x64xf32>
    %cst_202 = arith.constant 1.000000e+00 : f32
    %485 = vector.broadcast %cst_202 : f32 to vector<16x64xf32>
    %486 = arith.addf %485, %484 : vector<16x64xf32>
    %487 = arith.mulf %476, %486 : vector<16x64xf32>
    %c2_203 = arith.constant 2 : index
    %c0_204 = arith.constant 0 : index
    %c0_205 = arith.constant 0 : index
    %488 = vector.load %arg14[%c2_203, %c0_204, %c0_205] : memref<4x64x32xf32, #tpu.memory_space<vmem>>, vector<1x64x32xf32>
    %489 = vector.shape_cast %488 : vector<1x64x32xf32> to vector<64x32xf32>
    %cst_206 = arith.constant dense<0.000000e+00> : vector<16x32xf32>
    %490 = tpu.matmul %487, %489, %cst_206 {dimension_numbers = #tpu.dot_dimension_numbers<[1], [0], [0], [1], [0, 0, 1, 1], [], []>} : vector<16x64xf32>, vector<64x32xf32>, vector<16x32xf32> -> vector<16x32xf32>
    %c2_207 = arith.constant 2 : index
    %c0_208 = arith.constant 0 : index
    %c0_209 = arith.constant 0 : index
    %491 = vector.load %arg15[%c2_207, %c0_208, %c0_209] : memref<4x1x32xf32, #tpu.memory_space<vmem>>, vector<1x1x32xf32>
    %492 = vector.shape_cast %491 : vector<1x1x32xf32> to vector<1x32xf32>
    %493 = vector.broadcast %492 : vector<1x32xf32> to vector<16x32xf32>
    %494 = arith.addf %490, %493 : vector<16x32xf32>
    %495 = arith.addf %494, %467 : vector<16x32xf32>
    %c2_210 = arith.constant 2 : index
    %c0_211 = arith.constant 0 : index
    %c0_212 = arith.constant 0 : index
    %496 = vector.load %arg16[%c2_210, %c0_211, %c0_212] : memref<4x1x32xf32, #tpu.memory_space<vmem>>, vector<1x1x32xf32>
    %497 = vector.shape_cast %496 : vector<1x1x32xf32> to vector<1x32xf32>
    %c2_213 = arith.constant 2 : index
    %c0_214 = arith.constant 0 : index
    %c0_215 = arith.constant 0 : index
    %498 = vector.load %arg17[%c2_213, %c0_214, %c0_215] : memref<4x1x32xf32, #tpu.memory_space<vmem>>, vector<1x1x32xf32>
    %499 = vector.shape_cast %498 : vector<1x1x32xf32> to vector<1x32xf32>
    %cst_216 = arith.constant dense<0.000000e+00> : vector<16xf32>
    %500 = vector.multi_reduction <add>, %495, %cst_216 [1] : vector<16x32xf32> to vector<16xf32>
    %501 = vector.shape_cast %500 : vector<16xf32> to vector<16x1xf32>
    %cst_217 = arith.constant 3.200000e+01 : f32
    %502 = vector.broadcast %cst_217 : f32 to vector<16x1xf32>
    %503 = arith.divf %501, %502 : vector<16x1xf32>
    %504 = vector.broadcast %503 : vector<16x1xf32> to vector<16x32xf32>
    %505 = arith.subf %495, %504 : vector<16x32xf32>
    %506 = arith.mulf %505, %505 : vector<16x32xf32>
    %cst_218 = arith.constant dense<0.000000e+00> : vector<16xf32>
    %507 = vector.multi_reduction <add>, %506, %cst_218 [1] : vector<16x32xf32> to vector<16xf32>
    %508 = vector.shape_cast %507 : vector<16xf32> to vector<16x1xf32>
    %cst_219 = arith.constant 3.200000e+01 : f32
    %509 = vector.broadcast %cst_219 : f32 to vector<16x1xf32>
    %510 = arith.divf %508, %509 : vector<16x1xf32>
    %511 = vector.broadcast %503 : vector<16x1xf32> to vector<16x32xf32>
    %512 = arith.subf %495, %511 : vector<16x32xf32>
    %cst_220 = arith.constant 9.99999996E-13 : f32
    %513 = vector.broadcast %cst_220 : f32 to vector<16x1xf32>
    %514 = arith.addf %510, %513 : vector<16x1xf32>
    %515 = math.rsqrt %514 : vector<16x1xf32>
    %516 = vector.broadcast %515 : vector<16x1xf32> to vector<16x32xf32>
    %517 = arith.mulf %512, %516 : vector<16x32xf32>
    %518 = vector.broadcast %497 : vector<1x32xf32> to vector<16x32xf32>
    %519 = arith.mulf %517, %518 : vector<16x32xf32>
    %520 = vector.broadcast %499 : vector<1x32xf32> to vector<16x32xf32>
    %521 = arith.addf %519, %520 : vector<16x32xf32>
    %c3 = arith.constant 3 : index
    %c0_221 = arith.constant 0 : index
    %c0_222 = arith.constant 0 : index
    %522 = vector.load %arg6[%c3, %c0_221, %c0_222] : memref<4x32x96xf32, #tpu.memory_space<vmem>>, vector<1x32x96xf32>
    %523 = vector.shape_cast %522 : vector<1x32x96xf32> to vector<32x96xf32>
    %cst_223 = arith.constant dense<0.000000e+00> : vector<16x96xf32>
    %524 = tpu.matmul %521, %523, %cst_223 {dimension_numbers = #tpu.dot_dimension_numbers<[1], [0], [0], [1], [0, 0, 1, 1], [], []>} : vector<16x32xf32>, vector<32x96xf32>, vector<16x96xf32> -> vector<16x96xf32>
    %c3_224 = arith.constant 3 : index
    %c0_225 = arith.constant 0 : index
    %c0_226 = arith.constant 0 : index
    %525 = vector.load %arg7[%c3_224, %c0_225, %c0_226] : memref<4x1x96xf32, #tpu.memory_space<vmem>>, vector<1x1x96xf32>
    %526 = vector.shape_cast %525 : vector<1x1x96xf32> to vector<1x96xf32>
    %527 = vector.broadcast %526 : vector<1x96xf32> to vector<16x96xf32>
    %528 = arith.addf %524, %527 : vector<16x96xf32>
    %529 = vector.extract_strided_slice %29 {offsets = [0, 0], sizes = [1, 8], strides = [1, 1]} : vector<2x8xf32> to vector<1x8xf32>
    %530 = vector.extract_strided_slice %528 {offsets = [0, 0], sizes = [8, 16], strides = [1, 1]} : vector<16x96xf32> to vector<8x16xf32>
    %531 = vector.extract_strided_slice %528 {offsets = [0, 32], sizes = [8, 16], strides = [1, 1]} : vector<16x96xf32> to vector<8x16xf32>
    %532 = vector.extract_strided_slice %528 {offsets = [0, 64], sizes = [8, 16], strides = [1, 1]} : vector<16x96xf32> to vector<8x16xf32>
    %cst_227 = arith.constant dense<0.000000e+00> : vector<8x8xf32>
    %533 = tpu.matmul %530, %531, %cst_227 {dimension_numbers = #tpu.dot_dimension_numbers<[1], [1], [0], [0], [0, 0, 1, 0], [], []>} : vector<8x16xf32>, vector<8x16xf32>, vector<8x8xf32> -> vector<8x8xf32>
    %534 = vector.broadcast %529 : vector<1x8xf32> to vector<8x8xf32>
    %535 = arith.addf %533, %534 : vector<8x8xf32>
    %cst_228 = arith.constant dense<0xFF800000> : vector<8xf32>
    %536 = vector.multi_reduction <maximumf>, %535, %cst_228 [1] : vector<8x8xf32> to vector<8xf32>
    %537 = vector.shape_cast %536 : vector<8xf32> to vector<8x1xf32>
    %538 = vector.broadcast %537 : vector<8x1xf32> to vector<8x8xf32>
    %539 = arith.subf %535, %538 : vector<8x8xf32>
    %540 = math.exp %539 : vector<8x8xf32>
    %cst_229 = arith.constant dense<0.000000e+00> : vector<8xf32>
    %541 = vector.multi_reduction <add>, %540, %cst_229 [1] : vector<8x8xf32> to vector<8xf32>
    %542 = vector.shape_cast %541 : vector<8xf32> to vector<8x1xf32>
    %543 = vector.broadcast %542 : vector<8x1xf32> to vector<8x8xf32>
    %544 = arith.divf %540, %543 : vector<8x8xf32>
    %cst_230 = arith.constant dense<0.000000e+00> : vector<8x16xf32>
    %545 = tpu.matmul %544, %532, %cst_230 {dimension_numbers = #tpu.dot_dimension_numbers<[1], [0], [0], [1], [0, 0, 1, 1], [], []>} : vector<8x8xf32>, vector<8x16xf32>, vector<8x16xf32> -> vector<8x16xf32>
    %546 = vector.extract_strided_slice %528 {offsets = [0, 16], sizes = [8, 16], strides = [1, 1]} : vector<16x96xf32> to vector<8x16xf32>
    %547 = vector.extract_strided_slice %528 {offsets = [0, 48], sizes = [8, 16], strides = [1, 1]} : vector<16x96xf32> to vector<8x16xf32>
    %548 = vector.extract_strided_slice %528 {offsets = [0, 80], sizes = [8, 16], strides = [1, 1]} : vector<16x96xf32> to vector<8x16xf32>
    %cst_231 = arith.constant dense<0.000000e+00> : vector<8x8xf32>
    %549 = tpu.matmul %546, %547, %cst_231 {dimension_numbers = #tpu.dot_dimension_numbers<[1], [1], [0], [0], [0, 0, 1, 0], [], []>} : vector<8x16xf32>, vector<8x16xf32>, vector<8x8xf32> -> vector<8x8xf32>
    %550 = vector.broadcast %529 : vector<1x8xf32> to vector<8x8xf32>
    %551 = arith.addf %549, %550 : vector<8x8xf32>
    %cst_232 = arith.constant dense<0xFF800000> : vector<8xf32>
    %552 = vector.multi_reduction <maximumf>, %551, %cst_232 [1] : vector<8x8xf32> to vector<8xf32>
    %553 = vector.shape_cast %552 : vector<8xf32> to vector<8x1xf32>
    %554 = vector.broadcast %553 : vector<8x1xf32> to vector<8x8xf32>
    %555 = arith.subf %551, %554 : vector<8x8xf32>
    %556 = math.exp %555 : vector<8x8xf32>
    %cst_233 = arith.constant dense<0.000000e+00> : vector<8xf32>
    %557 = vector.multi_reduction <add>, %556, %cst_233 [1] : vector<8x8xf32> to vector<8xf32>
    %558 = vector.shape_cast %557 : vector<8xf32> to vector<8x1xf32>
    %559 = vector.broadcast %558 : vector<8x1xf32> to vector<8x8xf32>
    %560 = arith.divf %556, %559 : vector<8x8xf32>
    %cst_234 = arith.constant dense<0.000000e+00> : vector<8x16xf32>
    %561 = tpu.matmul %560, %548, %cst_234 {dimension_numbers = #tpu.dot_dimension_numbers<[1], [0], [0], [1], [0, 0, 1, 1], [], []>} : vector<8x8xf32>, vector<8x16xf32>, vector<8x16xf32> -> vector<8x16xf32>
    %562 = tpu.concatenate %545, %561 in 1 : vector<8x16xf32>, vector<8x16xf32> -> vector<8x32xf32>
    %563 = vector.extract_strided_slice %29 {offsets = [1, 0], sizes = [1, 8], strides = [1, 1]} : vector<2x8xf32> to vector<1x8xf32>
    %564 = vector.extract_strided_slice %528 {offsets = [8, 0], sizes = [8, 16], strides = [1, 1]} : vector<16x96xf32> to vector<8x16xf32>
    %565 = vector.extract_strided_slice %528 {offsets = [8, 32], sizes = [8, 16], strides = [1, 1]} : vector<16x96xf32> to vector<8x16xf32>
    %566 = vector.extract_strided_slice %528 {offsets = [8, 64], sizes = [8, 16], strides = [1, 1]} : vector<16x96xf32> to vector<8x16xf32>
    %cst_235 = arith.constant dense<0.000000e+00> : vector<8x8xf32>
    %567 = tpu.matmul %564, %565, %cst_235 {dimension_numbers = #tpu.dot_dimension_numbers<[1], [1], [0], [0], [0, 0, 1, 0], [], []>} : vector<8x16xf32>, vector<8x16xf32>, vector<8x8xf32> -> vector<8x8xf32>
    %568 = vector.broadcast %563 : vector<1x8xf32> to vector<8x8xf32>
    %569 = arith.addf %567, %568 : vector<8x8xf32>
    %cst_236 = arith.constant dense<0xFF800000> : vector<8xf32>
    %570 = vector.multi_reduction <maximumf>, %569, %cst_236 [1] : vector<8x8xf32> to vector<8xf32>
    %571 = vector.shape_cast %570 : vector<8xf32> to vector<8x1xf32>
    %572 = vector.broadcast %571 : vector<8x1xf32> to vector<8x8xf32>
    %573 = arith.subf %569, %572 : vector<8x8xf32>
    %574 = math.exp %573 : vector<8x8xf32>
    %cst_237 = arith.constant dense<0.000000e+00> : vector<8xf32>
    %575 = vector.multi_reduction <add>, %574, %cst_237 [1] : vector<8x8xf32> to vector<8xf32>
    %576 = vector.shape_cast %575 : vector<8xf32> to vector<8x1xf32>
    %577 = vector.broadcast %576 : vector<8x1xf32> to vector<8x8xf32>
    %578 = arith.divf %574, %577 : vector<8x8xf32>
    %cst_238 = arith.constant dense<0.000000e+00> : vector<8x16xf32>
    %579 = tpu.matmul %578, %566, %cst_238 {dimension_numbers = #tpu.dot_dimension_numbers<[1], [0], [0], [1], [0, 0, 1, 1], [], []>} : vector<8x8xf32>, vector<8x16xf32>, vector<8x16xf32> -> vector<8x16xf32>
    %580 = vector.extract_strided_slice %528 {offsets = [8, 16], sizes = [8, 16], strides = [1, 1]} : vector<16x96xf32> to vector<8x16xf32>
    %581 = vector.extract_strided_slice %528 {offsets = [8, 48], sizes = [8, 16], strides = [1, 1]} : vector<16x96xf32> to vector<8x16xf32>
    %582 = vector.extract_strided_slice %528 {offsets = [8, 80], sizes = [8, 16], strides = [1, 1]} : vector<16x96xf32> to vector<8x16xf32>
    %cst_239 = arith.constant dense<0.000000e+00> : vector<8x8xf32>
    %583 = tpu.matmul %580, %581, %cst_239 {dimension_numbers = #tpu.dot_dimension_numbers<[1], [1], [0], [0], [0, 0, 1, 0], [], []>} : vector<8x16xf32>, vector<8x16xf32>, vector<8x8xf32> -> vector<8x8xf32>
    %584 = vector.broadcast %563 : vector<1x8xf32> to vector<8x8xf32>
    %585 = arith.addf %583, %584 : vector<8x8xf32>
    %cst_240 = arith.constant dense<0xFF800000> : vector<8xf32>
    %586 = vector.multi_reduction <maximumf>, %585, %cst_240 [1] : vector<8x8xf32> to vector<8xf32>
    %587 = vector.shape_cast %586 : vector<8xf32> to vector<8x1xf32>
    %588 = vector.broadcast %587 : vector<8x1xf32> to vector<8x8xf32>
    %589 = arith.subf %585, %588 : vector<8x8xf32>
    %590 = math.exp %589 : vector<8x8xf32>
    %cst_241 = arith.constant dense<0.000000e+00> : vector<8xf32>
    %591 = vector.multi_reduction <add>, %590, %cst_241 [1] : vector<8x8xf32> to vector<8xf32>
    %592 = vector.shape_cast %591 : vector<8xf32> to vector<8x1xf32>
    %593 = vector.broadcast %592 : vector<8x1xf32> to vector<8x8xf32>
    %594 = arith.divf %590, %593 : vector<8x8xf32>
    %cst_242 = arith.constant dense<0.000000e+00> : vector<8x16xf32>
    %595 = tpu.matmul %594, %582, %cst_242 {dimension_numbers = #tpu.dot_dimension_numbers<[1], [0], [0], [1], [0, 0, 1, 1], [], []>} : vector<8x8xf32>, vector<8x16xf32>, vector<8x16xf32> -> vector<8x16xf32>
    %596 = tpu.concatenate %579, %595 in 1 : vector<8x16xf32>, vector<8x16xf32> -> vector<8x32xf32>
    %597 = tpu.concatenate %562, %596 in 0 : vector<8x32xf32>, vector<8x32xf32> -> vector<16x32xf32>
    %c3_243 = arith.constant 3 : index
    %c0_244 = arith.constant 0 : index
    %c0_245 = arith.constant 0 : index
    %598 = vector.load %arg8[%c3_243, %c0_244, %c0_245] : memref<4x32x32xf32, #tpu.memory_space<vmem>>, vector<1x32x32xf32>
    %599 = vector.shape_cast %598 : vector<1x32x32xf32> to vector<32x32xf32>
    %cst_246 = arith.constant dense<0.000000e+00> : vector<16x32xf32>
    %600 = tpu.matmul %597, %599, %cst_246 {dimension_numbers = #tpu.dot_dimension_numbers<[1], [0], [0], [1], [0, 0, 1, 1], [], []>} : vector<16x32xf32>, vector<32x32xf32>, vector<16x32xf32> -> vector<16x32xf32>
    %c3_247 = arith.constant 3 : index
    %c0_248 = arith.constant 0 : index
    %c0_249 = arith.constant 0 : index
    %601 = vector.load %arg9[%c3_247, %c0_248, %c0_249] : memref<4x1x32xf32, #tpu.memory_space<vmem>>, vector<1x1x32xf32>
    %602 = vector.shape_cast %601 : vector<1x1x32xf32> to vector<1x32xf32>
    %603 = vector.broadcast %602 : vector<1x32xf32> to vector<16x32xf32>
    %604 = arith.addf %600, %603 : vector<16x32xf32>
    %605 = arith.addf %604, %521 : vector<16x32xf32>
    %c3_250 = arith.constant 3 : index
    %c0_251 = arith.constant 0 : index
    %c0_252 = arith.constant 0 : index
    %606 = vector.load %arg10[%c3_250, %c0_251, %c0_252] : memref<4x1x32xf32, #tpu.memory_space<vmem>>, vector<1x1x32xf32>
    %607 = vector.shape_cast %606 : vector<1x1x32xf32> to vector<1x32xf32>
    %c3_253 = arith.constant 3 : index
    %c0_254 = arith.constant 0 : index
    %c0_255 = arith.constant 0 : index
    %608 = vector.load %arg11[%c3_253, %c0_254, %c0_255] : memref<4x1x32xf32, #tpu.memory_space<vmem>>, vector<1x1x32xf32>
    %609 = vector.shape_cast %608 : vector<1x1x32xf32> to vector<1x32xf32>
    %cst_256 = arith.constant dense<0.000000e+00> : vector<16xf32>
    %610 = vector.multi_reduction <add>, %605, %cst_256 [1] : vector<16x32xf32> to vector<16xf32>
    %611 = vector.shape_cast %610 : vector<16xf32> to vector<16x1xf32>
    %cst_257 = arith.constant 3.200000e+01 : f32
    %612 = vector.broadcast %cst_257 : f32 to vector<16x1xf32>
    %613 = arith.divf %611, %612 : vector<16x1xf32>
    %614 = vector.broadcast %613 : vector<16x1xf32> to vector<16x32xf32>
    %615 = arith.subf %605, %614 : vector<16x32xf32>
    %616 = arith.mulf %615, %615 : vector<16x32xf32>
    %cst_258 = arith.constant dense<0.000000e+00> : vector<16xf32>
    %617 = vector.multi_reduction <add>, %616, %cst_258 [1] : vector<16x32xf32> to vector<16xf32>
    %618 = vector.shape_cast %617 : vector<16xf32> to vector<16x1xf32>
    %cst_259 = arith.constant 3.200000e+01 : f32
    %619 = vector.broadcast %cst_259 : f32 to vector<16x1xf32>
    %620 = arith.divf %618, %619 : vector<16x1xf32>
    %621 = vector.broadcast %613 : vector<16x1xf32> to vector<16x32xf32>
    %622 = arith.subf %605, %621 : vector<16x32xf32>
    %cst_260 = arith.constant 9.99999996E-13 : f32
    %623 = vector.broadcast %cst_260 : f32 to vector<16x1xf32>
    %624 = arith.addf %620, %623 : vector<16x1xf32>
    %625 = math.rsqrt %624 : vector<16x1xf32>
    %626 = vector.broadcast %625 : vector<16x1xf32> to vector<16x32xf32>
    %627 = arith.mulf %622, %626 : vector<16x32xf32>
    %628 = vector.broadcast %607 : vector<1x32xf32> to vector<16x32xf32>
    %629 = arith.mulf %627, %628 : vector<16x32xf32>
    %630 = vector.broadcast %609 : vector<1x32xf32> to vector<16x32xf32>
    %631 = arith.addf %629, %630 : vector<16x32xf32>
    %c3_261 = arith.constant 3 : index
    %c0_262 = arith.constant 0 : index
    %c0_263 = arith.constant 0 : index
    %632 = vector.load %arg12[%c3_261, %c0_262, %c0_263] : memref<4x32x64xf32, #tpu.memory_space<vmem>>, vector<1x32x64xf32>
    %633 = vector.shape_cast %632 : vector<1x32x64xf32> to vector<32x64xf32>
    %cst_264 = arith.constant dense<0.000000e+00> : vector<16x64xf32>
    %634 = tpu.matmul %631, %633, %cst_264 {dimension_numbers = #tpu.dot_dimension_numbers<[1], [0], [0], [1], [0, 0, 1, 1], [], []>} : vector<16x32xf32>, vector<32x64xf32>, vector<16x64xf32> -> vector<16x64xf32>
    %c3_265 = arith.constant 3 : index
    %c0_266 = arith.constant 0 : index
    %c0_267 = arith.constant 0 : index
    %635 = vector.load %arg13[%c3_265, %c0_266, %c0_267] : memref<4x1x64xf32, #tpu.memory_space<vmem>>, vector<1x1x64xf32>
    %636 = vector.shape_cast %635 : vector<1x1x64xf32> to vector<1x64xf32>
    %637 = vector.broadcast %636 : vector<1x64xf32> to vector<16x64xf32>
    %638 = arith.addf %634, %637 : vector<16x64xf32>
    %cst_268 = arith.constant 5.000000e-01 : f32
    %639 = vector.broadcast %cst_268 : f32 to vector<16x64xf32>
    %640 = arith.mulf %639, %638 : vector<16x64xf32>
    %cst_269 = arith.constant 4.471500e-02 : f32
    %641 = vector.broadcast %cst_269 : f32 to vector<16x64xf32>
    %642 = arith.mulf %641, %638 : vector<16x64xf32>
    %643 = arith.mulf %642, %638 : vector<16x64xf32>
    %644 = arith.mulf %643, %638 : vector<16x64xf32>
    %645 = arith.addf %638, %644 : vector<16x64xf32>
    %cst_270 = arith.constant 0.797884583 : f32
    %646 = vector.broadcast %cst_270 : f32 to vector<16x64xf32>
    %647 = arith.mulf %646, %645 : vector<16x64xf32>
    %648 = math.tanh %647 : vector<16x64xf32>
    %cst_271 = arith.constant 1.000000e+00 : f32
    %649 = vector.broadcast %cst_271 : f32 to vector<16x64xf32>
    %650 = arith.addf %649, %648 : vector<16x64xf32>
    %651 = arith.mulf %640, %650 : vector<16x64xf32>
    %c3_272 = arith.constant 3 : index
    %c0_273 = arith.constant 0 : index
    %c0_274 = arith.constant 0 : index
    %652 = vector.load %arg14[%c3_272, %c0_273, %c0_274] : memref<4x64x32xf32, #tpu.memory_space<vmem>>, vector<1x64x32xf32>
    %653 = vector.shape_cast %652 : vector<1x64x32xf32> to vector<64x32xf32>
    %cst_275 = arith.constant dense<0.000000e+00> : vector<16x32xf32>
    %654 = tpu.matmul %651, %653, %cst_275 {dimension_numbers = #tpu.dot_dimension_numbers<[1], [0], [0], [1], [0, 0, 1, 1], [], []>} : vector<16x64xf32>, vector<64x32xf32>, vector<16x32xf32> -> vector<16x32xf32>
    %c3_276 = arith.constant 3 : index
    %c0_277 = arith.constant 0 : index
    %c0_278 = arith.constant 0 : index
    %655 = vector.load %arg15[%c3_276, %c0_277, %c0_278] : memref<4x1x32xf32, #tpu.memory_space<vmem>>, vector<1x1x32xf32>
    %656 = vector.shape_cast %655 : vector<1x1x32xf32> to vector<1x32xf32>
    %657 = vector.broadcast %656 : vector<1x32xf32> to vector<16x32xf32>
    %658 = arith.addf %654, %657 : vector<16x32xf32>
    %659 = arith.addf %658, %631 : vector<16x32xf32>
    %c3_279 = arith.constant 3 : index
    %c0_280 = arith.constant 0 : index
    %c0_281 = arith.constant 0 : index
    %660 = vector.load %arg16[%c3_279, %c0_280, %c0_281] : memref<4x1x32xf32, #tpu.memory_space<vmem>>, vector<1x1x32xf32>
    %661 = vector.shape_cast %660 : vector<1x1x32xf32> to vector<1x32xf32>
    %c3_282 = arith.constant 3 : index
    %c0_283 = arith.constant 0 : index
    %c0_284 = arith.constant 0 : index
    %662 = vector.load %arg17[%c3_282, %c0_283, %c0_284] : memref<4x1x32xf32, #tpu.memory_space<vmem>>, vector<1x1x32xf32>
    %663 = vector.shape_cast %662 : vector<1x1x32xf32> to vector<1x32xf32>
    %cst_285 = arith.constant dense<0.000000e+00> : vector<16xf32>
    %664 = vector.multi_reduction <add>, %659, %cst_285 [1] : vector<16x32xf32> to vector<16xf32>
    %665 = vector.shape_cast %664 : vector<16xf32> to vector<16x1xf32>
    %cst_286 = arith.constant 3.200000e+01 : f32
    %666 = vector.broadcast %cst_286 : f32 to vector<16x1xf32>
    %667 = arith.divf %665, %666 : vector<16x1xf32>
    %668 = vector.broadcast %667 : vector<16x1xf32> to vector<16x32xf32>
    %669 = arith.subf %659, %668 : vector<16x32xf32>
    %670 = arith.mulf %669, %669 : vector<16x32xf32>
    %cst_287 = arith.constant dense<0.000000e+00> : vector<16xf32>
    %671 = vector.multi_reduction <add>, %670, %cst_287 [1] : vector<16x32xf32> to vector<16xf32>
    %672 = vector.shape_cast %671 : vector<16xf32> to vector<16x1xf32>
    %cst_288 = arith.constant 3.200000e+01 : f32
    %673 = vector.broadcast %cst_288 : f32 to vector<16x1xf32>
    %674 = arith.divf %672, %673 : vector<16x1xf32>
    %675 = vector.broadcast %667 : vector<16x1xf32> to vector<16x32xf32>
    %676 = arith.subf %659, %675 : vector<16x32xf32>
    %cst_289 = arith.constant 9.99999996E-13 : f32
    %677 = vector.broadcast %cst_289 : f32 to vector<16x1xf32>
    %678 = arith.addf %674, %677 : vector<16x1xf32>
    %679 = math.rsqrt %678 : vector<16x1xf32>
    %680 = vector.broadcast %679 : vector<16x1xf32> to vector<16x32xf32>
    %681 = arith.mulf %676, %680 : vector<16x32xf32>
    %682 = vector.broadcast %661 : vector<1x32xf32> to vector<16x32xf32>
    %683 = arith.mulf %681, %682 : vector<16x32xf32>
    %684 = vector.broadcast %663 : vector<1x32xf32> to vector<16x32xf32>
    %685 = arith.addf %683, %684 : vector<16x32xf32>
    %686 = arith.addf %193, %357 : vector<16x32xf32>
    %687 = arith.addf %686, %521 : vector<16x32xf32>
    %688 = arith.addf %687, %685 : vector<16x32xf32>
    %c0_290 = arith.constant 0 : index
    %c0_291 = arith.constant 0 : index
    %689 = vector.load %arg18[%c0_290, %c0_291] : memref<32x128xf32, #tpu.memory_space<vmem>>, vector<32x128xf32>
    %cst_292 = arith.constant dense<0.000000e+00> : vector<16x128xf32>
    %690 = tpu.matmul %688, %689, %cst_292 {dimension_numbers = #tpu.dot_dimension_numbers<[1], [0], [0], [1], [0, 0, 1, 1], [], []>} : vector<16x32xf32>, vector<32x128xf32>, vector<16x128xf32> -> vector<16x128xf32>
    %c0_293 = arith.constant 0 : index
    %c0_294 = arith.constant 0 : index
    %691 = vector.load %arg2[%c0_293, %c0_294] : memref<16x1xf32, #tpu.memory_space<vmem>>, vector<16x1xf32>
    %c0_295 = arith.constant 0 : index
    %c0_296 = arith.constant 0 : index
    %692 = vector.load %arg19[%c0_295, %c0_296] : memref<1x128xf32, #tpu.memory_space<vmem>>, vector<1x128xf32>
    %693 = vector.broadcast %691 : vector<16x1xf32> to vector<16x128xf32>
    %694 = vector.broadcast %692 : vector<1x128xf32> to vector<16x128xf32>
    %695 = arith.mulf %693, %694 : vector<16x128xf32>
    %696 = arith.addf %690, %695 : vector<16x128xf32>
    %c0_297 = arith.constant 0 : index
    %c0_298 = arith.constant 0 : index
    %697 = vector.load %arg20[%c0_297, %c0_298] : memref<1x128xf32, #tpu.memory_space<vmem>>, vector<1x128xf32>
    %698 = vector.broadcast %697 : vector<1x128xf32> to vector<16x128xf32>
    %699 = arith.addf %696, %698 : vector<16x128xf32>
    %cst_299 = arith.constant 0.000000e+00 : f32
    %700 = vector.broadcast %cst_299 : f32 to vector<4x16xf32>
    %cst_300 = arith.constant 0.000000e+00 : f32
    %701 = vector.broadcast %cst_300 : f32 to vector<4x16xf32>
    %702 = tpu.iota {dimensions = array<i32: 0>} : vector<4x64xi32>
    %703 = vector.extract_strided_slice %699 {offsets = [0, 0], sizes = [1, 64], strides = [1, 1]} : vector<16x128xf32> to vector<1x64xf32>
    %704 = vector.extract_strided_slice %699 {offsets = [8, 0], sizes = [1, 64], strides = [1, 1]} : vector<16x128xf32> to vector<1x64xf32>
    %705 = tpu.concatenate %703, %704 in 0 : vector<1x64xf32>, vector<1x64xf32> -> vector<2x64xf32>
    %706 = vector.extract_strided_slice %699 {offsets = [7, 64], sizes = [1, 64], strides = [1, 1]} : vector<16x128xf32> to vector<1x64xf32>
    %707 = vector.extract_strided_slice %699 {offsets = [15, 64], sizes = [1, 64], strides = [1, 1]} : vector<16x128xf32> to vector<1x64xf32>
    %708 = tpu.concatenate %706, %707 in 0 : vector<1x64xf32>, vector<1x64xf32> -> vector<2x64xf32>
    %709 = tpu.concatenate %705, %708 in 0 : vector<2x64xf32>, vector<2x64xf32> -> vector<4x64xf32>
    %c0_301 = arith.constant 0 : index
    %c0_302 = arith.constant 0 : index
    %710 = vector.load %arg21[%c0_301, %c0_302] : memref<16x128xf32, #tpu.memory_space<vmem>>, vector<16x128xf32>
    %cst_303 = arith.constant dense<0.000000e+00> : vector<4x128xf32>
    %711 = tpu.matmul %700, %710, %cst_303 {dimension_numbers = #tpu.dot_dimension_numbers<[1], [0], [0], [1], [0, 0, 1, 1], [], []>} : vector<4x16xf32>, vector<16x128xf32>, vector<4x128xf32> -> vector<4x128xf32>
    %c2_i32 = arith.constant 2 : i32
    %712 = vector.broadcast %c2_i32 : i32 to vector<4x64xi32>
    %713 = arith.cmpi slt, %702, %712 : vector<4x64xi32>
    %714 = vector.extract_strided_slice %711 {offsets = [0, 0], sizes = [4, 64], strides = [1, 1]} : vector<4x128xf32> to vector<4x64xf32>
    %715 = vector.extract_strided_slice %711 {offsets = [0, 64], sizes = [4, 64], strides = [1, 1]} : vector<4x128xf32> to vector<4x64xf32>
    %716 = arith.select %713, %714, %715 : vector<4x64xi1>, vector<4x64xf32>
    %717 = arith.addf %709, %716 : vector<4x64xf32>
    %718 = vector.extract_strided_slice %717 {offsets = [0, 0], sizes = [4, 16], strides = [1, 1]} : vector<4x64xf32> to vector<4x16xf32>
    %719 = arith.negf %718 : vector<4x16xf32>
    %720 = math.exp %719 : vector<4x16xf32>
    %cst_304 = arith.constant 1.000000e+00 : f32
    %721 = vector.broadcast %cst_304 : f32 to vector<4x16xf32>
    %722 = arith.addf %721, %720 : vector<4x16xf32>
    %723 = arith.divf %721, %722 : vector<4x16xf32>
    %724 = vector.extract_strided_slice %717 {offsets = [0, 16], sizes = [4, 16], strides = [1, 1]} : vector<4x64xf32> to vector<4x16xf32>
    %725 = arith.negf %724 : vector<4x16xf32>
    %726 = math.exp %725 : vector<4x16xf32>
    %cst_305 = arith.constant 1.000000e+00 : f32
    %727 = vector.broadcast %cst_305 : f32 to vector<4x16xf32>
    %728 = arith.addf %727, %726 : vector<4x16xf32>
    %729 = arith.divf %727, %728 : vector<4x16xf32>
    %730 = vector.extract_strided_slice %717 {offsets = [0, 32], sizes = [4, 16], strides = [1, 1]} : vector<4x64xf32> to vector<4x16xf32>
    %731 = math.tanh %730 : vector<4x16xf32>
    %732 = vector.extract_strided_slice %717 {offsets = [0, 48], sizes = [4, 16], strides = [1, 1]} : vector<4x64xf32> to vector<4x16xf32>
    %733 = arith.negf %732 : vector<4x16xf32>
    %734 = math.exp %733 : vector<4x16xf32>
    %cst_306 = arith.constant 1.000000e+00 : f32
    %735 = vector.broadcast %cst_306 : f32 to vector<4x16xf32>
    %736 = arith.addf %735, %734 : vector<4x16xf32>
    %737 = arith.divf %735, %736 : vector<4x16xf32>
    %738 = arith.mulf %729, %701 : vector<4x16xf32>
    %739 = arith.mulf %723, %731 : vector<4x16xf32>
    %740 = arith.addf %738, %739 : vector<4x16xf32>
    %741 = math.tanh %740 : vector<4x16xf32>
    %742 = arith.mulf %737, %741 : vector<4x16xf32>
    %743 = vector.extract_strided_slice %742 {offsets = [0, 0], sizes = [2, 16], strides = [1, 1]} : vector<4x16xf32> to vector<2x16xf32>
    %744 = vector.extract_strided_slice %742 {offsets = [2, 0], sizes = [2, 16], strides = [1, 1]} : vector<4x16xf32> to vector<2x16xf32>
    %745 = vector.extract_strided_slice %699 {offsets = [1, 0], sizes = [1, 64], strides = [1, 1]} : vector<16x128xf32> to vector<1x64xf32>
    %746 = vector.extract_strided_slice %699 {offsets = [9, 0], sizes = [1, 64], strides = [1, 1]} : vector<16x128xf32> to vector<1x64xf32>
    %747 = tpu.concatenate %745, %746 in 0 : vector<1x64xf32>, vector<1x64xf32> -> vector<2x64xf32>
    %748 = vector.extract_strided_slice %699 {offsets = [6, 64], sizes = [1, 64], strides = [1, 1]} : vector<16x128xf32> to vector<1x64xf32>
    %749 = vector.extract_strided_slice %699 {offsets = [14, 64], sizes = [1, 64], strides = [1, 1]} : vector<16x128xf32> to vector<1x64xf32>
    %750 = tpu.concatenate %748, %749 in 0 : vector<1x64xf32>, vector<1x64xf32> -> vector<2x64xf32>
    %751 = tpu.concatenate %747, %750 in 0 : vector<2x64xf32>, vector<2x64xf32> -> vector<4x64xf32>
    %c0_307 = arith.constant 0 : index
    %c0_308 = arith.constant 0 : index
    %752 = vector.load %arg21[%c0_307, %c0_308] : memref<16x128xf32, #tpu.memory_space<vmem>>, vector<16x128xf32>
    %cst_309 = arith.constant dense<0.000000e+00> : vector<4x128xf32>
    %753 = tpu.matmul %742, %752, %cst_309 {dimension_numbers = #tpu.dot_dimension_numbers<[1], [0], [0], [1], [0, 0, 1, 1], [], []>} : vector<4x16xf32>, vector<16x128xf32>, vector<4x128xf32> -> vector<4x128xf32>
    %c2_i32_310 = arith.constant 2 : i32
    %754 = vector.broadcast %c2_i32_310 : i32 to vector<4x64xi32>
    %755 = arith.cmpi slt, %702, %754 : vector<4x64xi32>
    %756 = vector.extract_strided_slice %753 {offsets = [0, 0], sizes = [4, 64], strides = [1, 1]} : vector<4x128xf32> to vector<4x64xf32>
    %757 = vector.extract_strided_slice %753 {offsets = [0, 64], sizes = [4, 64], strides = [1, 1]} : vector<4x128xf32> to vector<4x64xf32>
    %758 = arith.select %755, %756, %757 : vector<4x64xi1>, vector<4x64xf32>
    %759 = arith.addf %751, %758 : vector<4x64xf32>
    %760 = vector.extract_strided_slice %759 {offsets = [0, 0], sizes = [4, 16], strides = [1, 1]} : vector<4x64xf32> to vector<4x16xf32>
    %761 = arith.negf %760 : vector<4x16xf32>
    %762 = math.exp %761 : vector<4x16xf32>
    %cst_311 = arith.constant 1.000000e+00 : f32
    %763 = vector.broadcast %cst_311 : f32 to vector<4x16xf32>
    %764 = arith.addf %763, %762 : vector<4x16xf32>
    %765 = arith.divf %763, %764 : vector<4x16xf32>
    %766 = vector.extract_strided_slice %759 {offsets = [0, 16], sizes = [4, 16], strides = [1, 1]} : vector<4x64xf32> to vector<4x16xf32>
    %767 = arith.negf %766 : vector<4x16xf32>
    %768 = math.exp %767 : vector<4x16xf32>
    %cst_312 = arith.constant 1.000000e+00 : f32
    %769 = vector.broadcast %cst_312 : f32 to vector<4x16xf32>
    %770 = arith.addf %769, %768 : vector<4x16xf32>
    %771 = arith.divf %769, %770 : vector<4x16xf32>
    %772 = vector.extract_strided_slice %759 {offsets = [0, 32], sizes = [4, 16], strides = [1, 1]} : vector<4x64xf32> to vector<4x16xf32>
    %773 = math.tanh %772 : vector<4x16xf32>
    %774 = vector.extract_strided_slice %759 {offsets = [0, 48], sizes = [4, 16], strides = [1, 1]} : vector<4x64xf32> to vector<4x16xf32>
    %775 = arith.negf %774 : vector<4x16xf32>
    %776 = math.exp %775 : vector<4x16xf32>
    %cst_313 = arith.constant 1.000000e+00 : f32
    %777 = vector.broadcast %cst_313 : f32 to vector<4x16xf32>
    %778 = arith.addf %777, %776 : vector<4x16xf32>
    %779 = arith.divf %777, %778 : vector<4x16xf32>
    %780 = arith.mulf %771, %740 : vector<4x16xf32>
    %781 = arith.mulf %765, %773 : vector<4x16xf32>
    %782 = arith.addf %780, %781 : vector<4x16xf32>
    %783 = math.tanh %782 : vector<4x16xf32>
    %784 = arith.mulf %779, %783 : vector<4x16xf32>
    %785 = vector.extract_strided_slice %784 {offsets = [0, 0], sizes = [2, 16], strides = [1, 1]} : vector<4x16xf32> to vector<2x16xf32>
    %786 = vector.extract_strided_slice %784 {offsets = [2, 0], sizes = [2, 16], strides = [1, 1]} : vector<4x16xf32> to vector<2x16xf32>
    %787 = vector.extract_strided_slice %699 {offsets = [2, 0], sizes = [1, 64], strides = [1, 1]} : vector<16x128xf32> to vector<1x64xf32>
    %788 = vector.extract_strided_slice %699 {offsets = [10, 0], sizes = [1, 64], strides = [1, 1]} : vector<16x128xf32> to vector<1x64xf32>
    %789 = tpu.concatenate %787, %788 in 0 : vector<1x64xf32>, vector<1x64xf32> -> vector<2x64xf32>
    %790 = vector.extract_strided_slice %699 {offsets = [5, 64], sizes = [1, 64], strides = [1, 1]} : vector<16x128xf32> to vector<1x64xf32>
    %791 = vector.extract_strided_slice %699 {offsets = [13, 64], sizes = [1, 64], strides = [1, 1]} : vector<16x128xf32> to vector<1x64xf32>
    %792 = tpu.concatenate %790, %791 in 0 : vector<1x64xf32>, vector<1x64xf32> -> vector<2x64xf32>
    %793 = tpu.concatenate %789, %792 in 0 : vector<2x64xf32>, vector<2x64xf32> -> vector<4x64xf32>
    %c0_314 = arith.constant 0 : index
    %c0_315 = arith.constant 0 : index
    %794 = vector.load %arg21[%c0_314, %c0_315] : memref<16x128xf32, #tpu.memory_space<vmem>>, vector<16x128xf32>
    %cst_316 = arith.constant dense<0.000000e+00> : vector<4x128xf32>
    %795 = tpu.matmul %784, %794, %cst_316 {dimension_numbers = #tpu.dot_dimension_numbers<[1], [0], [0], [1], [0, 0, 1, 1], [], []>} : vector<4x16xf32>, vector<16x128xf32>, vector<4x128xf32> -> vector<4x128xf32>
    %c2_i32_317 = arith.constant 2 : i32
    %796 = vector.broadcast %c2_i32_317 : i32 to vector<4x64xi32>
    %797 = arith.cmpi slt, %702, %796 : vector<4x64xi32>
    %798 = vector.extract_strided_slice %795 {offsets = [0, 0], sizes = [4, 64], strides = [1, 1]} : vector<4x128xf32> to vector<4x64xf32>
    %799 = vector.extract_strided_slice %795 {offsets = [0, 64], sizes = [4, 64], strides = [1, 1]} : vector<4x128xf32> to vector<4x64xf32>
    %800 = arith.select %797, %798, %799 : vector<4x64xi1>, vector<4x64xf32>
    %801 = arith.addf %793, %800 : vector<4x64xf32>
    %802 = vector.extract_strided_slice %801 {offsets = [0, 0], sizes = [4, 16], strides = [1, 1]} : vector<4x64xf32> to vector<4x16xf32>
    %803 = arith.negf %802 : vector<4x16xf32>
    %804 = math.exp %803 : vector<4x16xf32>
    %cst_318 = arith.constant 1.000000e+00 : f32
    %805 = vector.broadcast %cst_318 : f32 to vector<4x16xf32>
    %806 = arith.addf %805, %804 : vector<4x16xf32>
    %807 = arith.divf %805, %806 : vector<4x16xf32>
    %808 = vector.extract_strided_slice %801 {offsets = [0, 16], sizes = [4, 16], strides = [1, 1]} : vector<4x64xf32> to vector<4x16xf32>
    %809 = arith.negf %808 : vector<4x16xf32>
    %810 = math.exp %809 : vector<4x16xf32>
    %cst_319 = arith.constant 1.000000e+00 : f32
    %811 = vector.broadcast %cst_319 : f32 to vector<4x16xf32>
    %812 = arith.addf %811, %810 : vector<4x16xf32>
    %813 = arith.divf %811, %812 : vector<4x16xf32>
    %814 = vector.extract_strided_slice %801 {offsets = [0, 32], sizes = [4, 16], strides = [1, 1]} : vector<4x64xf32> to vector<4x16xf32>
    %815 = math.tanh %814 : vector<4x16xf32>
    %816 = vector.extract_strided_slice %801 {offsets = [0, 48], sizes = [4, 16], strides = [1, 1]} : vector<4x64xf32> to vector<4x16xf32>
    %817 = arith.negf %816 : vector<4x16xf32>
    %818 = math.exp %817 : vector<4x16xf32>
    %cst_320 = arith.constant 1.000000e+00 : f32
    %819 = vector.broadcast %cst_320 : f32 to vector<4x16xf32>
    %820 = arith.addf %819, %818 : vector<4x16xf32>
    %821 = arith.divf %819, %820 : vector<4x16xf32>
    %822 = arith.mulf %813, %782 : vector<4x16xf32>
    %823 = arith.mulf %807, %815 : vector<4x16xf32>
    %824 = arith.addf %822, %823 : vector<4x16xf32>
    %825 = math.tanh %824 : vector<4x16xf32>
    %826 = arith.mulf %821, %825 : vector<4x16xf32>
    %827 = vector.extract_strided_slice %826 {offsets = [0, 0], sizes = [2, 16], strides = [1, 1]} : vector<4x16xf32> to vector<2x16xf32>
    %828 = vector.extract_strided_slice %826 {offsets = [2, 0], sizes = [2, 16], strides = [1, 1]} : vector<4x16xf32> to vector<2x16xf32>
    %829 = vector.extract_strided_slice %699 {offsets = [3, 0], sizes = [1, 64], strides = [1, 1]} : vector<16x128xf32> to vector<1x64xf32>
    %830 = vector.extract_strided_slice %699 {offsets = [11, 0], sizes = [1, 64], strides = [1, 1]} : vector<16x128xf32> to vector<1x64xf32>
    %831 = tpu.concatenate %829, %830 in 0 : vector<1x64xf32>, vector<1x64xf32> -> vector<2x64xf32>
    %832 = vector.extract_strided_slice %699 {offsets = [4, 64], sizes = [1, 64], strides = [1, 1]} : vector<16x128xf32> to vector<1x64xf32>
    %833 = vector.extract_strided_slice %699 {offsets = [12, 64], sizes = [1, 64], strides = [1, 1]} : vector<16x128xf32> to vector<1x64xf32>
    %834 = tpu.concatenate %832, %833 in 0 : vector<1x64xf32>, vector<1x64xf32> -> vector<2x64xf32>
    %835 = tpu.concatenate %831, %834 in 0 : vector<2x64xf32>, vector<2x64xf32> -> vector<4x64xf32>
    %c0_321 = arith.constant 0 : index
    %c0_322 = arith.constant 0 : index
    %836 = vector.load %arg21[%c0_321, %c0_322] : memref<16x128xf32, #tpu.memory_space<vmem>>, vector<16x128xf32>
    %cst_323 = arith.constant dense<0.000000e+00> : vector<4x128xf32>
    %837 = tpu.matmul %826, %836, %cst_323 {dimension_numbers = #tpu.dot_dimension_numbers<[1], [0], [0], [1], [0, 0, 1, 1], [], []>} : vector<4x16xf32>, vector<16x128xf32>, vector<4x128xf32> -> vector<4x128xf32>
    %c2_i32_324 = arith.constant 2 : i32
    %838 = vector.broadcast %c2_i32_324 : i32 to vector<4x64xi32>
    %839 = arith.cmpi slt, %702, %838 : vector<4x64xi32>
    %840 = vector.extract_strided_slice %837 {offsets = [0, 0], sizes = [4, 64], strides = [1, 1]} : vector<4x128xf32> to vector<4x64xf32>
    %841 = vector.extract_strided_slice %837 {offsets = [0, 64], sizes = [4, 64], strides = [1, 1]} : vector<4x128xf32> to vector<4x64xf32>
    %842 = arith.select %839, %840, %841 : vector<4x64xi1>, vector<4x64xf32>
    %843 = arith.addf %835, %842 : vector<4x64xf32>
    %844 = vector.extract_strided_slice %843 {offsets = [0, 0], sizes = [4, 16], strides = [1, 1]} : vector<4x64xf32> to vector<4x16xf32>
    %845 = arith.negf %844 : vector<4x16xf32>
    %846 = math.exp %845 : vector<4x16xf32>
    %cst_325 = arith.constant 1.000000e+00 : f32
    %847 = vector.broadcast %cst_325 : f32 to vector<4x16xf32>
    %848 = arith.addf %847, %846 : vector<4x16xf32>
    %849 = arith.divf %847, %848 : vector<4x16xf32>
    %850 = vector.extract_strided_slice %843 {offsets = [0, 16], sizes = [4, 16], strides = [1, 1]} : vector<4x64xf32> to vector<4x16xf32>
    %851 = arith.negf %850 : vector<4x16xf32>
    %852 = math.exp %851 : vector<4x16xf32>
    %cst_326 = arith.constant 1.000000e+00 : f32
    %853 = vector.broadcast %cst_326 : f32 to vector<4x16xf32>
    %854 = arith.addf %853, %852 : vector<4x16xf32>
    %855 = arith.divf %853, %854 : vector<4x16xf32>
    %856 = vector.extract_strided_slice %843 {offsets = [0, 32], sizes = [4, 16], strides = [1, 1]} : vector<4x64xf32> to vector<4x16xf32>
    %857 = math.tanh %856 : vector<4x16xf32>
    %858 = vector.extract_strided_slice %843 {offsets = [0, 48], sizes = [4, 16], strides = [1, 1]} : vector<4x64xf32> to vector<4x16xf32>
    %859 = arith.negf %858 : vector<4x16xf32>
    %860 = math.exp %859 : vector<4x16xf32>
    %cst_327 = arith.constant 1.000000e+00 : f32
    %861 = vector.broadcast %cst_327 : f32 to vector<4x16xf32>
    %862 = arith.addf %861, %860 : vector<4x16xf32>
    %863 = arith.divf %861, %862 : vector<4x16xf32>
    %864 = arith.mulf %855, %824 : vector<4x16xf32>
    %865 = arith.mulf %849, %857 : vector<4x16xf32>
    %866 = arith.addf %864, %865 : vector<4x16xf32>
    %867 = math.tanh %866 : vector<4x16xf32>
    %868 = arith.mulf %863, %867 : vector<4x16xf32>
    %869 = vector.extract_strided_slice %868 {offsets = [0, 0], sizes = [2, 16], strides = [1, 1]} : vector<4x16xf32> to vector<2x16xf32>
    %870 = vector.extract_strided_slice %868 {offsets = [2, 0], sizes = [2, 16], strides = [1, 1]} : vector<4x16xf32> to vector<2x16xf32>
    %871 = vector.extract_strided_slice %699 {offsets = [4, 0], sizes = [1, 64], strides = [1, 1]} : vector<16x128xf32> to vector<1x64xf32>
    %872 = vector.extract_strided_slice %699 {offsets = [12, 0], sizes = [1, 64], strides = [1, 1]} : vector<16x128xf32> to vector<1x64xf32>
    %873 = tpu.concatenate %871, %872 in 0 : vector<1x64xf32>, vector<1x64xf32> -> vector<2x64xf32>
    %874 = vector.extract_strided_slice %699 {offsets = [3, 64], sizes = [1, 64], strides = [1, 1]} : vector<16x128xf32> to vector<1x64xf32>
    %875 = vector.extract_strided_slice %699 {offsets = [11, 64], sizes = [1, 64], strides = [1, 1]} : vector<16x128xf32> to vector<1x64xf32>
    %876 = tpu.concatenate %874, %875 in 0 : vector<1x64xf32>, vector<1x64xf32> -> vector<2x64xf32>
    %877 = tpu.concatenate %873, %876 in 0 : vector<2x64xf32>, vector<2x64xf32> -> vector<4x64xf32>
    %c0_328 = arith.constant 0 : index
    %c0_329 = arith.constant 0 : index
    %878 = vector.load %arg21[%c0_328, %c0_329] : memref<16x128xf32, #tpu.memory_space<vmem>>, vector<16x128xf32>
    %cst_330 = arith.constant dense<0.000000e+00> : vector<4x128xf32>
    %879 = tpu.matmul %868, %878, %cst_330 {dimension_numbers = #tpu.dot_dimension_numbers<[1], [0], [0], [1], [0, 0, 1, 1], [], []>} : vector<4x16xf32>, vector<16x128xf32>, vector<4x128xf32> -> vector<4x128xf32>
    %c2_i32_331 = arith.constant 2 : i32
    %880 = vector.broadcast %c2_i32_331 : i32 to vector<4x64xi32>
    %881 = arith.cmpi slt, %702, %880 : vector<4x64xi32>
    %882 = vector.extract_strided_slice %879 {offsets = [0, 0], sizes = [4, 64], strides = [1, 1]} : vector<4x128xf32> to vector<4x64xf32>
    %883 = vector.extract_strided_slice %879 {offsets = [0, 64], sizes = [4, 64], strides = [1, 1]} : vector<4x128xf32> to vector<4x64xf32>
    %884 = arith.select %881, %882, %883 : vector<4x64xi1>, vector<4x64xf32>
    %885 = arith.addf %877, %884 : vector<4x64xf32>
    %886 = vector.extract_strided_slice %885 {offsets = [0, 0], sizes = [4, 16], strides = [1, 1]} : vector<4x64xf32> to vector<4x16xf32>
    %887 = arith.negf %886 : vector<4x16xf32>
    %888 = math.exp %887 : vector<4x16xf32>
    %cst_332 = arith.constant 1.000000e+00 : f32
    %889 = vector.broadcast %cst_332 : f32 to vector<4x16xf32>
    %890 = arith.addf %889, %888 : vector<4x16xf32>
    %891 = arith.divf %889, %890 : vector<4x16xf32>
    %892 = vector.extract_strided_slice %885 {offsets = [0, 16], sizes = [4, 16], strides = [1, 1]} : vector<4x64xf32> to vector<4x16xf32>
    %893 = arith.negf %892 : vector<4x16xf32>
    %894 = math.exp %893 : vector<4x16xf32>
    %cst_333 = arith.constant 1.000000e+00 : f32
    %895 = vector.broadcast %cst_333 : f32 to vector<4x16xf32>
    %896 = arith.addf %895, %894 : vector<4x16xf32>
    %897 = arith.divf %895, %896 : vector<4x16xf32>
    %898 = vector.extract_strided_slice %885 {offsets = [0, 32], sizes = [4, 16], strides = [1, 1]} : vector<4x64xf32> to vector<4x16xf32>
    %899 = math.tanh %898 : vector<4x16xf32>
    %900 = vector.extract_strided_slice %885 {offsets = [0, 48], sizes = [4, 16], strides = [1, 1]} : vector<4x64xf32> to vector<4x16xf32>
    %901 = arith.negf %900 : vector<4x16xf32>
    %902 = math.exp %901 : vector<4x16xf32>
    %cst_334 = arith.constant 1.000000e+00 : f32
    %903 = vector.broadcast %cst_334 : f32 to vector<4x16xf32>
    %904 = arith.addf %903, %902 : vector<4x16xf32>
    %905 = arith.divf %903, %904 : vector<4x16xf32>
    %906 = arith.mulf %897, %866 : vector<4x16xf32>
    %907 = arith.mulf %891, %899 : vector<4x16xf32>
    %908 = arith.addf %906, %907 : vector<4x16xf32>
    %909 = math.tanh %908 : vector<4x16xf32>
    %910 = arith.mulf %905, %909 : vector<4x16xf32>
    %911 = vector.extract_strided_slice %910 {offsets = [0, 0], sizes = [2, 16], strides = [1, 1]} : vector<4x16xf32> to vector<2x16xf32>
    %912 = vector.extract_strided_slice %910 {offsets = [2, 0], sizes = [2, 16], strides = [1, 1]} : vector<4x16xf32> to vector<2x16xf32>
    %913 = vector.extract_strided_slice %699 {offsets = [5, 0], sizes = [1, 64], strides = [1, 1]} : vector<16x128xf32> to vector<1x64xf32>
    %914 = vector.extract_strided_slice %699 {offsets = [13, 0], sizes = [1, 64], strides = [1, 1]} : vector<16x128xf32> to vector<1x64xf32>
    %915 = tpu.concatenate %913, %914 in 0 : vector<1x64xf32>, vector<1x64xf32> -> vector<2x64xf32>
    %916 = vector.extract_strided_slice %699 {offsets = [2, 64], sizes = [1, 64], strides = [1, 1]} : vector<16x128xf32> to vector<1x64xf32>
    %917 = vector.extract_strided_slice %699 {offsets = [10, 64], sizes = [1, 64], strides = [1, 1]} : vector<16x128xf32> to vector<1x64xf32>
    %918 = tpu.concatenate %916, %917 in 0 : vector<1x64xf32>, vector<1x64xf32> -> vector<2x64xf32>
    %919 = tpu.concatenate %915, %918 in 0 : vector<2x64xf32>, vector<2x64xf32> -> vector<4x64xf32>
    %c0_335 = arith.constant 0 : index
    %c0_336 = arith.constant 0 : index
    %920 = vector.load %arg21[%c0_335, %c0_336] : memref<16x128xf32, #tpu.memory_space<vmem>>, vector<16x128xf32>
    %cst_337 = arith.constant dense<0.000000e+00> : vector<4x128xf32>
    %921 = tpu.matmul %910, %920, %cst_337 {dimension_numbers = #tpu.dot_dimension_numbers<[1], [0], [0], [1], [0, 0, 1, 1], [], []>} : vector<4x16xf32>, vector<16x128xf32>, vector<4x128xf32> -> vector<4x128xf32>
    %c2_i32_338 = arith.constant 2 : i32
    %922 = vector.broadcast %c2_i32_338 : i32 to vector<4x64xi32>
    %923 = arith.cmpi slt, %702, %922 : vector<4x64xi32>
    %924 = vector.extract_strided_slice %921 {offsets = [0, 0], sizes = [4, 64], strides = [1, 1]} : vector<4x128xf32> to vector<4x64xf32>
    %925 = vector.extract_strided_slice %921 {offsets = [0, 64], sizes = [4, 64], strides = [1, 1]} : vector<4x128xf32> to vector<4x64xf32>
    %926 = arith.select %923, %924, %925 : vector<4x64xi1>, vector<4x64xf32>
    %927 = arith.addf %919, %926 : vector<4x64xf32>
    %928 = vector.extract_strided_slice %927 {offsets = [0, 0], sizes = [4, 16], strides = [1, 1]} : vector<4x64xf32> to vector<4x16xf32>
    %929 = arith.negf %928 : vector<4x16xf32>
    %930 = math.exp %929 : vector<4x16xf32>
    %cst_339 = arith.constant 1.000000e+00 : f32
    %931 = vector.broadcast %cst_339 : f32 to vector<4x16xf32>
    %932 = arith.addf %931, %930 : vector<4x16xf32>
    %933 = arith.divf %931, %932 : vector<4x16xf32>
    %934 = vector.extract_strided_slice %927 {offsets = [0, 16], sizes = [4, 16], strides = [1, 1]} : vector<4x64xf32> to vector<4x16xf32>
    %935 = arith.negf %934 : vector<4x16xf32>
    %936 = math.exp %935 : vector<4x16xf32>
    %cst_340 = arith.constant 1.000000e+00 : f32
    %937 = vector.broadcast %cst_340 : f32 to vector<4x16xf32>
    %938 = arith.addf %937, %936 : vector<4x16xf32>
    %939 = arith.divf %937, %938 : vector<4x16xf32>
    %940 = vector.extract_strided_slice %927 {offsets = [0, 32], sizes = [4, 16], strides = [1, 1]} : vector<4x64xf32> to vector<4x16xf32>
    %941 = math.tanh %940 : vector<4x16xf32>
    %942 = vector.extract_strided_slice %927 {offsets = [0, 48], sizes = [4, 16], strides = [1, 1]} : vector<4x64xf32> to vector<4x16xf32>
    %943 = arith.negf %942 : vector<4x16xf32>
    %944 = math.exp %943 : vector<4x16xf32>
    %cst_341 = arith.constant 1.000000e+00 : f32
    %945 = vector.broadcast %cst_341 : f32 to vector<4x16xf32>
    %946 = arith.addf %945, %944 : vector<4x16xf32>
    %947 = arith.divf %945, %946 : vector<4x16xf32>
    %948 = arith.mulf %939, %908 : vector<4x16xf32>
    %949 = arith.mulf %933, %941 : vector<4x16xf32>
    %950 = arith.addf %948, %949 : vector<4x16xf32>
    %951 = math.tanh %950 : vector<4x16xf32>
    %952 = arith.mulf %947, %951 : vector<4x16xf32>
    %953 = vector.extract_strided_slice %952 {offsets = [0, 0], sizes = [2, 16], strides = [1, 1]} : vector<4x16xf32> to vector<2x16xf32>
    %954 = vector.extract_strided_slice %952 {offsets = [2, 0], sizes = [2, 16], strides = [1, 1]} : vector<4x16xf32> to vector<2x16xf32>
    %955 = vector.extract_strided_slice %699 {offsets = [6, 0], sizes = [1, 64], strides = [1, 1]} : vector<16x128xf32> to vector<1x64xf32>
    %956 = vector.extract_strided_slice %699 {offsets = [14, 0], sizes = [1, 64], strides = [1, 1]} : vector<16x128xf32> to vector<1x64xf32>
    %957 = tpu.concatenate %955, %956 in 0 : vector<1x64xf32>, vector<1x64xf32> -> vector<2x64xf32>
    %958 = vector.extract_strided_slice %699 {offsets = [1, 64], sizes = [1, 64], strides = [1, 1]} : vector<16x128xf32> to vector<1x64xf32>
    %959 = vector.extract_strided_slice %699 {offsets = [9, 64], sizes = [1, 64], strides = [1, 1]} : vector<16x128xf32> to vector<1x64xf32>
    %960 = tpu.concatenate %958, %959 in 0 : vector<1x64xf32>, vector<1x64xf32> -> vector<2x64xf32>
    %961 = tpu.concatenate %957, %960 in 0 : vector<2x64xf32>, vector<2x64xf32> -> vector<4x64xf32>
    %c0_342 = arith.constant 0 : index
    %c0_343 = arith.constant 0 : index
    %962 = vector.load %arg21[%c0_342, %c0_343] : memref<16x128xf32, #tpu.memory_space<vmem>>, vector<16x128xf32>
    %cst_344 = arith.constant dense<0.000000e+00> : vector<4x128xf32>
    %963 = tpu.matmul %952, %962, %cst_344 {dimension_numbers = #tpu.dot_dimension_numbers<[1], [0], [0], [1], [0, 0, 1, 1], [], []>} : vector<4x16xf32>, vector<16x128xf32>, vector<4x128xf32> -> vector<4x128xf32>
    %c2_i32_345 = arith.constant 2 : i32
    %964 = vector.broadcast %c2_i32_345 : i32 to vector<4x64xi32>
    %965 = arith.cmpi slt, %702, %964 : vector<4x64xi32>
    %966 = vector.extract_strided_slice %963 {offsets = [0, 0], sizes = [4, 64], strides = [1, 1]} : vector<4x128xf32> to vector<4x64xf32>
    %967 = vector.extract_strided_slice %963 {offsets = [0, 64], sizes = [4, 64], strides = [1, 1]} : vector<4x128xf32> to vector<4x64xf32>
    %968 = arith.select %965, %966, %967 : vector<4x64xi1>, vector<4x64xf32>
    %969 = arith.addf %961, %968 : vector<4x64xf32>
    %970 = vector.extract_strided_slice %969 {offsets = [0, 0], sizes = [4, 16], strides = [1, 1]} : vector<4x64xf32> to vector<4x16xf32>
    %971 = arith.negf %970 : vector<4x16xf32>
    %972 = math.exp %971 : vector<4x16xf32>
    %cst_346 = arith.constant 1.000000e+00 : f32
    %973 = vector.broadcast %cst_346 : f32 to vector<4x16xf32>
    %974 = arith.addf %973, %972 : vector<4x16xf32>
    %975 = arith.divf %973, %974 : vector<4x16xf32>
    %976 = vector.extract_strided_slice %969 {offsets = [0, 16], sizes = [4, 16], strides = [1, 1]} : vector<4x64xf32> to vector<4x16xf32>
    %977 = arith.negf %976 : vector<4x16xf32>
    %978 = math.exp %977 : vector<4x16xf32>
    %cst_347 = arith.constant 1.000000e+00 : f32
    %979 = vector.broadcast %cst_347 : f32 to vector<4x16xf32>
    %980 = arith.addf %979, %978 : vector<4x16xf32>
    %981 = arith.divf %979, %980 : vector<4x16xf32>
    %982 = vector.extract_strided_slice %969 {offsets = [0, 32], sizes = [4, 16], strides = [1, 1]} : vector<4x64xf32> to vector<4x16xf32>
    %983 = math.tanh %982 : vector<4x16xf32>
    %984 = vector.extract_strided_slice %969 {offsets = [0, 48], sizes = [4, 16], strides = [1, 1]} : vector<4x64xf32> to vector<4x16xf32>
    %985 = arith.negf %984 : vector<4x16xf32>
    %986 = math.exp %985 : vector<4x16xf32>
    %cst_348 = arith.constant 1.000000e+00 : f32
    %987 = vector.broadcast %cst_348 : f32 to vector<4x16xf32>
    %988 = arith.addf %987, %986 : vector<4x16xf32>
    %989 = arith.divf %987, %988 : vector<4x16xf32>
    %990 = arith.mulf %981, %950 : vector<4x16xf32>
    %991 = arith.mulf %975, %983 : vector<4x16xf32>
    %992 = arith.addf %990, %991 : vector<4x16xf32>
    %993 = math.tanh %992 : vector<4x16xf32>
    %994 = arith.mulf %989, %993 : vector<4x16xf32>
    %995 = vector.extract_strided_slice %994 {offsets = [0, 0], sizes = [2, 16], strides = [1, 1]} : vector<4x16xf32> to vector<2x16xf32>
    %996 = vector.extract_strided_slice %994 {offsets = [2, 0], sizes = [2, 16], strides = [1, 1]} : vector<4x16xf32> to vector<2x16xf32>
    %997 = vector.extract_strided_slice %699 {offsets = [7, 0], sizes = [1, 64], strides = [1, 1]} : vector<16x128xf32> to vector<1x64xf32>
    %998 = vector.extract_strided_slice %699 {offsets = [15, 0], sizes = [1, 64], strides = [1, 1]} : vector<16x128xf32> to vector<1x64xf32>
    %999 = tpu.concatenate %997, %998 in 0 : vector<1x64xf32>, vector<1x64xf32> -> vector<2x64xf32>
    %1000 = vector.extract_strided_slice %699 {offsets = [0, 64], sizes = [1, 64], strides = [1, 1]} : vector<16x128xf32> to vector<1x64xf32>
    %1001 = vector.extract_strided_slice %699 {offsets = [8, 64], sizes = [1, 64], strides = [1, 1]} : vector<16x128xf32> to vector<1x64xf32>
    %1002 = tpu.concatenate %1000, %1001 in 0 : vector<1x64xf32>, vector<1x64xf32> -> vector<2x64xf32>
    %1003 = tpu.concatenate %999, %1002 in 0 : vector<2x64xf32>, vector<2x64xf32> -> vector<4x64xf32>
    %c0_349 = arith.constant 0 : index
    %c0_350 = arith.constant 0 : index
    %1004 = vector.load %arg21[%c0_349, %c0_350] : memref<16x128xf32, #tpu.memory_space<vmem>>, vector<16x128xf32>
    %cst_351 = arith.constant dense<0.000000e+00> : vector<4x128xf32>
    %1005 = tpu.matmul %994, %1004, %cst_351 {dimension_numbers = #tpu.dot_dimension_numbers<[1], [0], [0], [1], [0, 0, 1, 1], [], []>} : vector<4x16xf32>, vector<16x128xf32>, vector<4x128xf32> -> vector<4x128xf32>
    %c2_i32_352 = arith.constant 2 : i32
    %1006 = vector.broadcast %c2_i32_352 : i32 to vector<4x64xi32>
    %1007 = arith.cmpi slt, %702, %1006 : vector<4x64xi32>
    %1008 = vector.extract_strided_slice %1005 {offsets = [0, 0], sizes = [4, 64], strides = [1, 1]} : vector<4x128xf32> to vector<4x64xf32>
    %1009 = vector.extract_strided_slice %1005 {offsets = [0, 64], sizes = [4, 64], strides = [1, 1]} : vector<4x128xf32> to vector<4x64xf32>
    %1010 = arith.select %1007, %1008, %1009 : vector<4x64xi1>, vector<4x64xf32>
    %1011 = arith.addf %1003, %1010 : vector<4x64xf32>
    %1012 = vector.extract_strided_slice %1011 {offsets = [0, 0], sizes = [4, 16], strides = [1, 1]} : vector<4x64xf32> to vector<4x16xf32>
    %1013 = arith.negf %1012 : vector<4x16xf32>
    %1014 = math.exp %1013 : vector<4x16xf32>
    %cst_353 = arith.constant 1.000000e+00 : f32
    %1015 = vector.broadcast %cst_353 : f32 to vector<4x16xf32>
    %1016 = arith.addf %1015, %1014 : vector<4x16xf32>
    %1017 = arith.divf %1015, %1016 : vector<4x16xf32>
    %1018 = vector.extract_strided_slice %1011 {offsets = [0, 16], sizes = [4, 16], strides = [1, 1]} : vector<4x64xf32> to vector<4x16xf32>
    %1019 = arith.negf %1018 : vector<4x16xf32>
    %1020 = math.exp %1019 : vector<4x16xf32>
    %cst_354 = arith.constant 1.000000e+00 : f32
    %1021 = vector.broadcast %cst_354 : f32 to vector<4x16xf32>
    %1022 = arith.addf %1021, %1020 : vector<4x16xf32>
    %1023 = arith.divf %1021, %1022 : vector<4x16xf32>
    %1024 = vector.extract_strided_slice %1011 {offsets = [0, 32], sizes = [4, 16], strides = [1, 1]} : vector<4x64xf32> to vector<4x16xf32>
    %1025 = math.tanh %1024 : vector<4x16xf32>
    %1026 = vector.extract_strided_slice %1011 {offsets = [0, 48], sizes = [4, 16], strides = [1, 1]} : vector<4x64xf32> to vector<4x16xf32>
    %1027 = arith.negf %1026 : vector<4x16xf32>
    %1028 = math.exp %1027 : vector<4x16xf32>
    %cst_355 = arith.constant 1.000000e+00 : f32
    %1029 = vector.broadcast %cst_355 : f32 to vector<4x16xf32>
    %1030 = arith.addf %1029, %1028 : vector<4x16xf32>
    %1031 = arith.divf %1029, %1030 : vector<4x16xf32>
    %1032 = arith.mulf %1023, %992 : vector<4x16xf32>
    %1033 = arith.mulf %1017, %1025 : vector<4x16xf32>
    %1034 = arith.addf %1032, %1033 : vector<4x16xf32>
    %1035 = math.tanh %1034 : vector<4x16xf32>
    %1036 = arith.mulf %1031, %1035 : vector<4x16xf32>
    %1037 = vector.extract_strided_slice %1036 {offsets = [0, 0], sizes = [2, 16], strides = [1, 1]} : vector<4x16xf32> to vector<2x16xf32>
    %1038 = vector.extract_strided_slice %1036 {offsets = [2, 0], sizes = [2, 16], strides = [1, 1]} : vector<4x16xf32> to vector<2x16xf32>
    %1039 = tpu.concatenate %743, %1038 in 1 : vector<2x16xf32>, vector<2x16xf32> -> vector<2x32xf32>
    %1040 = tpu.concatenate %785, %996 in 1 : vector<2x16xf32>, vector<2x16xf32> -> vector<2x32xf32>
    %1041 = tpu.concatenate %827, %954 in 1 : vector<2x16xf32>, vector<2x16xf32> -> vector<2x32xf32>
    %1042 = tpu.concatenate %869, %912 in 1 : vector<2x16xf32>, vector<2x16xf32> -> vector<2x32xf32>
    %1043 = tpu.concatenate %911, %870 in 1 : vector<2x16xf32>, vector<2x16xf32> -> vector<2x32xf32>
    %1044 = tpu.concatenate %953, %828 in 1 : vector<2x16xf32>, vector<2x16xf32> -> vector<2x32xf32>
    %1045 = tpu.concatenate %995, %786 in 1 : vector<2x16xf32>, vector<2x16xf32> -> vector<2x32xf32>
    %1046 = tpu.concatenate %1037, %744 in 1 : vector<2x16xf32>, vector<2x16xf32> -> vector<2x32xf32>
    %1047 = tpu.concatenate %1039, %1040, %1041, %1042, %1043, %1044, %1045, %1046 in 0 : vector<2x32xf32>, vector<2x32xf32>, vector<2x32xf32>, vector<2x32xf32>, vector<2x32xf32>, vector<2x32xf32>, vector<2x32xf32>, vector<2x32xf32> -> vector<16x32xf32>
    %c0_356 = arith.constant 0 : index
    %c0_357 = arith.constant 0 : index
    %1048 = vector.load %arg22[%c0_356, %c0_357] : memref<32x5xf32, #tpu.memory_space<vmem>>, vector<32x5xf32>
    %cst_358 = arith.constant dense<0.000000e+00> : vector<16x5xf32>
    %1049 = tpu.matmul %1047, %1048, %cst_358 {dimension_numbers = #tpu.dot_dimension_numbers<[1], [0], [0], [1], [0, 0, 1, 1], [], []>} : vector<16x32xf32>, vector<32x5xf32>, vector<16x5xf32> -> vector<16x5xf32>
    %c0_359 = arith.constant 0 : index
    %c0_360 = arith.constant 0 : index
    %1050 = vector.load %arg23[%c0_359, %c0_360] : memref<16x5xf32, #tpu.memory_space<vmem>>, vector<16x5xf32>
    tpu.vector_store %arg23[%c0_359, %c0_360], %1049 {strides = array<i32>} : memref<16x5xf32, #tpu.memory_space<vmem>>, vector<16x5xf32>,
    %1051 = tpu.iota {dimensions = array<i32: 1>} : vector<16x5xi32>
    %cst_361 = arith.constant dense<0xFF800000> : vector<16xf32>
    %1052 = vector.multi_reduction <maximumf>, %1049, %cst_361 [1] : vector<16x5xf32> to vector<16xf32>
    %1053 = vector.shape_cast %1052 : vector<16xf32> to vector<16x1xf32>
    %1054 = vector.broadcast %1053 : vector<16x1xf32> to vector<16x5xf32>
    %1055 = arith.cmpf oeq, %1049, %1054 : vector<16x5xf32>
    %c5_i32 = arith.constant 5 : i32
    %1056 = vector.broadcast %c5_i32 : i32 to vector<16x5xi32>
    %1057 = arith.select %1055, %1051, %1056 : vector<16x5xi1>, vector<16x5xi32>
    %cst_362 = arith.constant dense<2147483647> : vector<16xi32>
    %1058 = vector.multi_reduction <minsi>, %1057, %cst_362 [1] : vector<16x5xi32> to vector<16xi32>
    %1059 = vector.shape_cast %1058 : vector<16xi32> to vector<16x1xi32>
    %c0_363 = arith.constant 0 : index
    %c0_364 = arith.constant 0 : index
    %1060 = vector.load %arg24[%c0_363, %c0_364] : memref<16x1xi32, #tpu.memory_space<vmem>>, vector<16x1xi32>
    tpu.vector_store %arg24[%c0_363, %c0_364], %1059 {strides = array<i32>} : memref<16x1xi32, #tpu.memory_space<vmem>>, vector<16x1xi32>,
    %c0_365 = arith.constant 0 : index
    %c0_366 = arith.constant 0 : index
    %1061 = vector.load %arg3[%c0_365, %c0_366] : memref<16x1xi32, #tpu.memory_space<vmem>>, vector<16x1xi32>
    %1062 = vector.broadcast %1053 : vector<16x1xf32> to vector<16x5xf32>
    %1063 = arith.subf %1049, %1062 : vector<16x5xf32>
    %1064 = math.exp %1063 : vector<16x5xf32>
    %cst_367 = arith.constant dense<0.000000e+00> : vector<16xf32>
    %1065 = vector.multi_reduction <add>, %1064, %cst_367 [1] : vector<16x5xf32> to vector<16xf32>
    %1066 = vector.shape_cast %1065 : vector<16xf32> to vector<16x1xf32>
    %1067 = math.log %1066 : vector<16x1xf32>
    %1068 = arith.addf %1053, %1067 : vector<16x1xf32>
    %1069 = vector.broadcast %1061 : vector<16x1xi32> to vector<16x5xi32>
    %1070 = arith.cmpi eq, %1051, %1069 : vector<16x5xi32>
    %cst_368 = arith.constant 0.000000e+00 : f32
    %1071 = vector.broadcast %cst_368 : f32 to vector<16x5xf32>
    %1072 = arith.select %1070, %1049, %1071 : vector<16x5xi1>, vector<16x5xf32>
    %cst_369 = arith.constant dense<0.000000e+00> : vector<16xf32>
    %1073 = vector.multi_reduction <add>, %1072, %cst_369 [1] : vector<16x5xf32> to vector<16xf32>
    %1074 = vector.shape_cast %1073 : vector<16xf32> to vector<16x1xf32>
    %c-100_i32 = arith.constant -100 : i32
    %1075 = vector.broadcast %c-100_i32 : i32 to vector<16x1xi32>
    %1076 = arith.cmpi ne, %1061, %1075 : vector<16x1xi32>
    %1077 = arith.extui %1076 : vector<16x1xi1> to vector<16x1xi32>
    %1078 = arith.sitofp %1077 : vector<16x1xi32> to vector<16x1xf32>
    %1079 = arith.subf %1068, %1074 : vector<16x1xf32>
    %1080 = arith.mulf %1079, %1078 : vector<16x1xf32>
    %cst_370 = arith.constant dense<0.000000e+00> : vector<1xf32>
    %1081 = vector.multi_reduction <add>, %1078, %cst_370 [0] : vector<16x1xf32> to vector<1xf32>
    %1082 = vector.shape_cast %1081 : vector<1xf32> to vector<1x1xf32>
    %cst_371 = arith.constant 1.000000e+00 : f32
    %1083 = vector.broadcast %cst_371 : f32 to vector<1x1xf32>
    %1084 = arith.maximumf %1082, %1083 : vector<1x1xf32>
    %cst_372 = arith.constant dense<0.000000e+00> : vector<1xf32>
    %1085 = vector.multi_reduction <add>, %1080, %cst_372 [0] : vector<16x1xf32> to vector<1xf32>
    %1086 = vector.shape_cast %1085 : vector<1xf32> to vector<1x1xf32>
    %1087 = arith.divf %1086, %1084 : vector<1x1xf32>
    %c0_373 = arith.constant 0 : index
    %c0_374 = arith.constant 0 : index
    %1088 = vector.load %arg25[%c0_373, %c0_374] : memref<1x1xf32, #tpu.memory_space<vmem>>, vector<1x1xf32>
    tpu.vector_store %arg25[%c0_373, %c0_374], %1087 {strides = array<i32>} : memref<1x1xf32, #tpu.memory_space<vmem>>, vector<1x1xf32>,
    return
  }
}

</mosaic_0001>

<bundles_post_ra>
// kernel: bert_ohe_forward.1
= control target key start
LH: loop header
LB: loop body
LE: loop exit
PB: predicated region body
PF: predicated region fallthrough
CT: control target
= control target key end

     0   :  { %s8691_s0 = inlined_call_operand.vmem [shape: f32[16,32], index: 0, kind: input, shape index: {}]   ;;  %s8692_s1 = inlined_call_operand.vmem [shape: f32[2,8], index: 1, kind: input, shape index: {}]   ;;  %s8693_s2 = inlined_call_operand.vmem [shape: f32[16,1], index: 2, kind: input, shape index: {}]   ;;  %s8694_s3 = inlined_call_operand.vmem [shape: s32[16,1], index: 3, kind: input, shape index: {}]   ;;  %s8695_s4 = inlined_call_operand.vmem [shape: f32[1,32], index: 4, kind: input, shape index: {}]   ;;  %s8696_s5 = inlined_call_operand.vmem [shape: f32[1,32], index: 5, kind: input, shape index: {}]   ;;  %s8697_s6 = inlined_call_operand.vmem [shape: f32[4,32,96], index: 6, kind: input, shape index: {}]   ;;  %s8698_s7 = inlined_call_operand.vmem [shape: f32[4,1,96], index: 7, kind: input, shape index: {}]   ;;  %s8699_s8 = inlined_call_operand.vmem [shape: f32[4,32,32], index: 8, kind: input, shape index: {}]   ;;  %s8700_s9 = inlined_call_operand.vmem [shape: f32[4,1,32], index: 9, kind: input, shape index: {}]   ;;  %s8701_s10 = inlined_call_operand.vmem [shape: f32[4,1,32], index: 10, kind: input, shape index: {}]   ;;  %s8702_s11 = inlined_call_operand.vmem [shape: f32[4,1,32], index: 11, kind: input, shape index: {}]   ;;  %s8703_s12 = inlined_call_operand.vmem [shape: f32[4,32,64], index: 12, kind: input, shape index: {}]   ;;  %s8704_s13 = inlined_call_operand.vmem [shape: f32[4,1,64], index: 13, kind: input, shape index: {}]   ;;  %s8705_s14 = inlined_call_operand.vmem [shape: f32[4,64,32], index: 14, kind: input, shape index: {}]   ;;  %s8706_s15 = inlined_call_operand.vmem [shape: f32[4,1,32], index: 15, kind: input, shape index: {}]   ;;  %s8707_s16 = inlined_call_operand.vmem [shape: f32[4,1,32], index: 16, kind: input, shape index: {}]   ;;  %s8708_s17 = inlined_call_operand.vmem [shape: f32[4,1,32], index: 17, kind: input, shape index: {}]   ;;  %s8709_s18 = inlined_call_operand.vmem [shape: f32[32,128], index: 18, kind: input, shape index: {}]   ;;  %s8710_s19 = inlined_call_operand.vmem [shape: f32[1,128], index: 19, kind: input, shape index: {}]   ;;  %s8711_s20 = inlined_call_operand.vmem [shape: f32[1,128], index: 20, kind: input, shape index: {}]   ;;  %s8712_s21 = inlined_call_operand.vmem [shape: f32[16,128], index: 21, kind: input, shape index: {}]   ;;  %s8713_s22 = inlined_call_operand.vmem [shape: f32[32,5], index: 22, kind: input, shape index: {}]   ;;  %s8714_s23 = inlined_call_operand.vmem [shape: f32[16,5], index: 23, kind: output, shape index: {0}]   ;;  %s8715_s24 = inlined_call_operand.vmem [shape: s32[16,1], index: 24, kind: output, shape index: {1}]   ;;  %s8716_s25 = inlined_call_operand.hbm [shape: f32[1,1], index: 25, kind: output, shape index: {2}]  }
   0x1   :  { %8740 = sst [smem:[#allocation5_spill]] %s8691_s0 }
   0x2   :  { %8741 = sst [smem:[#allocation6_spill]] %s8692_s1 }
   0x3   :  { %8742 = sst [smem:[#allocation7_spill]] %s8693_s2 }
   0x4   :  { %8743 = sst [smem:[#allocation8_spill]] %s8694_s3 }
   0x5   :  { %8744 = sst [smem:[#allocation9_spill]] %s8695_s4 }
   0x6   :  { %8745 = sst [smem:[#allocation10_spill]] %s8696_s5 }
   0x7   :  { %8746 = sst [smem:[#allocation11_spill]] %s8697_s6 }
   0x8   :  { %8747 = sst [smem:[#allocation12_spill]] %s8698_s7 }
   0x9   :  { %8748 = sst [smem:[#allocation13_spill]] %s8699_s8 }
   0xa   :  { %8749 = sst [smem:[#allocation14_spill]] %s8700_s9 }
   0xb   :  { %8750 = sst [smem:[#allocation15_spill]] %s8711_s20 }
   0xc   :  { %8751 = sst [smem:[#allocation16_spill]] %s8713_s22 }
   0xd   :  { %8752 = sst [smem:[#allocation17_spill]] %s8714_s23 }
   0xe   :  { %8753 = sst [smem:[#allocation18_spill]] %s8715_s24 }
   0xf   :  { %8754 = sst [smem:[#allocation19_spill]] %s8716_s25 }
  0x10   :  { %s8755_s6 = sld [smem:[#allocation5_spill]]  ;;  %vm82_vm0 = vcmask 261120  }
  0x16   :  { %v78_v0 = vld [vmem:[%s8755_s6] sm:$0xff]  ;;  %v79_v1 = vld [vmem:[%s8755_s6 + $0x8] sm:$0xff] }
  0x17   :  { %31 = vsyncpa [#allocation3], 0  ;;  %v83_v2 = vsel %vm82_vm0, %v78_v0, 0.0  ;;  %v86_v3 = vsel %vm82_vm0, %v79_v1, 0.0  ;;  %s8756_s1 = sld [smem:[#allocation11_spill]]  ;;  %s8757_s2 = sld [smem:[#allocation9_spill]]  ;;  %v221_v45 = vlaneseq }
  0x18   :  { %84 = vadd.xlane.f32.xlu0 %v83_v2  ;;  %s8758_s7 = sld [smem:[#allocation10_spill]]  ;;  %v7436_v36 = vmov 0.0   ;;  %vm7437_vm1 = vmmov 0   ;;  %s8759_s8 = sld [smem:[#allocation12_spill]]  ;;  %vm228_vm2 = vcmask 130048   ;;  %vm303_vm3 = vcmask 64512  }
  0x19   :  { %6573 = vmatprep.subr.mxu1 %v7436_v36  ;;  %6575 = vmatprep.mubr.msk.f32.mxu1 %vm7437_vm1, %v7436_v36  ;;  %s8732_s27 = smov 96   ;;  %s8734_s4 = smov 80   ;;  %v7651_v48 = vshrl.u32 %v221_v45, 7  ;;  %vm1162_vm4 = vcmask 523264   ;;  %vm4902_vm5 = vcmask 1040384   ;;  %vm4915_vm6 = vcmask 1041408  }
  0x1a   :  { %s8730_s28 = smov 112   ;;  %s8760_s0 = sld [smem:[#allocation6_spill]]  ;;  %vm5900_vm8 = vcmask 1045504   ;;  %vm5898_vm9 = vcmask 1043456   ;;  %vm5990_vm10 = vcmask 39936  }
  0x1b   :  { %v223_v50 = vsub.s32 0, %v7651_v48  ;;  %v563_v55 = vsub.s32 1, %v7651_v48  ;;  %s8724_s29 = smov 64   ;;  %s8726_s6 = smov 16   ;;  %vm4992_vm7 = vcmp.lt.s32.totalorder %v7651_v48, 2 }
  0x1c   :  { %87 = vadd.xlane.f32.xlu0 %v86_v3  ;;  %s8762_s3 = sld [smem:[#allocation14_spill]]  ;;  %s8763_s26 = smov 96  }
  0x1d   :  { %v129_v14 = vld [vmem:[%s8756_s1] sm:$0xff]  ;;  %v130_v15 = vld [vmem:[%s8756_s1 + $0x8] sm:$0xff]  ;;  %v131_v16 = vld [vmem:[%s8756_s1 + $0x10] sm:$0xff]  ;;  %s8764_s9 = smov 112   ;;  %s7447_s25 = smov [#allocation2]  }
  0x1e   :  { %v7008_v17 = vpack.c.bf16 %v130_v15, %v129_v14  ;;  %v132_v18 = vld [vmem:[%s8756_s1 + $0x18] sm:$0xff]  ;;  %v6129_v27 = vld [vmem:[%s8757_s2] ss:$0 sm:$0xff]  ;;  %s8728_s2 = smov 48  }
  0x1f   :  { %v7012_v19 = vpack.c.bf16 %v132_v18, %v131_v16  ;;  %v6130_v29 = vld [vmem:[%s8758_s7] ss:$0 sm:$0xff]  ;;  %s8761_s7 = sld [smem:[#allocation13_spill]] }
  0x20   :  { %7009 = vmatprep.subr.bf16.mxu0 %v7008_v17  ;;  %v6131_v37 = vld [vmem:[%s8759_s8] ss:$0 sm:$0xff] }
  0x21   :  { %7011 = vmatpush3.bf16.msra.mxu0 %v7008_v17  ;;  %v126_v46 = vld [vmem:[%s8760_s0] sm:$0x3] }
  0x22   :  { %7013 = vmatprep.subr.bf16.mxu0 %v7012_v19  ;;  %v127_v47 = vsub.f32 1.0, %v126_v46 }
  0x24   :  { %v128_v49 = vmul.f32 -1e+09, %v127_v47 }
  0x25   :  { %7015 = vmatpush3.bf16.msra.mxu0 %v7012_v19 }
  0x26   :  { %6593 = vmatprep.subr.mxu0 %v7436_v36  ;;  %v7654_v51 = vrot.slane %v128_v49, %v223_v50  ;;  %v7659_v57 = vrot.slane %v128_v49, %v563_v55 }
  0xa5   :  { %v85_v4 = vpop.xlane.xlu0 %84 }
  0xa6   :  { %v90_v5 = vmul.f32 0.03125, %v85_v4 }
  0xa8   :  { %v92_v6 = vsub.f32 %v78_v0, %v90_v5 }
  0xa9   :  { %v88_v7 = vpop.xlane.xlu0 %87 }
  0xaa   :  { %v91_v8 = vmul.f32 0.03125, %v88_v7  ;;  %v94_v9 = vmul.f32 %v92_v6, %v92_v6 }
  0xac   :  { %v93_v10 = vsub.f32 %v79_v1, %v91_v8  ;;  %v96_v11 = vsel %vm82_vm0, %v94_v9, 0.0 }
  0xad   :  { %97 = vadd.xlane.f32.xlu1 %v96_v11 }
  0xae   :  { %v95_v12 = vmul.f32 %v93_v10, %v93_v10 }
  0xb0   :  { %v99_v13 = vsel %vm82_vm0, %v95_v12, 0.0 }
  0xb1   :  { %100 = vadd.xlane.f32.xlu1 %v99_v13 }
 0x13a   :  { %v98_v20 = vpop.xlane.xlu1 %97 }
 0x13b   :  { %v102_v21 = vmul.f32 0.03125, %v98_v20 }
 0x13d   :  { %v104_v22 = vadd.f32 1e-12, %v102_v21 }
 0x13e   :  { %v101_v23 = vpop.xlane.xlu1 %100 }
 0x13f   :  { %7222 = vrsqrt.f32 %v104_v22  ;;  %v103_v24 = vmul.f32 0.03125, %v101_v23 }
 0x141   :  { %v105_v25 = vadd.f32 1e-12, %v103_v24 }
 0x143   :  { %7224 = vrsqrt.f32 %v105_v25 }
 0x149   :  { %v7223_v26 = vpop.eup %7222 }
 0x14a   :  { %v108_v28 = vmul.f32 %v7223_v26, %v92_v6 }
 0x14c   :  { %v116_v30 = vmul.f32 %v6129_v27, %v108_v28 }
 0x14d   :  { %v7225_v31 = vpop.eup %7224 }
 0x14e   :  { %v109_v32 = vmul.f32 %v7225_v31, %v93_v10  ;;  %v7606_v33 = vadd.f32 %v6130_v29, %v116_v30 }
 0x150   :  { %v117_v34 = vmul.f32 %v6129_v27, %v109_v32  ;;  %6570 = vmatprep.mubr.msk.f32.mxu0 %vm82_vm0, %v7606_v33 }
 0x152   :  { %v7610_v35 = vadd.f32 %v6130_v29, %v117_v34 }
 0x154   :  { %6571 = vmatmul.mubr.msk.f32.vlgmr.msra.gmra.mrb[0].mxu0 %vm82_vm0, %v7610_v35 }
 0x155   :  { %6595 = vmatprep.mubr.msk.f32.mxu0 %vm7437_vm1, %v7436_v36 }
 0x227   :  { %v6572_v38 = vpop.f32.mrb[0].mxu0 }
 0x228   :  { %v212_v39 = vpop.f32.mrb[1].mxu0  ;;  %v7629_v41 = vadd.f32 %v6572_v38, %v6131_v37 }
 0x229   :  { %v7623_v40 = vadd.f32 %v6131_v37, %v212_v39 }
 0x22b   :  { %226 = vrot.lane.b32.xlu0 %v7623_v40, %s8732_s27 }
 0x22f   :  { %393 = vrot.lane.b32.xlu0 %v7623_v40, %s8734_s4 }
 0x233   :  { %566 = vrot.lane.b32.xlu0 %v7629_v41, %s8732_s27  ;;  %s8765_s27 = smov 48  }
 0x237   :  { %729 = vrot.lane.b32.xlu0 %v7629_v41, %s8730_s28 }
 0x29d   :  { %v227_v42 = vpop.permute.xlu0 %226 }
 0x29e   :  { %6574 = vmatpush3.xpose.msk.msra.mxu1 %vm228_vm2, %v227_v42 }
 0x29f   :  { %6578 = vmatprep.subr.mxu1 %v7436_v36 }
 0x2a1   :  { %6576 = vmatmul.mubr.msk.f32.vlgmr.msra.gmra.mrb[0].mxu1 %vm228_vm2, %v7623_v40  ;;  %v394_v43 = vpop.permute.xlu0 %393 }
 0x2a2   :  { %6580 = vmatprep.mubr.msk.f32.mxu1 %vm7437_vm1, %v7436_v36 }
 0x2a5   :  { %v567_v44 = vpop.permute.xlu0 %566 }
 0x2a6   :  { %6594 = vmatpush3.xpose.msk.msra.mxu0 %vm228_vm2, %v567_v44 }
 0x2a7   :  { %6603 = vmatprep.subr.mxu0 %v7436_v36 }
 0x2a9   :  { %6596 = vmatmul.mubr.msk.f32.vlgmr.msra.gmra.mrb[2].mxu0 %vm228_vm2, %v7629_v41  ;;  %v730_v7 = vpop.permute.xlu0 %729 }
 0x2aa   :  { %6605 = vmatprep.mubr.msk.f32.mxu0 %vm7437_vm1, %v7436_v36 }
 0x374   :  { %v299_v52 = vpop.f32.mrb[0].mxu1 }
 0x375   :  { %v300_v53 = vadd.f32 %v299_v52, %v7654_v51  ;;  %v6577_v54 = vpop.f32.mrb[1].mxu1 }
 0x376   :  { %v900_v54 = vld [vmem:[%s8761_s7 + $0x8] sm:$0xff] }
 0x377   :  { %v304_v56 = vsel %vm303_vm3, %v300_v53, -inf }
 0x378   :  { %305 = vmax.xlane.f32.xlu1 %v304_v56  ;;  %v901_v56 = vld [vmem:[%s8761_s7 + $0x10] sm:$0xff] }
 0x37c   :  { %v638_v58 = vpop.f32.mrb[2].mxu0 }
 0x37d   :  { %v639_v59 = vadd.f32 %v638_v58, %v7659_v57  ;;  %v6597_v60 = vpop.f32.mrb[3].mxu0  ;;  %v902_v58 = vld [vmem:[%s8761_s7 + $0x18] sm:$0xff] }
 0x37f   :  { %v642_v61 = vsel %vm303_vm3, %v639_v59, -inf }
 0x380   :  { %643 = vmax.xlane.f32.xlu0 %v642_v61 }
 0x389   :  { %315 = vrot.lane.b32.xlu1 %v7623_v40, %s8724_s29 }
 0x38d   :  { %391 = vrot.lane.b32.xlu1 %v7623_v40, %s8730_s28  ;;  %s8766_s28 = smov 64  }
 0x405   :  { %v306_v62 = vpop.xlane.xlu1 %305 }
 0x406   :  { %v307_v63 = vsub.f32 %v300_v53, %v306_v62  ;;  %v899_v53 = vld [vmem:[%s8761_s7] sm:$0xff] }
 0x407   :  { %v7016_v55 = vpack.c.bf16 %v900_v54, %v899_v53  ;;  %v1149_v54 = vld [vmem:[%s8705_s14 + $0x10] sm:$0xff] }
 0x408   :  { %v308_v0 = vmul.f32 1.442695, %v307_v63 }
 0x409   :  { %v316_v1 = vpop.permute.xlu1 %315 }
 0x40a   :  { %7226 = vpow2.f32 %v308_v0  ;;  %6579 = vmatpush3.msra.mxu1 %v316_v1 }
 0x40b   :  { %6583 = vmatprep.subr.mxu1 %v7436_v36 }
 0x40d   :  { %v392_v4 = vpop.permute.xlu1 %391  ;;  %v644_v10 = vpop.xlane.xlu0 %643 }
 0x40e   :  { %v645_v11 = vsub.f32 %v639_v59, %v644_v10  ;;  %v7020_v59 = vpack.c.bf16 %v902_v58, %v901_v56  ;;  %v1151_v58 = vld [vmem:[%s8705_s14 + $0x20] sm:$0xff] }
 0x410   :  { %v646_v12 = vmul.f32 1.442695, %v645_v11 }
 0x414   :  { %v7227_v2 = vpop.eup %7226 }
 0x415   :  { %v310_v3 = vsel %vm303_vm3, %v7227_v2, 0.0 }
 0x416   :  { %311 = vadd.xlane.f32.xlu1 %v310_v3 }
 0x427   :  { %731 = vrot.lane.b32.xlu1 %v7629_v41, %s8734_s4 }
 0x4a3   :  { %v312_v5 = vpop.xlane.xlu1 %311 }
 0x4a4   :  { %7228 = vrcp.f32 %v312_v5 }
 0x4a5   :  { %7230 = vpow2.f32 %v646_v12 }
 0x4a7   :  { %v732_v6 = vpop.permute.xlu1 %731 }
 0x4a8   :  { %6604 = vmatpush3.xpose.msk.msra.mxu0 %vm228_vm2, %v732_v6  ;;  %v6146_v6 = vld [vmem:[%s8762_s3] ss:$0 sm:$0xff] }
 0x4a9   :  { %7017 = vmatprep.subr.bf16.mxu0 %v7016_v55 }
 0x4ab   :  { %6606 = vmatmul.mubr.msk.f32.vlgmr.msra.gmra.mrb[4].mxu0 %vm228_vm2, %v730_v7 }
 0x4ac   :  { %7019 = vmatpush3.bf16.msra.mxu0 %v7016_v55  ;;  %v1150_v55 = vld [vmem:[%s8705_s14 + $0x18] sm:$0xff] }
 0x4ad   :  { %7021 = vmatprep.subr.bf16.mxu0 %v7020_v59  ;;  %v7036_v56 = vpack.c.bf16 %v1150_v55, %v1149_v54 }
 0x4ae   :  { %v7229_v8 = vpop.eup %7228 }
 0x4af   :  { %v314_v9 = vmul.f32 %v7229_v8, %v7227_v2  ;;  %v7231_v23 = vpop.eup %7230 }
 0x4b0   :  { %v648_v24 = vsel %vm303_vm3, %v7231_v23, 0.0  ;;  %7023 = vmatpush3.bf16.msra.mxu0 %v7020_v59  ;;  %v1152_v59 = vld [vmem:[%s8705_s14 + $0x28] sm:$0xff] }
 0x4b1   :  { %6581 = vmatmul.mubr.msk.f32.vlgmr.msra.gmra.mrb[2].mxu1 %vm303_vm3, %v314_v9 }
 0x4b2   :  { %6584 = vmatpush3.xpose.msk.msra.mxu1 %vm228_vm2, %v394_v43  ;;  %6585 = vmatprep.mubr.msk.f32.mxu1 %vm7437_vm1, %v7436_v36 }
 0x4b3   :  { %6588 = vmatprep.subr.mxu1 %v7436_v36 }
 0x4b5   :  { %6586 = vmatmul.mubr.msk.f32.vlgmr.msra.gmra.mrb[4].mxu1 %vm228_vm2, %v392_v4 }
 0x4b6   :  { %6590 = vmatprep.mubr.msk.f32.mxu1 %vm7437_vm1, %v7436_v36 }
 0x57e   :  { %v803_v13 = vpop.f32.mrb[4].mxu0 }
 0x57f   :  { %v804_v14 = vadd.f32 %v803_v13, %v7659_v57  ;;  %v6607_v15 = vpop.f32.mrb[5].mxu0 }
 0x581   :  { %v807_v16 = vsel %vm303_vm3, %v804_v14, -inf }
 0x582   :  { %808 = vmax.xlane.f32.xlu0 %v807_v16 }
 0x584   :  { %v7683_v17 = vpop.f32.mrb[2].mxu1 }
 0x585   :  { %v6582_v18 = vpop.f32.mrb[3].mxu1 }
 0x588   :  { %v465_v19 = vpop.f32.mrb[4].mxu1 }
 0x589   :  { %v466_v20 = vadd.f32 %v465_v19, %v7654_v51  ;;  %v6587_v21 = vpop.f32.mrb[5].mxu1 }
 0x58b   :  { %v469_v22 = vsel %vm303_vm3, %v466_v20, -inf }
 0x58c   :  { %470 = vmax.xlane.f32.xlu1 %v469_v22 }
 0x590   :  { %649 = vadd.xlane.f32.xlu1 %v648_v24  ;;  %v1038_v24 = vld [vmem:[%s8703_s12 + $0x8] sm:$0xff] }
 0x5a1   :  { %480 = vrot.lane.b32.xlu1 %v7623_v40, %s8728_s2 }
 0x5a5   :  { %818 = vrot.lane.b32.xlu1 %v7629_v41, %s8728_s2  ;;  %s8767_s2 = smov 16  }
 0x60f   :  { %v809_v25 = vpop.xlane.xlu0 %808 }
 0x610   :  { %v810_v26 = vsub.f32 %v804_v14, %v809_v25  ;;  %v1039_v25 = vld [vmem:[%s8703_s12 + $0x10] sm:$0xff] }
 0x612   :  { %v811_v27 = vmul.f32 1.442695, %v810_v26 }
 0x614   :  { %7232 = vpow2.f32 %v811_v27  ;;  %v1040_v27 = vld [vmem:[%s8703_s12 + $0x18] sm:$0xff] }
 0x619   :  { %v471_v28 = vpop.xlane.xlu1 %470 }
 0x61a   :  { %v472_v29 = vsub.f32 %v466_v20, %v471_v28  ;;  %v7028_v28 = vpack.c.bf16 %v1040_v27, %v1039_v25 }
 0x61c   :  { %v473_v30 = vmul.f32 1.442695, %v472_v29 }
 0x61d   :  { %v650_v31 = vpop.xlane.xlu1 %649 }
 0x61e   :  { %v7233_v32 = vpop.eup %7232  ;;  %7234 = vpow2.f32 %v473_v30 }
 0x61f   :  { %v813_v34 = vsel %vm303_vm3, %v7233_v32, 0.0 }
 0x620   :  { %814 = vadd.xlane.f32.xlu0 %v813_v34 }
 0x621   :  { %v481_v37 = vpop.permute.xlu1 %480 }
 0x622   :  { %6589 = vmatpush3.msra.mxu1 %v481_v37 }
 0x623   :  { %6598 = vmatprep.subr.mxu1 %v7436_v36 }
 0x628   :  { %v7235_v38 = vpop.eup %7234 }
 0x629   :  { %v475_v39 = vsel %vm303_vm3, %v7235_v38, 0.0 }
 0x62a   :  { %476 = vadd.xlane.f32.xlu0 %v475_v39  ;;  %v6149_v39 = vld [vmem:[%s8701_s10] ss:$0 sm:$0xff] }
 0x640   :  { %653 = vrot.lane.b32.xlu0 %v7629_v41, %s8724_s29  ;;  %v819_v41 = vpop.permute.xlu1 %818  ;;  %s8769_s29 = sld [smem:[#allocation7_spill]] }
 0x6ad   :  { %v815_v40 = vpop.xlane.xlu0 %814 }
 0x6b7   :  { %v477_v42 = vpop.xlane.xlu0 %476 }
 0x6b8   :  { %7236 = vrcp.f32 %v477_v42  ;;  %v6150_v42 = vld [vmem:[%s8702_s11] ss:$0 sm:$0xff] }
 0x6b9   :  { %7238 = vrcp.f32 %v650_v31 }
 0x6ba   :  { %7240 = vrcp.f32 %v815_v40 }
 0x6bb   :  { %v654_v47 = vpop.permute.xlu0 %653 }
 0x6c2   :  { %v7237_v43 = vpop.eup %7236 }
 0x6c3   :  { %v479_v44 = vmul.f32 %v7237_v43, %v7235_v38  ;;  %v7239_v46 = vpop.eup %7238 }
 0x6c4   :  { %v652_v49 = vmul.f32 %v7239_v46, %v7231_v23  ;;  %v7241_v50 = vpop.eup %7240 }
 0x6c5   :  { %6591 = vmatmul.mubr.msk.f32.vlgmr.msra.gmra.mrb[6].mxu1 %vm303_vm3, %v479_v44  ;;  %v817_v52 = vmul.f32 %v7241_v50, %v7233_v32 }
 0x6c6   :  { %6599 = vmatpush3.msra.mxu1 %v654_v47  ;;  %6600 = vmatprep.mubr.msk.f32.mxu1 %vm7437_vm1, %v7436_v36 }
 0x6c7   :  { %6608 = vmatprep.subr.mxu1 %v7436_v36 }
 0x6c9   :  { %6601 = vmatmul.mubr.msk.f32.vlgmr.msra.gmra.mrb[8].mxu1 %vm303_vm3, %v652_v49 }
 0x6ca   :  { %6609 = vmatpush3.msra.mxu1 %v819_v41  ;;  %6610 = vmatprep.mubr.msk.f32.mxu1 %vm7437_vm1, %v7436_v36  ;;  %v1147_v41 = vld [vmem:[%s8705_s14] sm:$0xff] }
 0x6cd   :  { %6611 = vmatmul.mubr.msk.f32.vlgmr.msra.gmra.mrb[10].mxu1 %vm303_vm3, %v817_v52  ;;  %v1148_v52 = vld [vmem:[%s8705_s14 + $0x8] sm:$0xff] }
 0x6ce   :  { %v7032_v53 = vpack.c.bf16 %v1148_v52, %v1147_v41 }
 0x6d0   :  { %7033 = vmatprep.subr.bf16.mxu0 %v7032_v53 }
 0x798   :  { %v552_v60 = vpop.f32.mrb[6].mxu1 }
 0x799   :  { %557 = vrot.lane.b32.xlu1 %v552_v60, %s8726_s6  ;;  %v6592_v61 = vpop.f32.mrb[7].mxu1  ;;  %v7040_v60 = vpack.c.bf16 %v1152_v59, %v1151_v58 }
 0x79a   :  { %v1153_v61 = vld [vmem:[%s8705_s14 + $0x30] sm:$0xff] }
 0x79c   :  { %v725_v62 = vpop.f32.mrb[8].mxu1 }
 0x79d   :  { %v6602_v63 = vpop.f32.mrb[9].mxu1 }
 0x7a0   :  { %v890_v0 = vpop.f32.mrb[10].mxu1 }
 0x7a1   :  { %895 = vrot.lane.b32.xlu1 %v890_v0, %s8726_s6  ;;  %v6612_v1 = vpop.f32.mrb[11].mxu1  ;;  %v6151_v0 = vld [vmem:[%s8704_s13] ss:$0 sm:$0xff]  ;;  %s8768_s6 = smov 80  }
 0x80b   :  { %v558_v2 = vpop.permute.xlu1 %557 }
 0x80c   :  { %v560_v3 = vsel %vm228_vm2, %v7683_v17, %v558_v2 }
 0x80d   :  { %6621 = vmatprep.mubr.msk.f32.mxu0 %vm82_vm0, %v560_v3 }
 0x813   :  { %v896_v4 = vpop.permute.xlu1 %895 }
 0x814   :  { %v898_v5 = vsel %vm228_vm2, %v725_v62, %v896_v4  ;;  %v1154_v62 = vld [vmem:[%s8705_s14 + $0x38] sm:$0xff] }
 0x815   :  { %6622 = vmatmul.mubr.msk.f32.vlgmr.msra.gmra.mrb[6].mxu0 %vm82_vm0, %v898_v5  ;;  %v7044_v63 = vpack.c.bf16 %v1154_v62, %v1153_v61 }
 0x816   :  { %7035 = vmatpush3.bf16.msra.mxu0 %v7032_v53 }
 0x817   :  { %7037 = vmatprep.subr.bf16.mxu0 %v7036_v56 }
 0x81a   :  { %7039 = vmatpush3.bf16.msra.mxu0 %v7036_v56 }
 0x81b   :  { %7041 = vmatprep.subr.bf16.mxu0 %v7040_v60 }
 0x81e   :  { %7043 = vmatpush3.bf16.msra.mxu0 %v7040_v60  ;;  %v6157_v60 = vld [vmem:[%s8707_s16] ss:$0 sm:$0xff] }
 0x81f   :  { %7045 = vmatprep.subr.bf16.mxu0 %v7044_v63 }
 0x822   :  { %7047 = vmatpush3.bf16.msra.mxu0 %v7044_v63 }
 0x823   :  { %6675 = vmatprep.subr.mxu0 %v7436_v36 }
 0x8e8   :  { %v6623_v7 = vpop.f32.mrb[6].mxu0 }
 0x8e9   :  { %v988_v8 = vadd.f32 %v6623_v7, %v6146_v6  ;;  %v982_v9 = vpop.f32.mrb[7].mxu0 }
 0x8ea   :  { %v983_v10 = vadd.f32 %v6146_v6, %v982_v9 }
 0x8eb   :  { %v992_v11 = vadd.f32 %v988_v8, %v7610_v35 }
 0x8ec   :  { %v991_v12 = vadd.f32 %v983_v10, %v7606_v33  ;;  %v1037_v33 = vld [vmem:[%s8703_s12] sm:$0xff] }
 0x8ed   :  { %v998_v13 = vsel %vm82_vm0, %v992_v11, 0.0  ;;  %v7024_v26 = vpack.c.bf16 %v1038_v24, %v1037_v33 }
 0x8ee   :  { %999 = vadd.xlane.f32.xlu1 %v998_v13  ;;  %v995_v14 = vsel %vm82_vm0, %v991_v12, 0.0 }
 0x8ef   :  { %996 = vadd.xlane.f32.xlu0 %v995_v14  ;;  %7025 = vmatprep.subr.bf16.mxu1 %v7024_v26 }
 0x8f0   :  { %7027 = vmatpush3.bf16.msra.mxu1 %v7024_v26 }
 0x8f1   :  { %7029 = vmatprep.subr.bf16.mxu1 %v7028_v28 }
 0x8f4   :  { %7031 = vmatpush3.bf16.msra.mxu1 %v7028_v28 }
 0x97b   :  { %v1000_v15 = vpop.xlane.xlu1 %999 }
 0x97c   :  { %v1002_v16 = vmul.f32 0.03125, %v1000_v15  ;;  %v997_v17 = vpop.xlane.xlu0 %996 }
 0x97d   :  { %v1001_v18 = vmul.f32 0.03125, %v997_v17 }
 0x97e   :  { %v1004_v19 = vsub.f32 %v992_v11, %v1002_v16 }
 0x97f   :  { %v1003_v20 = vsub.f32 %v991_v12, %v1001_v18 }
 0x980   :  { %v1006_v23 = vmul.f32 %v1004_v19, %v1004_v19 }
 0x981   :  { %v1005_v21 = vmul.f32 %v1003_v20, %v1003_v20 }
 0x982   :  { %v1010_v35 = vsel %vm82_vm0, %v1006_v23, 0.0  ;;  %v6154_v23 = vld [vmem:[%s8706_s15] ss:$0 sm:$0xff] }
 0x983   :  { %v1007_v22 = vsel %vm82_vm0, %v1005_v21, 0.0 }
 0x984   :  { %1008 = vadd.xlane.f32.xlu0 %v1007_v22 }
 0x988   :  { %1011 = vadd.xlane.f32.xlu0 %v1010_v35 }
 0xa11   :  { %v1009_v29 = vpop.xlane.xlu0 %1008 }
 0xa12   :  { %v1013_v30 = vmul.f32 0.03125, %v1009_v29 }
 0xa14   :  { %v1015_v31 = vadd.f32 1e-12, %v1013_v30 }
 0xa15   :  { %v1012_v32 = vpop.xlane.xlu0 %1011 }
 0xa16   :  { %7242 = vrsqrt.f32 %v1015_v31  ;;  %v1014_v34 = vmul.f32 0.03125, %v1012_v32 }
 0xa18   :  { %v1016_v37 = vadd.f32 1e-12, %v1014_v34 }
 0xa1a   :  { %7244 = vrsqrt.f32 %v1016_v37 }
 0xa20   :  { %v7243_v38 = vpop.eup %7242 }
 0xa21   :  { %v1019_v40 = vmul.f32 %v7243_v38, %v1003_v20 }
 0xa23   :  { %v1027_v43 = vmul.f32 %v6149_v39, %v1019_v40 }
 0xa24   :  { %v7245_v44 = vpop.eup %7244 }
 0xa25   :  { %v1020_v46 = vmul.f32 %v7245_v44, %v1004_v19  ;;  %v1035_v47 = vadd.f32 %v6150_v42, %v1027_v43  ;;  %v6159_v44 = vld [vmem:[%s8756_s1 + $0x20] sm:$0xff] }
 0xa27   :  { %v1028_v49 = vmul.f32 %v6149_v39, %v1020_v46  ;;  %6632 = vmatprep.mubr.msk.f32.mxu1 %vm82_vm0, %v1035_v47  ;;  %v6160_v46 = vld [vmem:[%s8756_s1 + $0x28] sm:$0xff] }
 0xa29   :  { %v1036_v50 = vadd.f32 %v6150_v42, %v1028_v49  ;;  %v7048_v49 = vpack.c.bf16 %v6160_v46, %v6159_v44 }
 0xa2b   :  { %6633 = vmatmul.mubr.msk.f32.vlgmr.msra.gmra.mrb[12].mxu1 %vm82_vm0, %v1036_v50  ;;  %7049 = vmatprep.subr.bf16.mxu1 %v7048_v49 }
 0xa2c   :  { %7051 = vmatpush3.bf16.msra.mxu1 %v7048_v49 }
 0xafe   :  { %v6634_v1 = vpop.f32.mrb[12].mxu1 }
 0xaff   :  { %v1126_v2 = vadd.f32 %v6634_v1, %v6151_v0  ;;  %v1120_v3 = vpop.f32.mrb[13].mxu1 }
 0xb00   :  { %v1121_v4 = vadd.f32 %v6151_v0, %v1120_v3  ;;  %v6158_v0 = vld [vmem:[%s8708_s17] ss:$0 sm:$0xff] }
 0xb01   :  { %v1132_v5 = vmul.f32 0.044715, %v1126_v2  ;;  %v1130_v20 = vmul.f32 0.5, %v1126_v2 }
 0xb02   :  { %v1131_v6 = vmul.f32 0.044715, %v1121_v4  ;;  %v1129_v18 = vmul.f32 0.5, %v1121_v4 }
 0xb03   :  { %v1134_v7 = vmul.f32 %v1132_v5, %v1126_v2  ;;  %v6164_v5 = vld [vmem:[%s8759_s8 + $0x1] ss:$0 sm:$0xff] }
 0xb04   :  { %v1133_v8 = vmul.f32 %v1131_v6, %v1121_v4 }
 0xb05   :  { %v1136_v9 = vmul.f32 %v1134_v7, %v1126_v2 }
 0xb06   :  { %v1135_v10 = vmul.f32 %v1133_v8, %v1121_v4 }
 0xb07   :  { %v1138_v11 = vadd.f32 %v1136_v9, %v1126_v2 }
 0xb08   :  { %v1137_v12 = vadd.f32 %v1135_v10, %v1121_v4 }
 0xb09   :  { %v1140_v13 = vmul.f32 0.7978846, %v1138_v11 }
 0xb0a   :  { %v1139_v14 = vmul.f32 0.7978846, %v1137_v12 }
 0xb0b   :  { %7246 = vtanh.f32 %v1140_v13 }
 0xb0c   :  { %7248 = vtanh.f32 %v1139_v14 }
 0xb15   :  { %v7247_v15 = vpop.eup %7246 }
 0xb16   :  { %v7249_v16 = vpop.eup %7248  ;;  %v1144_v17 = vadd.f32 1.0, %v7247_v15 }
 0xb17   :  { %v1143_v19 = vadd.f32 1.0, %v7249_v16 }
 0xb18   :  { %v1146_v22 = vmul.f32 %v1144_v17, %v1130_v20 }
 0xb19   :  { %v1145_v21 = vmul.f32 %v1143_v19, %v1129_v18 }
 0xb1b   :  { %6651 = vmatprep.mubr.msk.f32.mxu0 %vm1162_vm4, %v1145_v21 }
 0xb1c   :  { %6652 = vmatmul.mubr.msk.f32.vlgmr.msra.gmra.mrb[8].mxu0 %vm1162_vm4, %v1146_v22 }
 0xb1d   :  { %6677 = vmatprep.mubr.msk.f32.mxu0 %vm7437_vm1, %v7436_v36 }
 0xbef   :  { %v6653_v35 = vpop.f32.mrb[8].mxu0 }
 0xbf0   :  { %v1241_v33 = vadd.f32 %v6653_v35, %v6154_v23  ;;  %v1235_v24 = vpop.f32.mrb[9].mxu0 }
 0xbf1   :  { %v1236_v25 = vadd.f32 %v6154_v23, %v1235_v24 }
 0xbf2   :  { %v1245_v26 = vadd.f32 %v1241_v33, %v1036_v50  ;;  %v6162_v50 = vld [vmem:[%s8756_s1 + $0x38] sm:$0xff] }
 0xbf3   :  { %v1244_v27 = vadd.f32 %v1236_v25, %v1035_v47  ;;  %v6161_v47 = vld [vmem:[%s8756_s1 + $0x30] sm:$0xff] }
 0xbf4   :  { %v1251_v28 = vsel %vm82_vm0, %v1245_v26, 0.0  ;;  %v7052_v41 = vpack.c.bf16 %v6162_v50, %v6161_v47 }
 0xbf5   :  { %1252 = vadd.xlane.f32.xlu1 %v1251_v28  ;;  %v1248_v29 = vsel %vm82_vm0, %v1244_v27, 0.0 }
 0xbf6   :  { %1249 = vadd.xlane.f32.xlu0 %v1248_v29  ;;  %7053 = vmatprep.subr.bf16.mxu1 %v7052_v41 }
 0xbf7   :  { %7055 = vmatpush3.bf16.msra.mxu1 %v7052_v41 }
 0xbf8   :  { %6665 = vmatprep.subr.mxu1 %v7436_v36 }
 0xc82   :  { %v1253_v30 = vpop.xlane.xlu1 %1252 }
 0xc83   :  { %v1255_v31 = vmul.f32 0.03125, %v1253_v30  ;;  %v1250_v32 = vpop.xlane.xlu0 %1249 }
 0xc84   :  { %v1254_v34 = vmul.f32 0.03125, %v1250_v32 }
 0xc85   :  { %v1257_v37 = vsub.f32 %v1245_v26, %v1255_v31 }
 0xc86   :  { %v1256_v38 = vsub.f32 %v1244_v27, %v1254_v34 }
 0xc87   :  { %v1259_v39 = vmul.f32 %v1257_v37, %v1257_v37 }
 0xc88   :  { %v1258_v40 = vmul.f32 %v1256_v38, %v1256_v38 }
 0xc89   :  { %v1263_v42 = vsel %vm82_vm0, %v1259_v39, 0.0 }
 0xc8a   :  { %1264 = vadd.xlane.f32.xlu1 %v1263_v42  ;;  %v1260_v43 = vsel %vm82_vm0, %v1258_v40, 0.0 }
 0xc8b   :  { %1261 = vadd.xlane.f32.xlu0 %v1260_v43 }
 0xd17   :  { %v1265_v52 = vpop.xlane.xlu1 %1264 }
 0xd18   :  { %v1267_v53 = vmul.f32 0.03125, %v1265_v52  ;;  %v1262_v54 = vpop.xlane.xlu0 %1261 }
 0xd19   :  { %v1266_v55 = vmul.f32 0.03125, %v1262_v54 }
 0xd1a   :  { %v1269_v56 = vadd.f32 1e-12, %v1267_v53 }
 0xd1b   :  { %v1268_v58 = vadd.f32 1e-12, %v1266_v55 }
 0xd1c   :  { %7250 = vrsqrt.f32 %v1269_v56 }
 0xd1d   :  { %7252 = vrsqrt.f32 %v1268_v58 }
 0xd26   :  { %v7251_v59 = vpop.eup %7250 }
 0xd27   :  { %v7253_v61 = vpop.eup %7252  ;;  %v1273_v62 = vmul.f32 %v7251_v59, %v1257_v37 }
 0xd28   :  { %v1272_v63 = vmul.f32 %v7253_v61, %v1256_v38 }
 0xd29   :  { %v1281_v1 = vmul.f32 %v6157_v60, %v1273_v62 }
 0xd2a   :  { %v1280_v2 = vmul.f32 %v6157_v60, %v1272_v63 }
 0xd2b   :  { %v7813_v4 = vadd.f32 %v6158_v0, %v1281_v1 }
 0xd2c   :  { %v7811_v3 = vadd.f32 %v6158_v0, %v1280_v2 }
 0xd2e   :  { %6662 = vmatprep.mubr.msk.f32.mxu1 %vm82_vm0, %v7811_v3 }
 0xd2f   :  { %6663 = vmatmul.mubr.msk.f32.vlgmr.msra.gmra.mrb[14].mxu1 %vm82_vm0, %v7813_v4 }
 0xd30   :  { %6667 = vmatprep.mubr.msk.f32.mxu1 %vm7437_vm1, %v7436_v36 }
 0xe02   :  { %v6664_v6 = vpop.f32.mrb[14].mxu1 }
 0xe03   :  { %v1375_v7 = vpop.f32.mrb[15].mxu1  ;;  %v7830_v9 = vadd.f32 %v6664_v6, %v6164_v5 }
 0xe04   :  { %v7824_v8 = vadd.f32 %v6164_v5, %v1375_v7 }
 0xe06   :  { %1550 = vrot.lane.b32.xlu1 %v7824_v8, %s8734_s4  ;;  %1385 = vrot.lane.b32.xlu0 %v7824_v8, %s8763_s26 }
 0xe0a   :  { %1548 = vrot.lane.b32.xlu1 %v7824_v8, %s8764_s9  ;;  %1884 = vrot.lane.b32.xlu0 %v7830_v9, %s8734_s4 }
 0xe0e   :  { %1719 = vrot.lane.b32.xlu1 %v7830_v9, %s8763_s26 }
 0xe12   :  { %1882 = vrot.lane.b32.xlu1 %v7830_v9, %s8764_s9 }
 0xe78   :  { %v1551_v10 = vpop.permute.xlu1 %1550  ;;  %v1386_v11 = vpop.permute.xlu0 %1385 }
 0xe79   :  { %6666 = vmatpush3.xpose.msk.msra.mxu1 %vm228_vm2, %v1386_v11  ;;  %6676 = vmatpush3.xpose.msk.msra.mxu0 %vm228_vm2, %v1551_v10  ;;  %v6179_v11 = vld [vmem:[%s8761_s7 + $0x20] sm:$0xff] }
 0xe7a   :  { %6685 = vmatprep.subr.mxu0 %v7436_v36  ;;  %6670 = vmatprep.subr.mxu1 %v7436_v36 }
 0xe7c   :  { %v1549_v12 = vpop.permute.xlu1 %1548  ;;  %6668 = vmatmul.mubr.msk.f32.vlgmr.msra.gmra.mrb[16].mxu1 %vm228_vm2, %v7824_v8  ;;  %v1885_v14 = vpop.permute.xlu0 %1884 }
 0xe7d   :  { %6678 = vmatmul.mubr.msk.f32.vlgmr.msra.gmra.mrb[10].mxu0 %vm228_vm2, %v1549_v12  ;;  %6672 = vmatprep.mubr.msk.f32.mxu1 %vm7437_vm1, %v7436_v36  ;;  %v6180_v12 = vld [vmem:[%s8761_s7 + $0x28] sm:$0xff] }
 0xe7e   :  { %6687 = vmatprep.mubr.msk.f32.mxu0 %vm7437_vm1, %v7436_v36 }
 0xe80   :  { %v1720_v13 = vpop.permute.xlu1 %1719 }
 0xe81   :  { %6686 = vmatpush3.xpose.msk.msra.mxu0 %vm228_vm2, %v1720_v13  ;;  %v6181_v13 = vld [vmem:[%s8761_s7 + $0x30] sm:$0xff] }
 0xe82   :  { %6695 = vmatprep.subr.mxu0 %v7436_v36 }
 0xe84   :  { %6688 = vmatmul.mubr.msk.f32.vlgmr.msra.gmra.mrb[12].mxu0 %vm228_vm2, %v7830_v9  ;;  %v1883_v15 = vpop.permute.xlu1 %1882 }
 0xe85   :  { %6696 = vmatpush3.xpose.msk.msra.mxu0 %vm228_vm2, %v1885_v14  ;;  %6697 = vmatprep.mubr.msk.f32.mxu0 %vm7437_vm1, %v7436_v36  ;;  %v7056_v14 = vpack.c.bf16 %v6180_v12, %v6179_v11 }
 0xe87   :  { %7057 = vmatprep.subr.bf16.mxu0 %v7056_v14 }
 0xe88   :  { %6698 = vmatmul.mubr.msk.f32.vlgmr.msra.gmra.mrb[14].mxu0 %vm228_vm2, %v1883_v15  ;;  %v6182_v15 = vld [vmem:[%s8761_s7 + $0x38] sm:$0xff] }
 0xe89   :  { %7059 = vmatpush3.bf16.msra.mxu0 %v7056_v14  ;;  %v6200_v14 = vld [vmem:[%s8705_s14 + $0x48] sm:$0xff] }
 0xf4f   :  { %v1457_v16 = vpop.f32.mrb[16].mxu1 }
 0xf50   :  { %v1458_v17 = vadd.f32 %v1457_v16, %v7654_v51  ;;  %v6669_v18 = vpop.f32.mrb[17].mxu1  ;;  %v1622_v19 = vpop.f32.mrb[10].mxu0  ;;  %v7060_v16 = vpack.c.bf16 %v6182_v15, %v6181_v13  ;;  %v6199_v13 = vld [vmem:[%s8705_s14 + $0x40] sm:$0xff] }
 0xf51   :  { %v1623_v20 = vadd.f32 %v1622_v19, %v7654_v51  ;;  %v6679_v21 = vpop.f32.mrb[11].mxu0  ;;  %v7072_v15 = vpack.c.bf16 %v6200_v14, %v6199_v13  ;;  %v6218_v14 = vld [vmem:[%s8756_s1 + $0x58] sm:$0xff] }
 0xf52   :  { %v1461_v22 = vsel %vm303_vm3, %v1458_v17, -inf  ;;  %7061 = vmatprep.subr.bf16.mxu0 %v7060_v16 }
 0xf53   :  { %1462 = vmax.xlane.f32.xlu0 %v1461_v22  ;;  %v1626_v23 = vsel %vm303_vm3, %v1623_v20, -inf  ;;  %7063 = vmatpush3.bf16.msra.mxu0 %v7060_v16  ;;  %v6201_v16 = vld [vmem:[%s8705_s14 + $0x50] sm:$0xff] }
 0xf54   :  { %1627 = vmax.xlane.f32.xlu1 %v1626_v23  ;;  %7073 = vmatprep.subr.bf16.mxu0 %v7072_v15 }
 0xf57   :  { %v1791_v35 = vpop.f32.mrb[12].mxu0 }
 0xf58   :  { %v1792_v33 = vadd.f32 %v1791_v35, %v7659_v57  ;;  %v6689_v24 = vpop.f32.mrb[13].mxu0 }
 0xf5a   :  { %v1795_v25 = vsel %vm303_vm3, %v1792_v33, -inf }
 0xf5b   :  { %1796 = vmax.xlane.f32.xlu0 %v1795_v25  ;;  %v1956_v26 = vpop.f32.mrb[14].mxu0 }
 0xf5c   :  { %v1957_v27 = vadd.f32 %v1956_v26, %v7659_v57  ;;  %v6699_v28 = vpop.f32.mrb[15].mxu0 }
 0xf5e   :  { %v1960_v29 = vsel %vm303_vm3, %v1957_v27, -inf }
 0xf5f   :  { %1961 = vmax.xlane.f32.xlu0 %v1960_v29 }
 0xfe0   :  { %v1463_v30 = vpop.xlane.xlu0 %1462 }
 0xfe1   :  { %v1464_v31 = vsub.f32 %v1458_v17, %v1463_v30  ;;  %v1628_v32 = vpop.xlane.xlu1 %1627 }
 0xfe2   :  { %v1629_v34 = vsub.f32 %v1623_v20, %v1628_v32 }
 0xfe3   :  { %v1465_v37 = vmul.f32 1.442695, %v1464_v31 }
 0xfe4   :  { %v1630_v38 = vmul.f32 1.442695, %v1629_v34 }
 0xfe5   :  { %7254 = vpow2.f32 %v1465_v37 }
 0xfe6   :  { %7256 = vpow2.f32 %v1630_v38 }
 0xfe8   :  { %v1797_v39 = vpop.xlane.xlu0 %1796 }
 0xfe9   :  { %v1798_v40 = vsub.f32 %v1792_v33, %v1797_v39 }
 0xfeb   :  { %v1799_v42 = vmul.f32 1.442695, %v1798_v40 }
 0xfec   :  { %v1962_v41 = vpop.xlane.xlu0 %1961 }
 0xfed   :  { %7258 = vpow2.f32 %v1799_v42  ;;  %v1963_v52 = vsub.f32 %v1957_v27, %v1962_v41  ;;  %v6184_v27 = vld [vmem:[%s8762_s3 + $0x1] ss:$0 sm:$0xff] }
 0xfef   :  { %v7255_v43 = vpop.eup %7254  ;;  %v1964_v53 = vmul.f32 1.442695, %v1963_v52  ;;  %v6191_v52 = vld [vmem:[%s8703_s12 + $0x20] sm:$0xff] }
 0xff0   :  { %v7257_v44 = vpop.eup %7256  ;;  %v1467_v46 = vsel %vm303_vm3, %v7255_v43, 0.0 }
 0xff1   :  { %1468 = vadd.xlane.f32.xlu0 %v1467_v46  ;;  %v1632_v47 = vsel %vm303_vm3, %v7257_v44, 0.0  ;;  %7260 = vpow2.f32 %v1964_v53  ;;  %v6192_v53 = vld [vmem:[%s8703_s12 + $0x28] sm:$0xff] }
 0xff2   :  { %1633 = vadd.xlane.f32.xlu1 %v1632_v47 }
 0xff7   :  { %v7259_v49 = vpop.eup %7258 }
 0xff8   :  { %v1801_v50 = vsel %vm303_vm3, %v7259_v49, 0.0 }
 0xff9   :  { %1802 = vadd.xlane.f32.xlu0 %v1801_v50 }
 0xffb   :  { %v7261_v54 = vpop.eup %7260 }
 0xffc   :  { %v1966_v55 = vsel %vm303_vm3, %v7261_v54, 0.0 }
0x1003   :  { %1637 = vrot.lane.b32.xlu1 %v7824_v8, %s8765_s27 }
0x1007   :  { %1806 = vrot.lane.b32.xlu1 %v7830_v9, %s8766_s28 }
0x100f   :  { %1472 = vrot.lane.b32.xlu0 %v7824_v8, %s8766_s28 }
0x102b   :  { %1967 = vadd.xlane.f32.xlu1 %v1966_v55  ;;  %v7064_v55 = vpack.c.bf16 %v6192_v53, %v6191_v52  ;;  %v6208_v52 = vld [vmem:[%s8706_s15 + $0x1] ss:$0 sm:$0xff] }
0x103c   :  { %1971 = vrot.lane.b32.xlu1 %v7830_v9, %s8765_s27 }
0x107e   :  { %v1469_v56 = vpop.xlane.xlu0 %1468 }
0x107f   :  { %7262 = vrcp.f32 %v1469_v56  ;;  %v1634_v58 = vpop.xlane.xlu1 %1633  ;;  %v6194_v56 = vld [vmem:[%s8703_s12 + $0x38] sm:$0xff] }
0x1080   :  { %7264 = vrcp.f32 %v1634_v58 }
0x1083   :  { %v1638_v61 = vpop.permute.xlu1 %1637 }
0x1086   :  { %v1803_v59 = vpop.xlane.xlu0 %1802 }
0x1087   :  { %7266 = vrcp.f32 %v1803_v59  ;;  %v1807_v2 = vpop.permute.xlu1 %1806 }
0x1089   :  { %v7263_v60 = vpop.eup %7262 }
0x108a   :  { %v1473_v62 = vpop.permute.xlu0 %1472  ;;  %v1471_v63 = vmul.f32 %v7263_v60, %v7255_v43  ;;  %v7265_v0 = vpop.eup %7264 }
0x108b   :  { %6671 = vmatpush3.msra.mxu1 %v1473_v62  ;;  %v1636_v1 = vmul.f32 %v7265_v0, %v7257_v44 }
0x108c   :  { %6673 = vmatmul.mubr.msk.f32.vlgmr.msra.gmra.mrb[18].mxu1 %vm303_vm3, %v1471_v63  ;;  %6680 = vmatprep.subr.mxu1 %v7436_v36 }
0x108d   :  { %6681 = vmatpush3.msra.mxu1 %v1638_v61  ;;  %6682 = vmatprep.mubr.msk.f32.mxu1 %vm7437_vm1, %v7436_v36 }
0x108e   :  { %6690 = vmatprep.subr.mxu1 %v7436_v36 }
0x1090   :  { %6683 = vmatmul.mubr.msk.f32.vlgmr.msra.gmra.mrb[20].mxu1 %vm303_vm3, %v1636_v1 }
0x1091   :  { %v7267_v5 = vpop.eup %7266  ;;  %6691 = vmatpush3.msra.mxu1 %v1807_v2  ;;  %6692 = vmatprep.mubr.msk.f32.mxu1 %vm7437_vm1, %v7436_v36  ;;  %v6189_v2 = vld [vmem:[%s8701_s10 + $0x1] ss:$0 sm:$0xff] }
0x1092   :  { %v1805_v6 = vmul.f32 %v7267_v5, %v7259_v49  ;;  %6700 = vmatprep.subr.mxu1 %v7436_v36 }
0x1094   :  { %6693 = vmatmul.mubr.msk.f32.vlgmr.msra.gmra.mrb[22].mxu1 %vm303_vm3, %v1805_v6  ;;  %v6190_v6 = vld [vmem:[%s8702_s11 + $0x1] ss:$0 sm:$0xff] }
0x1095   :  { %6702 = vmatprep.mubr.msk.f32.mxu1 %vm7437_vm1, %v7436_v36 }
0x10b8   :  { %v1968_v7 = vpop.xlane.xlu1 %1967 }
0x10b9   :  { %7268 = vrcp.f32 %v1968_v7 }
0x10bc   :  { %v1972_v8 = vpop.permute.xlu1 %1971 }
0x10bd   :  { %6701 = vmatpush3.msra.mxu1 %v1972_v8 }
0x10be   :  { %7065 = vmatprep.subr.bf16.mxu1 %v7064_v55 }
0x10c3   :  { %v7269_v9 = vpop.eup %7268 }
0x10c4   :  { %v1970_v10 = vmul.f32 %v7269_v9, %v7261_v54  ;;  %v6193_v54 = vld [vmem:[%s8703_s12 + $0x30] sm:$0xff] }
0x10c5   :  { %v7068_v58 = vpack.c.bf16 %v6194_v56, %v6193_v54 }
0x10c6   :  { %6703 = vmatmul.mubr.msk.f32.vlgmr.msra.gmra.mrb[24].mxu1 %vm303_vm3, %v1970_v10 }
0x10c7   :  { %7067 = vmatpush3.bf16.msra.mxu1 %v7064_v55 }
0x10c8   :  { %7069 = vmatprep.subr.bf16.mxu1 %v7068_v58 }
0x10cb   :  { %7071 = vmatpush3.bf16.msra.mxu1 %v7068_v58 }
0x115f   :  { %v1544_v17 = vpop.f32.mrb[18].mxu1 }
0x1160   :  { %v6674_v18 = vpop.f32.mrb[19].mxu1 }
0x1163   :  { %v1709_v19 = vpop.f32.mrb[20].mxu1 }
0x1164   :  { %1714 = vrot.lane.b32.xlu0 %v1709_v19, %s8767_s2  ;;  %v6684_v20 = vpop.f32.mrb[21].mxu1  ;;  %v6203_v19 = vld [vmem:[%s8705_s14 + $0x60] sm:$0xff] }
0x1165   :  { %v6204_v20 = vld [vmem:[%s8705_s14 + $0x68] sm:$0xff] }
0x1167   :  { %v1878_v21 = vpop.f32.mrb[22].mxu1 }
0x1168   :  { %v6694_v22 = vpop.f32.mrb[23].mxu1 }
0x1169   :  { %v6205_v22 = vld [vmem:[%s8705_s14 + $0x70] sm:$0xff] }
0x1199   :  { %v2043_v23 = vpop.f32.mrb[24].mxu1 }
0x119a   :  { %2048 = vrot.lane.b32.xlu1 %v2043_v23, %s8767_s2  ;;  %v6704_v35 = vpop.f32.mrb[25].mxu1  ;;  %v6206_v23 = vld [vmem:[%s8705_s14 + $0x78] sm:$0xff] }
0x119b   :  { %v7084_v35 = vpack.c.bf16 %v6206_v23, %v6205_v22  ;;  %v6213_v23 = vld [vmem:[%s8707_s16 + $0x1] ss:$0 sm:$0xff] }
0x11d6   :  { %v1715_v33 = vpop.permute.xlu0 %1714 }
0x11d7   :  { %v1717_v24 = vsel %vm228_vm2, %v1544_v17, %v1715_v33  ;;  %v6202_v17 = vld [vmem:[%s8705_s14 + $0x58] sm:$0xff]  ;;  %v6196_v33 = vld [vmem:[%s8704_s13 + $0x1] ss:$0 sm:$0xff] }
0x11d8   :  { %6713 = vmatprep.mubr.msk.f32.mxu0 %vm82_vm0, %v1717_v24  ;;  %v7076_v18 = vpack.c.bf16 %v6202_v17, %v6201_v16 }
0x120c   :  { %v2049_v25 = vpop.permute.xlu1 %2048 }
0x120d   :  { %v2051_v26 = vsel %vm228_vm2, %v1878_v21, %v2049_v25  ;;  %v7080_v21 = vpack.c.bf16 %v6204_v20, %v6203_v19 }
0x120e   :  { %6714 = vmatmul.mubr.msk.f32.vlgmr.msra.gmra.mrb[16].mxu0 %vm82_vm0, %v2051_v26 }
0x120f   :  { %7075 = vmatpush3.bf16.msra.mxu0 %v7072_v15 }
0x1210   :  { %7077 = vmatprep.subr.bf16.mxu0 %v7076_v18 }
0x1213   :  { %7079 = vmatpush3.bf16.msra.mxu0 %v7076_v18 }
0x1214   :  { %7081 = vmatprep.subr.bf16.mxu0 %v7080_v21 }
0x1217   :  { %7083 = vmatpush3.bf16.msra.mxu0 %v7080_v21 }
0x1218   :  { %7085 = vmatprep.subr.bf16.mxu0 %v7084_v35 }
0x121b   :  { %7087 = vmatpush3.bf16.msra.mxu0 %v7084_v35 }
0x121c   :  { %6767 = vmatprep.subr.mxu0 %v7436_v36 }
0x12e1   :  { %v6715_v28 = vpop.f32.mrb[16].mxu0 }
0x12e2   :  { %v2143_v29 = vadd.f32 %v6715_v28, %v6184_v27  ;;  %v2137_v30 = vpop.f32.mrb[17].mxu0 }
0x12e3   :  { %v2138_v31 = vadd.f32 %v6184_v27, %v2137_v30 }
0x12e4   :  { %v2147_v32 = vadd.f32 %v2143_v29, %v7813_v4 }
0x12e5   :  { %v2146_v34 = vadd.f32 %v2138_v31, %v7811_v3 }
0x12e6   :  { %v2155_v37 = vsel %vm82_vm0, %v2147_v32, 0.0 }
0x12e7   :  { %2156 = vadd.xlane.f32.xlu1 %v2155_v37  ;;  %v2152_v38 = vsel %vm82_vm0, %v2146_v34, 0.0 }
0x12e8   :  { %2153 = vadd.xlane.f32.xlu0 %v2152_v38 }
0x1374   :  { %v2157_v39 = vpop.xlane.xlu1 %2156 }
0x1375   :  { %v2159_v40 = vmul.f32 0.03125, %v2157_v39  ;;  %v2154_v42 = vpop.xlane.xlu0 %2153 }
0x1376   :  { %v2158_v43 = vmul.f32 0.03125, %v2154_v42 }
0x1377   :  { %v2161_v44 = vsub.f32 %v2147_v32, %v2159_v40 }
0x1378   :  { %v2160_v46 = vsub.f32 %v2146_v34, %v2158_v43 }
0x1379   :  { %v2163_v50 = vmul.f32 %v2161_v44, %v2161_v44 }
0x137a   :  { %v2162_v47 = vmul.f32 %v2160_v46, %v2160_v46 }
0x137b   :  { %v2167_v41 = vsel %vm82_vm0, %v2163_v50, 0.0 }
0x137c   :  { %v2164_v49 = vsel %vm82_vm0, %v2162_v47, 0.0 }
0x137d   :  { %2165 = vadd.xlane.f32.xlu0 %v2164_v49 }
0x1381   :  { %2168 = vadd.xlane.f32.xlu0 %v2167_v41 }
0x140a   :  { %v2166_v59 = vpop.xlane.xlu0 %2165 }
0x140b   :  { %v2170_v60 = vmul.f32 0.03125, %v2166_v59 }
0x140d   :  { %v2172_v61 = vadd.f32 1e-12, %v2170_v60 }
0x140e   :  { %v2169_v62 = vpop.xlane.xlu0 %2168 }
0x140f   :  { %7270 = vrsqrt.f32 %v2172_v61  ;;  %v2171_v63 = vmul.f32 0.03125, %v2169_v62 }
0x1411   :  { %v2173_v0 = vadd.f32 1e-12, %v2171_v63 }
0x1413   :  { %7272 = vrsqrt.f32 %v2173_v0 }
0x1419   :  { %v7271_v1 = vpop.eup %7270 }
0x141a   :  { %v2176_v5 = vmul.f32 %v7271_v1, %v2160_v46 }
0x141c   :  { %v2184_v7 = vmul.f32 %v6189_v2, %v2176_v5 }
0x141d   :  { %v7273_v8 = vpop.eup %7272 }
0x141e   :  { %v2177_v9 = vmul.f32 %v7273_v8, %v2161_v44  ;;  %v2192_v10 = vadd.f32 %v6190_v6, %v2184_v7 }
0x1420   :  { %v2185_v11 = vmul.f32 %v6189_v2, %v2177_v9  ;;  %6724 = vmatprep.mubr.msk.f32.mxu1 %vm82_vm0, %v2192_v10 }
0x1422   :  { %v2193_v12 = vadd.f32 %v6190_v6, %v2185_v11  ;;  %v6216_v11 = vld [vmem:[%s8756_s1 + $0x48] sm:$0xff] }
0x1424   :  { %6725 = vmatmul.mubr.msk.f32.vlgmr.msra.gmra.mrb[26].mxu1 %vm82_vm0, %v2193_v12 }
0x14f7   :  { %v6726_v24 = vpop.f32.mrb[26].mxu1 }
0x14f8   :  { %v2285_v25 = vadd.f32 %v6726_v24, %v6196_v33  ;;  %v2279_v26 = vpop.f32.mrb[27].mxu1 }
0x14f9   :  { %v2280_v27 = vadd.f32 %v6196_v33, %v2279_v26 }
0x14fa   :  { %v2291_v28 = vmul.f32 0.044715, %v2285_v25  ;;  %v2289_v49 = vmul.f32 0.5, %v2285_v25 }
0x14fb   :  { %v2290_v29 = vmul.f32 0.044715, %v2280_v27  ;;  %v2288_v46 = vmul.f32 0.5, %v2280_v27 }
0x14fc   :  { %v2293_v30 = vmul.f32 %v2291_v28, %v2285_v25 }
0x14fd   :  { %v2292_v31 = vmul.f32 %v2290_v29, %v2280_v27 }
0x14fe   :  { %v2295_v32 = vmul.f32 %v2293_v30, %v2285_v25  ;;  %v6220_v30 = vld [vmem:[%s8759_s8 + $0x2] ss:$0 sm:$0xff] }
0x14ff   :  { %v2294_v34 = vmul.f32 %v2292_v31, %v2280_v27 }
0x1500   :  { %v2297_v37 = vadd.f32 %v2295_v32, %v2285_v25  ;;  %v6214_v25 = vld [vmem:[%s8708_s17 + $0x1] ss:$0 sm:$0xff] }
0x1501   :  { %v2296_v38 = vadd.f32 %v2294_v34, %v2280_v27 }
0x1502   :  { %v2299_v39 = vmul.f32 0.7978846, %v2297_v37 }
0x1503   :  { %v2298_v40 = vmul.f32 0.7978846, %v2296_v38 }
0x1504   :  { %7274 = vtanh.f32 %v2299_v39 }
0x1505   :  { %7276 = vtanh.f32 %v2298_v40 }
0x150e   :  { %v7275_v42 = vpop.eup %7274 }
0x150f   :  { %v7277_v43 = vpop.eup %7276  ;;  %v2303_v44 = vadd.f32 1.0, %v7275_v42 }
0x1510   :  { %v2302_v47 = vadd.f32 1.0, %v7277_v43 }
0x1511   :  { %v2305_v41 = vmul.f32 %v2303_v44, %v2289_v49 }
0x1512   :  { %v2304_v50 = vmul.f32 %v2302_v47, %v2288_v46 }
0x1514   :  { %6743 = vmatprep.mubr.msk.f32.mxu0 %vm1162_vm4, %v2304_v50 }
0x1515   :  { %6744 = vmatmul.mubr.msk.f32.vlgmr.msra.gmra.mrb[18].mxu0 %vm1162_vm4, %v2305_v41 }
0x1516   :  { %6769 = vmatprep.mubr.msk.f32.mxu0 %vm7437_vm1, %v7436_v36 }
0x15e8   :  { %v6745_v53 = vpop.f32.mrb[18].mxu0 }
0x15e9   :  { %v2401_v54 = vadd.f32 %v6745_v53, %v6208_v52  ;;  %v2395_v55 = vpop.f32.mrb[19].mxu0 }
0x15ea   :  { %v2396_v56 = vadd.f32 %v6208_v52, %v2395_v55 }
0x15eb   :  { %v2405_v58 = vadd.f32 %v2401_v54, %v2193_v12  ;;  %v6217_v12 = vld [vmem:[%s8756_s1 + $0x50] sm:$0xff] }
0x15ec   :  { %v2404_v59 = vadd.f32 %v2396_v56, %v2192_v10  ;;  %v6215_v10 = vld [vmem:[%s8756_s1 + $0x40] sm:$0xff]  ;;  %v7092_v15 = vpack.c.bf16 %v6218_v14, %v6217_v12 }
0x15ed   :  { %v2413_v60 = vsel %vm82_vm0, %v2405_v58, 0.0  ;;  %v7088_v13 = vpack.c.bf16 %v6216_v11, %v6215_v10 }
0x15ee   :  { %2414 = vadd.xlane.f32.xlu1 %v2413_v60  ;;  %v2410_v61 = vsel %vm82_vm0, %v2404_v59, 0.0 }
0x15ef   :  { %2411 = vadd.xlane.f32.xlu0 %v2410_v61  ;;  %7089 = vmatprep.subr.bf16.mxu1 %v7088_v13 }
0x15f0   :  { %7091 = vmatpush3.bf16.msra.mxu1 %v7088_v13 }
0x15f1   :  { %7093 = vmatprep.subr.bf16.mxu1 %v7092_v15 }
0x15f4   :  { %7095 = vmatpush3.bf16.msra.mxu1 %v7092_v15 }
0x15f5   :  { %6757 = vmatprep.subr.mxu1 %v7436_v36 }
0x167b   :  { %v2415_v62 = vpop.xlane.xlu1 %2414 }
0x167c   :  { %v2417_v63 = vmul.f32 0.03125, %v2415_v62  ;;  %v2412_v0 = vpop.xlane.xlu0 %2411 }
0x167d   :  { %v2416_v1 = vmul.f32 0.03125, %v2412_v0 }
0x167e   :  { %v2419_v2 = vsub.f32 %v2405_v58, %v2417_v63 }
0x167f   :  { %v2418_v5 = vsub.f32 %v2404_v59, %v2416_v1 }
0x1680   :  { %v2421_v6 = vmul.f32 %v2419_v2, %v2419_v2 }
0x1681   :  { %v2420_v7 = vmul.f32 %v2418_v5, %v2418_v5 }
0x1682   :  { %v2425_v8 = vsel %vm82_vm0, %v2421_v6, 0.0 }
0x1683   :  { %2426 = vadd.xlane.f32.xlu1 %v2425_v8  ;;  %v2422_v9 = vsel %vm82_vm0, %v2420_v7, 0.0 }
0x1684   :  { %2423 = vadd.xlane.f32.xlu0 %v2422_v9 }
0x1710   :  { %v2427_v16 = vpop.xlane.xlu1 %2426 }
0x1711   :  { %v2429_v17 = vmul.f32 0.03125, %v2427_v16  ;;  %v2424_v18 = vpop.xlane.xlu0 %2423 }
0x1712   :  { %v2428_v19 = vmul.f32 0.03125, %v2424_v18 }
0x1713   :  { %v2431_v20 = vadd.f32 1e-12, %v2429_v17 }
0x1714   :  { %v2430_v21 = vadd.f32 1e-12, %v2428_v19 }
0x1715   :  { %7278 = vrsqrt.f32 %v2431_v20 }
0x1716   :  { %7280 = vrsqrt.f32 %v2430_v21 }
0x171f   :  { %v7279_v22 = vpop.eup %7278 }
0x1720   :  { %v7281_v35 = vpop.eup %7280  ;;  %v2435_v33 = vmul.f32 %v7279_v22, %v2419_v2 }
0x1721   :  { %v2434_v24 = vmul.f32 %v7281_v35, %v2418_v5 }
0x1722   :  { %v2443_v26 = vmul.f32 %v6213_v23, %v2435_v33 }
0x1723   :  { %v2442_v27 = vmul.f32 %v6213_v23, %v2434_v24 }
0x1724   :  { %v7999_v29 = vadd.f32 %v6214_v25, %v2443_v26 }
0x1725   :  { %v7997_v28 = vadd.f32 %v6214_v25, %v2442_v27 }
0x1727   :  { %6754 = vmatprep.mubr.msk.f32.mxu1 %vm82_vm0, %v7997_v28 }
0x1728   :  { %6755 = vmatmul.mubr.msk.f32.vlgmr.msra.gmra.mrb[28].mxu1 %vm82_vm0, %v7999_v29 }
0x1729   :  { %6759 = vmatprep.mubr.msk.f32.mxu1 %vm7437_vm1, %v7436_v36 }
0x17fb   :  { %v6756_v31 = vpop.f32.mrb[28].mxu1 }
0x17fc   :  { %v2537_v32 = vpop.f32.mrb[29].mxu1  ;;  %v8016_v37 = vadd.f32 %v6756_v31, %v6220_v30 }
0x17fd   :  { %v8010_v34 = vadd.f32 %v6220_v30, %v2537_v32 }
0x17ff   :  { %2712 = vrot.lane.b32.xlu1 %v8010_v34, %s8768_s6  ;;  %2547 = vrot.lane.b32.xlu0 %v8010_v34, %s8763_s26 }
0x1803   :  { %2710 = vrot.lane.b32.xlu1 %v8010_v34, %s8764_s9  ;;  %3046 = vrot.lane.b32.xlu0 %v8016_v37, %s8768_s6 }
0x1807   :  { %2881 = vrot.lane.b32.xlu1 %v8016_v37, %s8763_s26 }
0x180b   :  { %3044 = vrot.lane.b32.xlu1 %v8016_v37, %s8764_s9 }
0x1871   :  { %v2713_v38 = vpop.permute.xlu1 %2712  ;;  %v2548_v39 = vpop.permute.xlu0 %2547 }
0x1872   :  { %6758 = vmatpush3.xpose.msk.msra.mxu1 %vm228_vm2, %v2548_v39  ;;  %6768 = vmatpush3.xpose.msk.msra.mxu0 %vm228_vm2, %v2713_v38 }
0x1873   :  { %6777 = vmatprep.subr.mxu0 %v7436_v36  ;;  %6762 = vmatprep.subr.mxu1 %v7436_v36 }
0x1875   :  { %v2711_v40 = vpop.permute.xlu1 %2710  ;;  %6760 = vmatmul.mubr.msk.f32.vlgmr.msra.gmra.mrb[30].mxu1 %vm228_vm2, %v8010_v34  ;;  %v3047_v43 = vpop.permute.xlu0 %3046 }
0x1876   :  { %6770 = vmatmul.mubr.msk.f32.vlgmr.msra.gmra.mrb[20].mxu0 %vm228_vm2, %v2711_v40  ;;  %6764 = vmatprep.mubr.msk.f32.mxu1 %vm7437_vm1, %v7436_v36 }
0x1877   :  { %6779 = vmatprep.mubr.msk.f32.mxu0 %vm7437_vm1, %v7436_v36 }
0x1879   :  { %v2882_v42 = vpop.permute.xlu1 %2881 }
0x187a   :  { %6778 = vmatpush3.xpose.msk.msra.mxu0 %vm228_vm2, %v2882_v42  ;;  %v6235_v42 = vld [vmem:[%s8761_s7 + $0x40] sm:$0xff] }
0x187b   :  { %6787 = vmatprep.subr.mxu0 %v7436_v36 }
0x187d   :  { %6780 = vmatmul.mubr.msk.f32.vlgmr.msra.gmra.mrb[22].mxu0 %vm228_vm2, %v8016_v37  ;;  %v3045_v44 = vpop.permute.xlu1 %3044 }
0x187e   :  { %6788 = vmatpush3.xpose.msk.msra.mxu0 %vm228_vm2, %v3047_v43  ;;  %6789 = vmatprep.mubr.msk.f32.mxu0 %vm7437_vm1, %v7436_v36  ;;  %v6236_v43 = vld [vmem:[%s8761_s7 + $0x48] sm:$0xff] }
0x1881   :  { %6790 = vmatmul.mubr.msk.f32.vlgmr.msra.gmra.mrb[24].mxu0 %vm228_vm2, %v3045_v44  ;;  %v6237_v44 = vld [vmem:[%s8761_s7 + $0x50] sm:$0xff] }
0x1948   :  { %v2619_v46 = vpop.f32.mrb[30].mxu1 }
0x1949   :  { %v2620_v47 = vadd.f32 %v2619_v46, %v7654_v51  ;;  %v6761_v49 = vpop.f32.mrb[31].mxu1  ;;  %v2784_v50 = vpop.f32.mrb[20].mxu0  ;;  %v7096_v46 = vpack.c.bf16 %v6236_v43, %v6235_v42 }
0x194a   :  { %v2785_v41 = vadd.f32 %v2784_v50, %v7654_v51  ;;  %v6771_v52 = vpop.f32.mrb[21].mxu0 }
0x194b   :  { %v2623_v53 = vsel %vm303_vm3, %v2620_v47, -inf  ;;  %7097 = vmatprep.subr.bf16.mxu0 %v7096_v46 }
0x194c   :  { %2624 = vmax.xlane.f32.xlu0 %v2623_v53  ;;  %v2788_v54 = vsel %vm303_vm3, %v2785_v41, -inf  ;;  %7099 = vmatpush3.bf16.msra.mxu0 %v7096_v46 }
0x194d   :  { %2789 = vmax.xlane.f32.xlu1 %v2788_v54 }
0x1950   :  { %v2953_v55 = vpop.f32.mrb[22].mxu0 }
0x1951   :  { %v2954_v56 = vadd.f32 %v2953_v55, %v7659_v57  ;;  %v6781_v58 = vpop.f32.mrb[23].mxu0 }
0x1953   :  { %v2957_v59 = vsel %vm303_vm3, %v2954_v56, -inf }
0x1954   :  { %2958 = vmax.xlane.f32.xlu0 %v2957_v59  ;;  %v3118_v60 = vpop.f32.mrb[24].mxu0 }
0x1955   :  { %v3119_v61 = vadd.f32 %v3118_v60, %v7659_v57  ;;  %v6791_v62 = vpop.f32.mrb[25].mxu0 }
0x1957   :  { %v3122_v63 = vsel %vm303_vm3, %v3119_v61, -inf }
0x1958   :  { %3123 = vmax.xlane.f32.xlu0 %v3122_v63  ;;  %v6240_v63 = vld [vmem:[%s8762_s3 + $0x2] ss:$0 sm:$0xff] }
0x19d9   :  { %v2625_v0 = vpop.xlane.xlu0 %2624 }
0x19da   :  { %v2626_v1 = vsub.f32 %v2620_v47, %v2625_v0  ;;  %v2790_v2 = vpop.xlane.xlu1 %2789  ;;  %v6238_v47 = vld [vmem:[%s8761_s7 + $0x58] sm:$0xff] }
0x19db   :  { %v2791_v5 = vsub.f32 %v2785_v41, %v2790_v2  ;;  %v7100_v49 = vpack.c.bf16 %v6238_v47, %v6237_v44  ;;  %v6255_v47 = vld [vmem:[%s8705_s14 + $0x80] sm:$0xff] }
0x19dc   :  { %v2627_v6 = vmul.f32 1.442695, %v2626_v1 }
0x19dd   :  { %v2792_v7 = vmul.f32 1.442695, %v2791_v5  ;;  %7101 = vmatprep.subr.bf16.mxu0 %v7100_v49 }
0x19de   :  { %7282 = vpow2.f32 %v2627_v6  ;;  %7103 = vmatpush3.bf16.msra.mxu0 %v7100_v49  ;;  %v6256_v49 = vld [vmem:[%s8705_s14 + $0x88] sm:$0xff] }
0x19df   :  { %7284 = vpow2.f32 %v2792_v7 }
0x19e1   :  { %v2959_v8 = vpop.xlane.xlu0 %2958 }
0x19e2   :  { %v2960_v9 = vsub.f32 %v2954_v56, %v2959_v8 }
0x19e4   :  { %v2961_v10 = vmul.f32 1.442695, %v2960_v9 }
0x19e5   :  { %v3124_v17 = vpop.xlane.xlu0 %3123 }
0x19e6   :  { %7286 = vpow2.f32 %v2961_v10  ;;  %v3125_v18 = vsub.f32 %v3119_v61, %v3124_v17 }
0x19e8   :  { %v7283_v11 = vpop.eup %7282  ;;  %v3126_v19 = vmul.f32 1.442695, %v3125_v18 }
0x19e9   :  { %v7285_v12 = vpop.eup %7284  ;;  %v2629_v13 = vsel %vm303_vm3, %v7283_v11, 0.0 }
0x19ea   :  { %2630 = vadd.xlane.f32.xlu0 %v2629_v13  ;;  %v2794_v14 = vsel %vm303_vm3, %v7285_v12, 0.0  ;;  %7288 = vpow2.f32 %v3126_v19 }
0x19eb   :  { %2795 = vadd.xlane.f32.xlu1 %v2794_v14 }
0x19f0   :  { %v7287_v15 = vpop.eup %7286 }
0x19f1   :  { %v2963_v16 = vsel %vm303_vm3, %v7287_v15, 0.0 }
0x19f2   :  { %2964 = vadd.xlane.f32.xlu0 %v2963_v16 }
0x19f4   :  { %v7289_v20 = vpop.eup %7288 }
0x19f5   :  { %v3128_v21 = vsel %vm303_vm3, %v7289_v20, 0.0 }
0x19fc   :  { %2799 = vrot.lane.b32.xlu1 %v8010_v34, %s8765_s27 }
0x1a00   :  { %2968 = vrot.lane.b32.xlu1 %v8016_v37, %s8766_s28 }
0x1a08   :  { %2634 = vrot.lane.b32.xlu0 %v8010_v34, %s8766_s28 }
0x1a24   :  { %3129 = vadd.xlane.f32.xlu1 %v3128_v21  ;;  %v6248_v21 = vld [vmem:[%s8703_s12 + $0x48] sm:$0xff] }
0x1a35   :  { %3133 = vrot.lane.b32.xlu1 %v8016_v37, %s8765_s27 }
0x1a77   :  { %v2631_v22 = vpop.xlane.xlu0 %2630 }
0x1a78   :  { %7290 = vrcp.f32 %v2631_v22  ;;  %v2796_v23 = vpop.xlane.xlu1 %2795 }
0x1a79   :  { %7292 = vrcp.f32 %v2796_v23  ;;  %v6249_v23 = vld [vmem:[%s8703_s12 + $0x50] sm:$0xff] }
0x1a7c   :  { %v2800_v24 = vpop.permute.xlu1 %2799 }
0x1a7f   :  { %v2965_v35 = vpop.xlane.xlu0 %2964 }
0x1a80   :  { %7294 = vrcp.f32 %v2965_v35  ;;  %v2969_v31 = vpop.permute.xlu1 %2968  ;;  %v6250_v35 = vld [vmem:[%s8703_s12 + $0x58] sm:$0xff] }
0x1a82   :  { %v7291_v33 = vpop.eup %7290 }
0x1a83   :  { %v2635_v25 = vpop.permute.xlu0 %2634  ;;  %v2633_v26 = vmul.f32 %v7291_v33, %v7283_v11  ;;  %v7293_v27 = vpop.eup %7292  ;;  %v7108_v33 = vpack.c.bf16 %v6250_v35, %v6249_v23 }
0x1a84   :  { %6763 = vmatpush3.msra.mxu1 %v2635_v25  ;;  %v2798_v30 = vmul.f32 %v7293_v27, %v7285_v12 }
0x1a85   :  { %6765 = vmatmul.mubr.msk.f32.vlgmr.msra.gmra.mrb[32].mxu1 %vm303_vm3, %v2633_v26  ;;  %6772 = vmatprep.subr.mxu1 %v7436_v36 }
0x1a86   :  { %6773 = vmatpush3.msra.mxu1 %v2800_v24  ;;  %6774 = vmatprep.mubr.msk.f32.mxu1 %vm7437_vm1, %v7436_v36 }
0x1a87   :  { %6782 = vmatprep.subr.mxu1 %v7436_v36 }
0x1a89   :  { %6775 = vmatmul.mubr.msk.f32.vlgmr.msra.gmra.mrb[34].mxu1 %vm303_vm3, %v2798_v30 }
0x1a8a   :  { %v7295_v32 = vpop.eup %7294  ;;  %6783 = vmatpush3.msra.mxu1 %v2969_v31  ;;  %6784 = vmatprep.mubr.msk.f32.mxu1 %vm7437_vm1, %v7436_v36 }
0x1a8b   :  { %v2967_v34 = vmul.f32 %v7295_v32, %v7287_v15  ;;  %6792 = vmatprep.subr.mxu1 %v7436_v36 }
0x1a8d   :  { %6785 = vmatmul.mubr.msk.f32.vlgmr.msra.gmra.mrb[36].mxu1 %vm303_vm3, %v2967_v34  ;;  %v6245_v34 = vld [vmem:[%s8701_s10 + $0x2] ss:$0 sm:$0xff] }
0x1a8e   :  { %6794 = vmatprep.mubr.msk.f32.mxu1 %vm7437_vm1, %v7436_v36 }
0x1ab1   :  { %v3130_v37 = vpop.xlane.xlu1 %3129 }
0x1ab2   :  { %7296 = vrcp.f32 %v3130_v37 }
0x1ab5   :  { %v3134_v38 = vpop.permute.xlu1 %3133 }
0x1ab6   :  { %6793 = vmatpush3.msra.mxu1 %v3134_v38  ;;  %v6246_v38 = vld [vmem:[%s8702_s11 + $0x2] ss:$0 sm:$0xff] }
0x1abc   :  { %v7297_v39 = vpop.eup %7296 }
0x1abd   :  { %v3132_v40 = vmul.f32 %v7297_v39, %v7289_v20  ;;  %v6247_v20 = vld [vmem:[%s8703_s12 + $0x40] sm:$0xff] }
0x1abe   :  { %v7104_v22 = vpack.c.bf16 %v6248_v21, %v6247_v20 }
0x1abf   :  { %6795 = vmatmul.mubr.msk.f32.vlgmr.msra.gmra.mrb[38].mxu1 %vm303_vm3, %v3132_v40 }
0x1ac0   :  { %7105 = vmatprep.subr.bf16.mxu1 %v7104_v22 }
0x1ac1   :  { %7107 = vmatpush3.bf16.msra.mxu1 %v7104_v22  ;;  %v6264_v22 = vld [vmem:[%s8706_s15 + $0x2] ss:$0 sm:$0xff] }
0x1ac2   :  { %7109 = vmatprep.subr.bf16.mxu1 %v7108_v33 }
0x1ac5   :  { %7111 = vmatpush3.bf16.msra.mxu1 %v7108_v33 }
0x1b58   :  { %v2706_v50 = vpop.f32.mrb[32].mxu1 }
0x1b59   :  { %v6766_v41 = vpop.f32.mrb[33].mxu1 }
0x1b5a   :  { %v6257_v41 = vld [vmem:[%s8705_s14 + $0x90] sm:$0xff] }
0x1b5c   :  { %v2871_v52 = vpop.f32.mrb[34].mxu1 }
0x1b5d   :  { %2876 = vrot.lane.b32.xlu0 %v2871_v52, %s8767_s2  ;;  %v6776_v53 = vpop.f32.mrb[35].mxu1  ;;  %v6258_v52 = vld [vmem:[%s8705_s14 + $0x98] sm:$0xff] }
0x1b5e   :  { %v7116_v53 = vpack.c.bf16 %v6258_v52, %v6257_v41  ;;  %v6274_v41 = vld [vmem:[%s8756_s1 + $0x78] sm:$0xff] }
0x1b60   :  { %v3040_v54 = vpop.f32.mrb[36].mxu1 }
0x1b61   :  { %v6786_v55 = vpop.f32.mrb[37].mxu1 }
0x1b62   :  { %v6260_v55 = vld [vmem:[%s8705_s14 + $0xa8] sm:$0xff] }
0x1b92   :  { %v3205_v56 = vpop.f32.mrb[38].mxu1 }
0x1b93   :  { %3210 = vrot.lane.b32.xlu1 %v3205_v56, %s8767_s2  ;;  %v6796_v58 = vpop.f32.mrb[39].mxu1 }
0x1b94   :  { %v6261_v58 = vld [vmem:[%s8705_s14 + $0xb0] sm:$0xff] }
0x1bcf   :  { %v2877_v59 = vpop.permute.xlu0 %2876 }
0x1bd0   :  { %v2879_v60 = vsel %vm228_vm2, %v2706_v50, %v2877_v59  ;;  %v7112_v50 = vpack.c.bf16 %v6256_v49, %v6255_v47  ;;  %v6262_v59 = vld [vmem:[%s8705_s14 + $0xb8] sm:$0xff]  ;;  %v6272_v47 = vld [vmem:[%s8756_s1 + $0x68] sm:$0xff]  ;;  %v6273_v49 = vld [vmem:[%s8756_s1 + $0x70] sm:$0xff] }
0x1bd1   :  { %6805 = vmatprep.mubr.msk.f32.mxu0 %vm82_vm0, %v2879_v60  ;;  %v7124_v60 = vpack.c.bf16 %v6262_v59, %v6261_v58  ;;  %v7132_v52 = vpack.c.bf16 %v6274_v41, %v6273_v49 }
0x1bd2   :  { %7113 = vmatprep.subr.bf16.mxu0 %v7112_v50 }
0x1c05   :  { %v3211_v61 = vpop.permute.xlu1 %3210 }
0x1c06   :  { %v3213_v62 = vsel %vm228_vm2, %v3040_v54, %v3211_v61  ;;  %v6259_v54 = vld [vmem:[%s8705_s14 + $0xa0] sm:$0xff] }
0x1c07   :  { %6806 = vmatmul.mubr.msk.f32.vlgmr.msra.gmra.mrb[26].mxu0 %vm82_vm0, %v3213_v62  ;;  %v7120_v56 = vpack.c.bf16 %v6260_v55, %v6259_v54  ;;  %v6252_v61 = vld [vmem:[%s8704_s13 + $0x2] ss:$0 sm:$0xff] }
0x1c08   :  { %7115 = vmatpush3.bf16.msra.mxu0 %v7112_v50 }
0x1c09   :  { %7117 = vmatprep.subr.bf16.mxu0 %v7116_v53 }
0x1c0c   :  { %7119 = vmatpush3.bf16.msra.mxu0 %v7116_v53 }
0x1c0d   :  { %7121 = vmatprep.subr.bf16.mxu0 %v7120_v56 }
0x1c10   :  { %7123 = vmatpush3.bf16.msra.mxu0 %v7120_v56 }
0x1c11   :  { %7125 = vmatprep.subr.bf16.mxu0 %v7124_v60 }
0x1c14   :  { %7127 = vmatpush3.bf16.msra.mxu0 %v7124_v60 }
0x1c15   :  { %6859 = vmatprep.subr.mxu0 %v7436_v36 }
0x1cda   :  { %v6807_v0 = vpop.f32.mrb[26].mxu0 }
0x1cdb   :  { %v3305_v1 = vadd.f32 %v6807_v0, %v6240_v63  ;;  %v3299_v2 = vpop.f32.mrb[27].mxu0 }
0x1cdc   :  { %v3300_v5 = vadd.f32 %v6240_v63, %v3299_v2 }
0x1cdd   :  { %v3309_v6 = vadd.f32 %v3305_v1, %v7999_v29 }
0x1cde   :  { %v3308_v7 = vadd.f32 %v3300_v5, %v7997_v28 }
0x1cdf   :  { %v3317_v8 = vsel %vm82_vm0, %v3309_v6, 0.0 }
0x1ce0   :  { %3318 = vadd.xlane.f32.xlu1 %v3317_v8  ;;  %v3314_v9 = vsel %vm82_vm0, %v3308_v7, 0.0 }
0x1ce1   :  { %3315 = vadd.xlane.f32.xlu0 %v3314_v9 }
0x1d6d   :  { %v3319_v10 = vpop.xlane.xlu1 %3318 }
0x1d6e   :  { %v3321_v11 = vmul.f32 0.03125, %v3319_v10  ;;  %v3316_v12 = vpop.xlane.xlu0 %3315 }
0x1d6f   :  { %v3320_v13 = vmul.f32 0.03125, %v3316_v12 }
0x1d70   :  { %v3323_v14 = vsub.f32 %v3309_v6, %v3321_v11 }
0x1d71   :  { %v3322_v15 = vsub.f32 %v3308_v7, %v3320_v13 }
0x1d72   :  { %v3325_v18 = vmul.f32 %v3323_v14, %v3323_v14 }
0x1d73   :  { %v3324_v16 = vmul.f32 %v3322_v15, %v3322_v15 }
0x1d74   :  { %v3329_v19 = vsel %vm82_vm0, %v3325_v18, 0.0 }
0x1d75   :  { %v3326_v17 = vsel %vm82_vm0, %v3324_v16, 0.0 }
0x1d76   :  { %3327 = vadd.xlane.f32.xlu0 %v3326_v17 }
0x1d7a   :  { %3330 = vadd.xlane.f32.xlu0 %v3329_v19 }
0x1e03   :  { %v3328_v24 = vpop.xlane.xlu0 %3327 }
0x1e04   :  { %v3332_v25 = vmul.f32 0.03125, %v3328_v24 }
0x1e06   :  { %v3334_v26 = vadd.f32 1e-12, %v3332_v25 }
0x1e07   :  { %v3331_v27 = vpop.xlane.xlu0 %3330 }
0x1e08   :  { %7298 = vrsqrt.f32 %v3334_v26  ;;  %v3333_v30 = vmul.f32 0.03125, %v3331_v27 }
0x1e0a   :  { %v3335_v31 = vadd.f32 1e-12, %v3333_v30 }
0x1e0c   :  { %7300 = vrsqrt.f32 %v3335_v31 }
0x1e12   :  { %v7299_v32 = vpop.eup %7298 }
0x1e13   :  { %v3338_v37 = vmul.f32 %v7299_v32, %v3322_v15 }
0x1e15   :  { %v3346_v39 = vmul.f32 %v6245_v34, %v3338_v37 }
0x1e16   :  { %v7301_v40 = vpop.eup %7300 }
0x1e17   :  { %v3339_v42 = vmul.f32 %v7301_v40, %v3323_v14  ;;  %v3354_v43 = vadd.f32 %v6246_v38, %v3346_v39 }
0x1e19   :  { %v3347_v44 = vmul.f32 %v6245_v34, %v3339_v42  ;;  %6816 = vmatprep.mubr.msk.f32.mxu1 %vm82_vm0, %v3354_v43 }
0x1e1b   :  { %v3355_v46 = vadd.f32 %v6246_v38, %v3347_v44 }
0x1e1d   :  { %6817 = vmatmul.mubr.msk.f32.vlgmr.msra.gmra.mrb[40].mxu1 %vm82_vm0, %v3355_v46 }
0x1ef0   :  { %v6818_v62 = vpop.f32.mrb[40].mxu1 }
0x1ef1   :  { %v3447_v63 = vadd.f32 %v6818_v62, %v6252_v61  ;;  %v3441_v0 = vpop.f32.mrb[41].mxu1 }
0x1ef2   :  { %v3442_v1 = vadd.f32 %v6252_v61, %v3441_v0  ;;  %v6269_v61 = vld [vmem:[%s8707_s16 + $0x2] ss:$0 sm:$0xff] }
0x1ef3   :  { %v3453_v2 = vmul.f32 0.044715, %v3447_v63  ;;  %v3451_v19 = vmul.f32 0.5, %v3447_v63 }
0x1ef4   :  { %v3452_v5 = vmul.f32 0.044715, %v3442_v1  ;;  %v3450_v17 = vmul.f32 0.5, %v3442_v1 }
0x1ef5   :  { %v3455_v6 = vmul.f32 %v3453_v2, %v3447_v63 }
0x1ef6   :  { %v3454_v7 = vmul.f32 %v3452_v5, %v3442_v1 }
0x1ef7   :  { %v3457_v8 = vmul.f32 %v3455_v6, %v3447_v63 }
0x1ef8   :  { %v3456_v9 = vmul.f32 %v3454_v7, %v3442_v1 }
0x1ef9   :  { %v3459_v10 = vadd.f32 %v3457_v8, %v3447_v63  ;;  %v6276_v8 = vld [vmem:[%s8759_s8 + $0x3] ss:$0 sm:$0xff] }
0x1efa   :  { %v3458_v11 = vadd.f32 %v3456_v9, %v3442_v1  ;;  %v6270_v1 = vld [vmem:[%s8708_s17 + $0x2] ss:$0 sm:$0xff] }
0x1efb   :  { %v3461_v12 = vmul.f32 0.7978846, %v3459_v10 }
0x1efc   :  { %v3460_v13 = vmul.f32 0.7978846, %v3458_v11 }
0x1efd   :  { %7302 = vtanh.f32 %v3461_v12 }
0x1efe   :  { %7304 = vtanh.f32 %v3460_v13 }
0x1f07   :  { %v7303_v14 = vpop.eup %7302 }
0x1f08   :  { %v7305_v15 = vpop.eup %7304  ;;  %v3465_v16 = vadd.f32 1.0, %v7303_v14 }
0x1f09   :  { %v3464_v18 = vadd.f32 1.0, %v7305_v15 }
0x1f0a   :  { %v3467_v21 = vmul.f32 %v3465_v16, %v3451_v19 }
0x1f0b   :  { %v3466_v20 = vmul.f32 %v3464_v18, %v3450_v17 }
0x1f0d   :  { %6835 = vmatprep.mubr.msk.f32.mxu0 %vm1162_vm4, %v3466_v20 }
0x1f0e   :  { %6836 = vmatmul.mubr.msk.f32.vlgmr.msra.gmra.mrb[28].mxu0 %vm1162_vm4, %v3467_v21 }
0x1f0f   :  { %6861 = vmatprep.mubr.msk.f32.mxu0 %vm7437_vm1, %v7436_v36 }
0x1fe1   :  { %v6837_v23 = vpop.f32.mrb[28].mxu0 }
0x1fe2   :  { %v3563_v35 = vadd.f32 %v6837_v23, %v6264_v22  ;;  %v3557_v33 = vpop.f32.mrb[29].mxu0 }
0x1fe3   :  { %v3558_v24 = vadd.f32 %v6264_v22, %v3557_v33 }
0x1fe4   :  { %v3567_v25 = vadd.f32 %v3563_v35, %v3355_v46 }
0x1fe5   :  { %v3566_v26 = vadd.f32 %v3558_v24, %v3354_v43  ;;  %v6271_v43 = vld [vmem:[%s8756_s1 + $0x60] sm:$0xff] }
0x1fe6   :  { %v3575_v27 = vsel %vm82_vm0, %v3567_v25, 0.0  ;;  %v7128_v50 = vpack.c.bf16 %v6272_v47, %v6271_v43 }
0x1fe7   :  { %3576 = vadd.xlane.f32.xlu1 %v3575_v27  ;;  %v3572_v30 = vsel %vm82_vm0, %v3566_v26, 0.0 }
0x1fe8   :  { %3573 = vadd.xlane.f32.xlu0 %v3572_v30  ;;  %7129 = vmatprep.subr.bf16.mxu1 %v7128_v50 }
0x1fe9   :  { %7131 = vmatpush3.bf16.msra.mxu1 %v7128_v50 }
0x1fea   :  { %7133 = vmatprep.subr.bf16.mxu1 %v7132_v52 }
0x1fed   :  { %7135 = vmatpush3.bf16.msra.mxu1 %v7132_v52 }
0x1fee   :  { %6849 = vmatprep.subr.mxu1 %v7436_v36 }
0x2074   :  { %v3577_v31 = vpop.xlane.xlu1 %3576 }
0x2075   :  { %v3579_v32 = vmul.f32 0.03125, %v3577_v31  ;;  %v3574_v34 = vpop.xlane.xlu0 %3573 }
0x2076   :  { %v3578_v37 = vmul.f32 0.03125, %v3574_v34 }
0x2077   :  { %v3581_v38 = vsub.f32 %v3567_v25, %v3579_v32 }
0x2078   :  { %v3580_v39 = vsub.f32 %v3566_v26, %v3578_v37 }
0x2079   :  { %v3583_v40 = vmul.f32 %v3581_v38, %v3581_v38 }
0x207a   :  { %v3582_v42 = vmul.f32 %v3580_v39, %v3580_v39 }
0x207b   :  { %v3587_v44 = vsel %vm82_vm0, %v3583_v40, 0.0 }
0x207c   :  { %3588 = vadd.xlane.f32.xlu1 %v3587_v44  ;;  %v3584_v46 = vsel %vm82_vm0, %v3582_v42, 0.0 }
0x207d   :  { %3585 = vadd.xlane.f32.xlu0 %v3584_v46 }
0x2109   :  { %v3589_v53 = vpop.xlane.xlu1 %3588 }
0x210a   :  { %v3591_v54 = vmul.f32 0.03125, %v3589_v53  ;;  %v3586_v55 = vpop.xlane.xlu0 %3585 }
0x210b   :  { %v3590_v56 = vmul.f32 0.03125, %v3586_v55 }
0x210c   :  { %v3593_v58 = vadd.f32 1e-12, %v3591_v54 }
0x210d   :  { %v3592_v59 = vadd.f32 1e-12, %v3590_v56 }
0x210e   :  { %7306 = vrsqrt.f32 %v3593_v58 }
0x210f   :  { %7308 = vrsqrt.f32 %v3592_v59 }
0x2118   :  { %v7307_v60 = vpop.eup %7306 }
0x2119   :  { %v7309_v62 = vpop.eup %7308  ;;  %v3597_v63 = vmul.f32 %v7307_v60, %v3581_v38 }
0x211a   :  { %v3596_v0 = vmul.f32 %v7309_v62, %v3580_v39 }
0x211b   :  { %v3605_v2 = vmul.f32 %v6269_v61, %v3597_v63 }
0x211c   :  { %v3604_v5 = vmul.f32 %v6269_v61, %v3596_v0 }
0x211d   :  { %v8185_v7 = vadd.f32 %v6270_v1, %v3605_v2 }
0x211e   :  { %v8183_v6 = vadd.f32 %v6270_v1, %v3604_v5 }
0x2120   :  { %6846 = vmatprep.mubr.msk.f32.mxu1 %vm82_vm0, %v8183_v6 }
0x2121   :  { %6847 = vmatmul.mubr.msk.f32.vlgmr.msra.gmra.mrb[42].mxu1 %vm82_vm0, %v8185_v7 }
0x2122   :  { %6851 = vmatprep.mubr.msk.f32.mxu1 %vm7437_vm1, %v7436_v36 }
0x21f4   :  { %v6848_v9 = vpop.f32.mrb[42].mxu1 }
0x21f5   :  { %v3699_v10 = vpop.f32.mrb[43].mxu1  ;;  %v8202_v12 = vadd.f32 %v6848_v9, %v6276_v8 }
0x21f6   :  { %v8196_v11 = vadd.f32 %v6276_v8, %v3699_v10 }
0x21f8   :  { %3874 = vrot.lane.b32.xlu1 %v8196_v11, %s8768_s6  ;;  %3709 = vrot.lane.b32.xlu0 %v8196_v11, %s8763_s26 }
0x21fc   :  { %3872 = vrot.lane.b32.xlu1 %v8196_v11, %s8764_s9  ;;  %4208 = vrot.lane.b32.xlu0 %v8202_v12, %s8768_s6 }
0x2200   :  { %4043 = vrot.lane.b32.xlu1 %v8202_v12, %s8763_s26 }
0x2204   :  { %4206 = vrot.lane.b32.xlu1 %v8202_v12, %s8764_s9 }
0x226a   :  { %v3875_v13 = vpop.permute.xlu1 %3874  ;;  %v3710_v14 = vpop.permute.xlu0 %3709 }
0x226b   :  { %6850 = vmatpush3.xpose.msk.msra.mxu1 %vm228_vm2, %v3710_v14  ;;  %6860 = vmatpush3.xpose.msk.msra.mxu0 %vm228_vm2, %v3875_v13 }
0x226c   :  { %6869 = vmatprep.subr.mxu0 %v7436_v36  ;;  %6854 = vmatprep.subr.mxu1 %v7436_v36 }
0x226e   :  { %v3873_v15 = vpop.permute.xlu1 %3872  ;;  %6852 = vmatmul.mubr.msk.f32.vlgmr.msra.gmra.mrb[44].mxu1 %vm228_vm2, %v8196_v11  ;;  %v4209_v17 = vpop.permute.xlu0 %4208 }
0x226f   :  { %6862 = vmatmul.mubr.msk.f32.vlgmr.msra.gmra.mrb[30].mxu0 %vm228_vm2, %v3873_v15  ;;  %6856 = vmatprep.mubr.msk.f32.mxu1 %vm7437_vm1, %v7436_v36 }
0x2270   :  { %6871 = vmatprep.mubr.msk.f32.mxu0 %vm7437_vm1, %v7436_v36 }
0x2272   :  { %v4044_v16 = vpop.permute.xlu1 %4043 }
0x2273   :  { %6870 = vmatpush3.xpose.msk.msra.mxu0 %vm228_vm2, %v4044_v16  ;;  %v6291_v16 = vld [vmem:[%s8761_s7 + $0x60] sm:$0xff] }
0x2274   :  { %6879 = vmatprep.subr.mxu0 %v7436_v36 }
0x2276   :  { %6872 = vmatmul.mubr.msk.f32.vlgmr.msra.gmra.mrb[32].mxu0 %vm228_vm2, %v8202_v12  ;;  %v4207_v18 = vpop.permute.xlu1 %4206 }
0x2277   :  { %6880 = vmatpush3.xpose.msk.msra.mxu0 %vm228_vm2, %v4209_v17  ;;  %6881 = vmatprep.mubr.msk.f32.mxu0 %vm7437_vm1, %v7436_v36  ;;  %v6292_v17 = vld [vmem:[%s8761_s7 + $0x68] sm:$0xff] }
0x227a   :  { %6882 = vmatmul.mubr.msk.f32.vlgmr.msra.gmra.mrb[34].mxu0 %vm228_vm2, %v4207_v18  ;;  %v6293_v18 = vld [vmem:[%s8761_s7 + $0x70] sm:$0xff] }
0x2341   :  { %v3781_v19 = vpop.f32.mrb[44].mxu1 }
0x2342   :  { %v3782_v20 = vadd.f32 %v3781_v19, %v7654_v51  ;;  %v6853_v21 = vpop.f32.mrb[45].mxu1  ;;  %v3946_v22 = vpop.f32.mrb[30].mxu0  ;;  %v7136_v19 = vpack.c.bf16 %v6292_v17, %v6291_v16 }
0x2343   :  { %v3947_v23 = vadd.f32 %v3946_v22, %v7654_v51  ;;  %v6863_v35 = vpop.f32.mrb[31].mxu0 }
0x2344   :  { %v3785_v33 = vsel %vm303_vm3, %v3782_v20, -inf  ;;  %7137 = vmatprep.subr.bf16.mxu0 %v7136_v19 }
0x2345   :  { %3786 = vmax.xlane.f32.xlu0 %v3785_v33  ;;  %v3950_v24 = vsel %vm303_vm3, %v3947_v23, -inf  ;;  %7139 = vmatpush3.bf16.msra.mxu0 %v7136_v19 }
0x2346   :  { %3951 = vmax.xlane.f32.xlu1 %v3950_v24 }
0x2349   :  { %v4115_v25 = vpop.f32.mrb[32].mxu0 }
0x234a   :  { %v4116_v26 = vadd.f32 %v4115_v25, %v7659_v57  ;;  %v6873_v27 = vpop.f32.mrb[33].mxu0 }
0x234c   :  { %v4119_v30 = vsel %vm303_vm3, %v4116_v26, -inf }
0x234d   :  { %4120 = vmax.xlane.f32.xlu0 %v4119_v30  ;;  %v4280_v31 = vpop.f32.mrb[34].mxu0 }
0x234e   :  { %v4281_v32 = vadd.f32 %v4280_v31, %v7659_v57  ;;  %v6883_v34 = vpop.f32.mrb[35].mxu0 }
0x2350   :  { %v4284_v51 = vsel %vm303_vm3, %v4281_v32, -inf }
0x2351   :  { %4285 = vmax.xlane.f32.xlu0 %v4284_v51  ;;  %v6296_v51 = vld [vmem:[%s8762_s3 + $0x3] ss:$0 sm:$0xff] }
0x23d2   :  { %v3787_v37 = vpop.xlane.xlu0 %3786 }
0x23d3   :  { %v3788_v38 = vsub.f32 %v3782_v20, %v3787_v37  ;;  %v3952_v39 = vpop.xlane.xlu1 %3951  ;;  %v6294_v20 = vld [vmem:[%s8761_s7 + $0x78] sm:$0xff]  ;;  %s8772_s7 = sld [smem:[#allocation17_spill]] }
0x23d4   :  { %v3953_v40 = vsub.f32 %v3947_v23, %v3952_v39  ;;  %v7140_v21 = vpack.c.bf16 %v6294_v20, %v6293_v18  ;;  %v6311_v20 = vld [vmem:[%s8705_s14 + $0xc0] sm:$0xff] }
0x23d5   :  { %v3789_v42 = vmul.f32 1.442695, %v3788_v38 }
0x23d6   :  { %v3954_v44 = vmul.f32 1.442695, %v3953_v40  ;;  %7141 = vmatprep.subr.bf16.mxu0 %v7140_v21 }
0x23d7   :  { %7310 = vpow2.f32 %v3789_v42  ;;  %7143 = vmatpush3.bf16.msra.mxu0 %v7140_v21  ;;  %v6312_v21 = vld [vmem:[%s8705_s14 + $0xc8] sm:$0xff] }
0x23d8   :  { %7312 = vpow2.f32 %v3954_v44 }
0x23da   :  { %v4121_v46 = vpop.xlane.xlu0 %4120 }
0x23db   :  { %v4122_v43 = vsub.f32 %v4116_v26, %v4121_v46 }
0x23dd   :  { %v4123_v47 = vmul.f32 1.442695, %v4122_v43 }
0x23de   :  { %v4286_v54 = vpop.xlane.xlu0 %4285 }
0x23df   :  { %7314 = vpow2.f32 %v4123_v47  ;;  %v4287_v55 = vsub.f32 %v4281_v32, %v4286_v54 }
0x23e1   :  { %v7311_v49 = vpop.eup %7310  ;;  %v4288_v56 = vmul.f32 1.442695, %v4287_v55 }
0x23e2   :  { %v7313_v50 = vpop.eup %7312  ;;  %v3791_v57 = vsel %vm303_vm3, %v7311_v49, 0.0 }
0x23e3   :  { %3792 = vadd.xlane.f32.xlu0 %v3791_v57  ;;  %v3956_v41 = vsel %vm303_vm3, %v7313_v50, 0.0  ;;  %7316 = vpow2.f32 %v4288_v56 }
0x23e4   :  { %3957 = vadd.xlane.f32.xlu1 %v3956_v41 }
0x23e9   :  { %v7315_v52 = vpop.eup %7314 }
0x23ea   :  { %v4125_v53 = vsel %vm303_vm3, %v7315_v52, 0.0 }
0x23eb   :  { %4126 = vadd.xlane.f32.xlu0 %v4125_v53 }
0x23ed   :  { %v7317_v58 = vpop.eup %7316 }
0x23ee   :  { %v4290_v59 = vsel %vm303_vm3, %v7317_v58, 0.0 }
0x23f5   :  { %3961 = vrot.lane.b32.xlu1 %v8196_v11, %s8765_s27 }
0x23f9   :  { %4130 = vrot.lane.b32.xlu1 %v8202_v12, %s8766_s28 }
0x2401   :  { %3796 = vrot.lane.b32.xlu0 %v8196_v11, %s8766_s28 }
0x241d   :  { %4291 = vadd.xlane.f32.xlu1 %v4290_v59  ;;  %v6304_v59 = vld [vmem:[%s8703_s12 + $0x68] sm:$0xff] }
0x242e   :  { %4295 = vrot.lane.b32.xlu1 %v8202_v12, %s8765_s27 }
0x2470   :  { %v3793_v60 = vpop.xlane.xlu0 %3792 }
0x2471   :  { %7318 = vrcp.f32 %v3793_v60  ;;  %v3958_v61 = vpop.xlane.xlu1 %3957 }
0x2472   :  { %7320 = vrcp.f32 %v3958_v61  ;;  %v6305_v61 = vld [vmem:[%s8703_s12 + $0x70] sm:$0xff] }
0x2475   :  { %v3962_v1 = vpop.permute.xlu1 %3961 }
0x2478   :  { %v4127_v62 = vpop.xlane.xlu0 %4126 }
0x2479   :  { %7322 = vrcp.f32 %v4127_v62  ;;  %v4131_v9 = vpop.permute.xlu1 %4130  ;;  %v6306_v62 = vld [vmem:[%s8703_s12 + $0x78] sm:$0xff] }
0x247b   :  { %v7319_v63 = vpop.eup %7318 }
0x247c   :  { %v3795_v0 = vmul.f32 %v7319_v63, %v7311_v49  ;;  %v3797_v2 = vpop.permute.xlu0 %3796  ;;  %v7321_v5 = vpop.eup %7320  ;;  %v7148_v63 = vpack.c.bf16 %v6306_v62, %v6305_v61 }
0x247d   :  { %6855 = vmatpush3.msra.mxu1 %v3797_v2  ;;  %v3960_v8 = vmul.f32 %v7321_v5, %v7313_v50 }
0x247e   :  { %6857 = vmatmul.mubr.msk.f32.vlgmr.msra.gmra.mrb[46].mxu1 %vm303_vm3, %v3795_v0  ;;  %6864 = vmatprep.subr.mxu1 %v7436_v36 }
0x247f   :  { %6865 = vmatpush3.msra.mxu1 %v3962_v1  ;;  %6866 = vmatprep.mubr.msk.f32.mxu1 %vm7437_vm1, %v7436_v36 }
0x2480   :  { %6874 = vmatprep.subr.mxu1 %v7436_v36 }
0x2482   :  { %6867 = vmatmul.mubr.msk.f32.vlgmr.msra.gmra.mrb[48].mxu1 %vm303_vm3, %v3960_v8 }
0x2483   :  { %v7323_v10 = vpop.eup %7322  ;;  %6875 = vmatpush3.msra.mxu1 %v4131_v9  ;;  %6876 = vmatprep.mubr.msk.f32.mxu1 %vm7437_vm1, %v7436_v36 }
0x2484   :  { %v4129_v11 = vmul.f32 %v7323_v10, %v7315_v52  ;;  %6884 = vmatprep.subr.mxu1 %v7436_v36 }
0x2486   :  { %6877 = vmatmul.mubr.msk.f32.vlgmr.msra.gmra.mrb[50].mxu1 %vm303_vm3, %v4129_v11  ;;  %v6301_v11 = vld [vmem:[%s8701_s10 + $0x3] ss:$0 sm:$0xff] }
0x2487   :  { %6886 = vmatprep.mubr.msk.f32.mxu1 %vm7437_vm1, %v7436_v36 }
0x24aa   :  { %v4292_v12 = vpop.xlane.xlu1 %4291 }
0x24ab   :  { %7324 = vrcp.f32 %v4292_v12 }
0x24ae   :  { %v4296_v13 = vpop.permute.xlu1 %4295 }
0x24af   :  { %6885 = vmatpush3.msra.mxu1 %v4296_v13  ;;  %v6302_v13 = vld [vmem:[%s8702_s11 + $0x3] ss:$0 sm:$0xff] }
0x24b5   :  { %v7325_v14 = vpop.eup %7324 }
0x24b6   :  { %v4294_v15 = vmul.f32 %v7325_v14, %v7317_v58  ;;  %v6303_v58 = vld [vmem:[%s8703_s12 + $0x60] sm:$0xff] }
0x24b7   :  { %v7144_v60 = vpack.c.bf16 %v6304_v59, %v6303_v58 }
0x24b8   :  { %6887 = vmatmul.mubr.msk.f32.vlgmr.msra.gmra.mrb[52].mxu1 %vm303_vm3, %v4294_v15  ;;  %vm6035_vm3 = vcmask 7168  }
0x24b9   :  { %7145 = vmatprep.subr.bf16.mxu1 %v7144_v60 }
0x24ba   :  { %7147 = vmatpush3.bf16.msra.mxu1 %v7144_v60  ;;  %v6320_v60 = vld [vmem:[%s8706_s15 + $0x3] ss:$0 sm:$0xff]  ;;  %s8771_s15 = sld [smem:[#allocation16_spill]] }
0x24bb   :  { %7149 = vmatprep.subr.bf16.mxu1 %v7148_v63 }
0x24be   :  { %7151 = vmatpush3.bf16.msra.mxu1 %v7148_v63 }
0x2551   :  { %v3868_v22 = vpop.f32.mrb[46].mxu1 }
0x2552   :  { %v6858_v23 = vpop.f32.mrb[47].mxu1 }
0x2553   :  { %v6313_v23 = vld [vmem:[%s8705_s14 + $0xd0] sm:$0xff] }
0x2555   :  { %v4033_v35 = vpop.f32.mrb[48].mxu1 }
0x2556   :  { %4038 = vrot.lane.b32.xlu0 %v4033_v35, %s8767_s2  ;;  %v6868_v33 = vpop.f32.mrb[49].mxu1  ;;  %v6314_v35 = vld [vmem:[%s8705_s14 + $0xd8] sm:$0xff] }
0x2557   :  { %v7156_v33 = vpack.c.bf16 %v6314_v35, %v6313_v23  ;;  %v4785_v23 = vld [vmem:[%s8709_s18 + $0x18] sm:$0xff] }
0x2559   :  { %v4202_v24 = vpop.f32.mrb[50].mxu1 }
0x255a   :  { %v6878_v25 = vpop.f32.mrb[51].mxu1 }
0x255b   :  { %v6316_v25 = vld [vmem:[%s8705_s14 + $0xe8] sm:$0xff] }
0x258b   :  { %v4367_v26 = vpop.f32.mrb[52].mxu1 }
0x258c   :  { %4372 = vrot.lane.b32.xlu1 %v4367_v26, %s8767_s2  ;;  %v6888_v27 = vpop.f32.mrb[53].mxu1 }
0x258d   :  { %v6317_v27 = vld [vmem:[%s8705_s14 + $0xf0] sm:$0xff] }
0x25c8   :  { %v4039_v30 = vpop.permute.xlu0 %4038 }
0x25c9   :  { %v4041_v31 = vsel %vm228_vm2, %v3868_v22, %v4039_v30  ;;  %v7152_v22 = vpack.c.bf16 %v6312_v21, %v6311_v20  ;;  %v6318_v30 = vld [vmem:[%s8705_s14 + $0xf8] sm:$0xff]  ;;  %v4783_v20 = vld [vmem:[%s8709_s18 + $0x8] sm:$0xff] }
0x25ca   :  { %6897 = vmatprep.mubr.msk.f32.mxu0 %vm82_vm0, %v4041_v31  ;;  %v7164_v31 = vpack.c.bf16 %v6318_v30, %v6317_v27  ;;  %v4787_v27 = vld [vmem:[%s8769_s29 + $0x8] sm:$0xff]  ;;  %v4786_v30 = vld [vmem:[%s8769_s29] sm:$0xff] }
0x25cb   :  { %7153 = vmatprep.subr.bf16.mxu0 %v7152_v22 }
0x25fe   :  { %v4373_v32 = vpop.permute.xlu1 %4372 }
0x25ff   :  { %v4375_v34 = vsel %vm228_vm2, %v4202_v24, %v4373_v32  ;;  %v6315_v24 = vld [vmem:[%s8705_s14 + $0xe0] sm:$0xff]  ;;  %s8770_s14 = sld [smem:[#allocation15_spill]] }
0x2600   :  { %6898 = vmatmul.mubr.msk.f32.vlgmr.msra.gmra.mrb[36].mxu0 %vm82_vm0, %v4375_v34  ;;  %v7160_v26 = vpack.c.bf16 %v6316_v25, %v6315_v24  ;;  %v6308_v32 = vld [vmem:[%s8704_s13 + $0x3] ss:$0 sm:$0xff]  ;;  %v4918_v24 = vld [vmem:[%s8712_s21 + $0x8] sm:$0xff]  ;;  %v7444_v25 = vmov 0.0|0.0  }
0x2601   :  { %7155 = vmatpush3.bf16.msra.mxu0 %v7152_v22  ;;  %v4784_v22 = vld [vmem:[%s8709_s18 + $0x10] sm:$0xff] }
0x2602   :  { %7157 = vmatprep.subr.bf16.mxu0 %v7156_v33  ;;  %v7172_v35 = vpack.c.bf16 %v4785_v23, %v4784_v22 }
0x2605   :  { %7159 = vmatpush3.bf16.msra.mxu0 %v7156_v33  ;;  %v4917_v33 = vld [vmem:[%s8712_s21] sm:$0xff]  ;;  %s8774_s21 = sld [smem:[#allocation18_spill]] }
0x2606   :  { %7161 = vmatprep.subr.bf16.mxu0 %v7160_v26 }
0x2609   :  { %7163 = vmatpush3.bf16.msra.mxu0 %v7160_v26  ;;  %v8368_v26 = vpack.c.bf16 %v4918_v24, %v4917_v33 }
0x260a   :  { %7165 = vmatprep.subr.bf16.mxu0 %v7164_v31 }
0x260d   :  { %7167 = vmatpush3.bf16.msra.mxu0 %v7164_v31  ;;  %v7445_v31 = vmov 0  }
0x260e   :  { %7182 = vmatprep.subr.bf16.mxu0 %v7444_v25  ;;  %7221 = vset.pattern.permute.xlu1 %v7445_v31 }
0x260f   :  { %7220 = vset.pattern.permute.xlu0 %v7445_v31 }
0x26d3   :  { %v6899_v37 = vpop.f32.mrb[36].mxu0 }
0x26d4   :  { %v4467_v38 = vadd.f32 %v6899_v37, %v6296_v51  ;;  %v4461_v39 = vpop.f32.mrb[37].mxu0 }
0x26d5   :  { %v4462_v40 = vadd.f32 %v6296_v51, %v4461_v39 }
0x26d6   :  { %v4471_v42 = vadd.f32 %v4467_v38, %v8185_v7 }
0x26d7   :  { %v4470_v44 = vadd.f32 %v4462_v40, %v8183_v6 }
0x26d8   :  { %v4479_v46 = vsel %vm82_vm0, %v4471_v42, 0.0 }
0x26d9   :  { %4480 = vadd.xlane.f32.xlu1 %v4479_v46  ;;  %v4476_v43 = vsel %vm82_vm0, %v4470_v44, 0.0 }
0x26da   :  { %4477 = vadd.xlane.f32.xlu0 %v4476_v43 }
0x2766   :  { %v4481_v47 = vpop.xlane.xlu1 %4480 }
0x2767   :  { %v4483_v49 = vmul.f32 0.03125, %v4481_v47  ;;  %v4478_v50 = vpop.xlane.xlu0 %4477 }
0x2768   :  { %v4482_v57 = vmul.f32 0.03125, %v4478_v50 }
0x2769   :  { %v4485_v41 = vsub.f32 %v4471_v42, %v4483_v49 }
0x276a   :  { %v4484_v52 = vsub.f32 %v4470_v44, %v4482_v57 }
0x276b   :  { %v4487_v55 = vmul.f32 %v4485_v41, %v4485_v41 }
0x276c   :  { %v4486_v53 = vmul.f32 %v4484_v52, %v4484_v52 }
0x276d   :  { %v4491_v56 = vsel %vm82_vm0, %v4487_v55, 0.0 }
0x276e   :  { %v4488_v54 = vsel %vm82_vm0, %v4486_v53, 0.0 }
0x276f   :  { %4489 = vadd.xlane.f32.xlu0 %v4488_v54 }
0x2773   :  { %4492 = vadd.xlane.f32.xlu0 %v4491_v56 }
0x27fc   :  { %v4490_v0 = vpop.xlane.xlu0 %4489 }
0x27fd   :  { %v4494_v1 = vmul.f32 0.03125, %v4490_v0 }
0x27ff   :  { %v4496_v2 = vadd.f32 1e-12, %v4494_v1 }
0x2800   :  { %v4493_v5 = vpop.xlane.xlu0 %4492 }
0x2801   :  { %7326 = vrsqrt.f32 %v4496_v2  ;;  %v4495_v8 = vmul.f32 0.03125, %v4493_v5 }
0x2803   :  { %v4497_v9 = vadd.f32 1e-12, %v4495_v8 }
0x2805   :  { %7328 = vrsqrt.f32 %v4497_v9 }
0x280b   :  { %v7327_v10 = vpop.eup %7326 }
0x280c   :  { %v4500_v12 = vmul.f32 %v7327_v10, %v4484_v52 }
0x280e   :  { %v4508_v14 = vmul.f32 %v6301_v11, %v4500_v12 }
0x280f   :  { %v7329_v15 = vpop.eup %7328 }
0x2810   :  { %v4501_v16 = vmul.f32 %v7329_v15, %v4485_v41  ;;  %v4516_v17 = vadd.f32 %v6302_v13, %v4508_v14 }
0x2812   :  { %v4509_v18 = vmul.f32 %v6301_v11, %v4501_v16  ;;  %6908 = vmatprep.mubr.msk.f32.mxu1 %vm82_vm0, %v4516_v17 }
0x2814   :  { %v4517_v19 = vadd.f32 %v6302_v13, %v4509_v18 }
0x2816   :  { %6909 = vmatmul.mubr.msk.f32.vlgmr.msra.gmra.mrb[54].mxu1 %vm82_vm0, %v4517_v19 }
0x28e9   :  { %v6910_v34 = vpop.f32.mrb[54].mxu1 }
0x28ea   :  { %v4609_v51 = vadd.f32 %v6910_v34, %v6308_v32  ;;  %v4603_v37 = vpop.f32.mrb[55].mxu1 }
0x28eb   :  { %v4604_v38 = vadd.f32 %v6308_v32, %v4603_v37 }
0x28ec   :  { %v4615_v39 = vmul.f32 0.044715, %v4609_v51  ;;  %v4613_v56 = vmul.f32 0.5, %v4609_v51 }
0x28ed   :  { %v4614_v40 = vmul.f32 0.044715, %v4604_v38  ;;  %v4612_v54 = vmul.f32 0.5, %v4604_v38 }
0x28ee   :  { %v4617_v42 = vmul.f32 %v4615_v39, %v4609_v51 }
0x28ef   :  { %v4616_v44 = vmul.f32 %v4614_v40, %v4604_v38 }
0x28f0   :  { %v4619_v46 = vmul.f32 %v4617_v42, %v4609_v51  ;;  %v6325_v42 = vld [vmem:[%s8707_s16 + $0x3] ss:$0 sm:$0xff]  ;;  %s6117_s16 = sshll.u32 %s7447_s25, 4  ;;  %s6118_s16 = int_to_ptr.vmem [resolvable:$true] %s6117_s16 }
0x28f1   :  { %v4618_v43 = vmul.f32 %v4616_v44, %v4604_v38  ;;  %s7416_s4 = scalar_lea.vmem %s6118_s16, 32  ;;  %p7417_p1 = scmp.lt.s32.totalorder %s6118_s16, %s6118_s16 }
0x28f2   :  { %v4621_v47 = vadd.f32 %v4619_v46, %v4609_v51 }
0x28f3   :  { %v4620_v49 = vadd.f32 %v4618_v43, %v4604_v38 }
0x28f4   :  { %v4623_v50 = vmul.f32 0.7978846, %v4621_v47  ;;  %v6326_v47 = vld [vmem:[%s8708_s17 + $0x3] ss:$0 sm:$0xff]  ;;  %s7412_s17 = scalar_lea.vmem %s6118_s16, 16 }
0x28f5   :  { %v4622_v57 = vmul.f32 0.7978846, %v4620_v49  ;;  %p7413_p0 = scmp.ne.s32.totalorder %s6118_s16, %s7412_s17  ;;  %p7418_p2 = scmp.lt.s32.totalorder %s7416_s4, %s7412_s17 }
0x28f6   :  { %7330 = vtanh.f32 %v4623_v50 }
0x28f7   :  { %7332 = vtanh.f32 %v4622_v57  ;;  %v4776_v57 = vadd.f32 %v7997_v28, %v7811_v3  ;;  %v6327_v3 = vld [vmem:[%s8710_s19] ss:$0 sm:$0xff]  ;;  %s7446_s19 = smov 32   ;;  %p7419_p3 = por %p7418_p2, %p7417_p1 }
0x28f9   :  { %p7420_p4 = pnand %p7419_p3, %p7413_p0 }
0x2900   :  { %v7331_v41 = vpop.eup %7330 }
0x2901   :  { %v7333_v52 = vpop.eup %7332  ;;  %v4627_v53 = vadd.f32 1.0, %v7331_v41  ;;  %v4777_v41 = vadd.f32 %v7999_v29, %v7813_v4 }
0x2902   :  { %v4626_v55 = vadd.f32 1.0, %v7333_v52 }
0x2903   :  { %v4629_v59 = vmul.f32 %v4627_v53, %v4613_v56 }
0x2904   :  { %v4628_v58 = vmul.f32 %v4626_v55, %v4612_v54  ;;  %v4778_v54 = vadd.f32 %v4776_v57, %v8183_v6  ;;  %v4779_v55 = vadd.f32 %v4777_v41, %v8185_v7 }
0x2906   :  { %6927 = vmatprep.mubr.msk.f32.mxu0 %vm1162_vm4, %v4628_v58 }
0x2907   :  { %6928 = vmatmul.mubr.msk.f32.vlgmr.msra.gmra.mrb[38].mxu0 %vm1162_vm4, %v4629_v59  ;;  %v6330_v59 = vld [vmem:[%s8770_s14] ss:$0 sm:$0xff]  ;;  %vm6105_vm4 = vcmask 0  }
0x2908   :  { %6959 = vmatprep.mubr.msk.f32.mxu0 %vm7437_vm1, %v7436_v36  ;;  %7184 = vmatpush3.bf16.msra.mxu0 %v8368_v26 }
0x2909   :  { %7188 = vmatprep.subr.bf16.mxu0 %v7444_v25 }
0x29da   :  { %v6929_v61 = vpop.f32.mrb[38].mxu0 }
0x29db   :  { %v4725_v62 = vadd.f32 %v6929_v61, %v6320_v60  ;;  %v4719_v63 = vpop.f32.mrb[39].mxu0 }
0x29dc   :  { %v4720_v0 = vadd.f32 %v6320_v60, %v4719_v63 }
0x29dd   :  { %v4729_v1 = vadd.f32 %v4725_v62, %v4517_v19 }
0x29de   :  { %v4728_v2 = vadd.f32 %v4720_v0, %v4516_v17  ;;  %v4782_v17 = vld [vmem:[%s8709_s18] sm:$0xff]  ;;  %s8773_s18 = sld [smem:[#allocation8_spill]] }
0x29df   :  { %v4737_v5 = vsel %vm82_vm0, %v4729_v1, 0.0  ;;  %v7168_v21 = vpack.c.bf16 %v4783_v20, %v4782_v17 }
0x29e0   :  { %4738 = vadd.xlane.f32.xlu1 %v4737_v5  ;;  %v4734_v8 = vsel %vm82_vm0, %v4728_v2, 0.0 }
0x29e1   :  { %4735 = vadd.xlane.f32.xlu0 %v4734_v8  ;;  %7169 = vmatprep.subr.bf16.mxu1 %v7168_v21 }
0x29e2   :  { %7171 = vmatpush3.bf16.msra.mxu1 %v7168_v21 }
0x29e3   :  { %7173 = vmatprep.subr.bf16.mxu1 %v7172_v35 }
0x29e6   :  { %7175 = vmatpush3.bf16.msra.mxu1 %v7172_v35 }
0x29e7   :  { %7176 = vmatprep.subr.bf16.mxu1 %v7444_v25 }
0x2a6d   :  { %v4739_v9 = vpop.xlane.xlu1 %4738 }
0x2a6e   :  { %v4741_v10 = vmul.f32 0.03125, %v4739_v9  ;;  %v4736_v11 = vpop.xlane.xlu0 %4735 }
0x2a6f   :  { %v4740_v12 = vmul.f32 0.03125, %v4736_v11 }
0x2a70   :  { %v4743_v13 = vsub.f32 %v4729_v1, %v4741_v10 }
0x2a71   :  { %v4742_v14 = vsub.f32 %v4728_v2, %v4740_v12 }
0x2a72   :  { %v4745_v15 = vmul.f32 %v4743_v13, %v4743_v13 }
0x2a73   :  { %v4744_v16 = vmul.f32 %v4742_v14, %v4742_v14 }
0x2a74   :  { %v4749_v18 = vsel %vm82_vm0, %v4745_v15, 0.0 }
0x2a75   :  { %4750 = vadd.xlane.f32.xlu1 %v4749_v18  ;;  %v4746_v19 = vsel %vm82_vm0, %v4744_v16, 0.0 }
0x2a76   :  { %4747 = vadd.xlane.f32.xlu0 %v4746_v19 }
0x2a86   :  { %4796 = vperm.xlu1 %7221, %v4787_v27  }
0x2a8c   :  { %4791 = vperm.xlu0 %7220, %v4786_v30  }
0x2b02   :  { %v4751_v32 = vpop.xlane.xlu1 %4750 }
0x2b03   :  { %v4753_v34 = vmul.f32 0.03125, %v4751_v32  ;;  %v4748_v51 = vpop.xlane.xlu0 %4747 }
0x2b04   :  { %v4752_v37 = vmul.f32 0.03125, %v4748_v51 }
0x2b05   :  { %v4755_v38 = vadd.f32 1e-12, %v4753_v34 }
0x2b06   :  { %v4754_v39 = vadd.f32 1e-12, %v4752_v37  ;;  %v4797_v4 = vpop.permute.xlu1 %4796 }
0x2b07   :  { %7334 = vrsqrt.f32 %v4755_v38  ;;  %v4806_v29 = vmul.f32 %v6327_v3, %v4797_v4 }
0x2b08   :  { %7336 = vrsqrt.f32 %v4754_v39 }
0x2b0b   :  { %v4792_v28 = vpop.permute.xlu0 %4791 }
0x2b0c   :  { %v4805_v6 = vmul.f32 %v6327_v3, %v4792_v28 }
0x2b11   :  { %v7335_v40 = vpop.eup %7334 }
0x2b12   :  { %v7337_v44 = vpop.eup %7336  ;;  %v4759_v46 = vmul.f32 %v7335_v40, %v4743_v13 }
0x2b13   :  { %v4758_v43 = vmul.f32 %v7337_v44, %v4742_v14 }
0x2b14   :  { %v4767_v49 = vmul.f32 %v6325_v42, %v4759_v46 }
0x2b15   :  { %v4766_v50 = vmul.f32 %v6325_v42, %v4758_v43 }
0x2b16   :  { %v4775_v52 = vadd.f32 %v6326_v47, %v4767_v49 }
0x2b17   :  { %v4774_v53 = vadd.f32 %v6326_v47, %v4766_v50 }
0x2b18   :  { %v4781_v58 = vadd.f32 %v4779_v55, %v4775_v52 }
0x2b19   :  { %v4780_v56 = vadd.f32 %v4778_v54, %v4774_v53 }
0x2b1b   :  { %6938 = vmatprep.mubr.msk.f32.mxu1 %vm82_vm0, %v4780_v56 }
0x2b1c   :  { %6939 = vmatmul.mubr.msk.f32.vlgmr.msra.gmra.mrb[56].mxu1 %vm82_vm0, %v4781_v58 }
0x2b1d   :  { %7178 = vmatpush3.bf16.msra.mxu1 %v8368_v26  ;;  %6945 = vmatprep.mubr.msk.f32.mxu1 %vm7437_vm1, %v7436_v36 }
0x2b1e   :  { %7179 = vmatprep.subr.bf16.mxu1 %v7444_v25 }
0x2b20   :  { %6946 = vmatmul.mubr.f32.vlgmr.msra.gmra.mrb[58].mxu1 %v7436_v36 }
0x2b21   :  { %7181 = vmatpush3.bf16.msra.mxu1 %v8368_v26  ;;  %6952 = vmatprep.mubr.msk.f32.mxu1 %vm7437_vm1, %v7436_v36 }
0x2b22   :  { %7185 = vmatprep.subr.bf16.mxu1 %v7444_v25 }
0x2bef   :  { %v6940_v7 = vpop.f32.mrb[56].mxu1 }
0x2bf0   :  { %v4885_v60 = vadd.f32 %v6940_v7, %v4806_v29  ;;  %v4879_v61 = vpop.f32.mrb[57].mxu1 }
0x2bf1   :  { %v4880_v62 = vadd.f32 %v4879_v61, %v4805_v6 }
0x2bf2   :  { %v4896_v63 = vadd.f32 %v6330_v59, %v4885_v60 }
0x2bf3   :  { %v4895_v0 = vadd.f32 %v6330_v59, %v4880_v62  ;;  %v4988_v1 = vpop.f32.mrb[58].mxu1 }
0x2bf4   :  { %v4907_v2 = vrot.slane %v4896_v63, 6  ;;  %v6947_v5 = vpop.f32.mrb[59].mxu1  ;;  %v4900_v8 = vrot.slane %v4896_v63, 7  ;;  %v5028_v9 = vrot.slane %v4896_v63, 5  ;;  %v5149_v10 = vrot.slane %v4896_v63, 4 }
0x2bf5   :  { %v4905_v11 = vrot.slane %v4895_v0, 7  ;;  %v5026_v12 = vrot.slane %v4895_v0, 6  ;;  %v5023_v13 = vrot.slane %v4895_v0, 1  ;;  %v5147_v14 = vrot.slane %v4895_v0, 5 }
0x2bf6   :  { %v8409_v15 = vsel %vm4902_vm5, %v4895_v0, %v4900_v8  ;;  %v5142_v16 = vrot.slane %v4895_v0, 2  ;;  %v5144_v18 = vrot.slane %v4896_v63, 1  ;;  %v5268_v21 = vrot.slane %v4895_v0, 4 }
0x2bf7   :  { %v8412_v19 = vsel %vm4902_vm5, %v4905_v11, %v4907_v2  ;;  %v8415_v17 = vsel %vm4902_vm5, %v5026_v12, %v5028_v9  ;;  %v8418_v20 = vsel %vm4902_vm5, %v5023_v13, %v4896_v63  ;;  %v8422_v23 = vsel %vm4902_vm5, %v5147_v14, %v5149_v10 }
0x2bf8   :  { %v4911_v22 = vrot.slane %v8412_v19, 6  ;;  %v8425_v35 = vsel %vm4902_vm5, %v5142_v16, %v5144_v18  ;;  %v5270_v33 = vrot.slane %v4896_v63, 3  ;;  %v5263_v24 = vrot.slane %v4895_v0, 3 }
0x2bf9   :  { %v5265_v27 = vrot.slane %v4896_v63, 2  ;;  %v5032_v54 = vrot.slane %v8415_v17, 6  ;;  %v5153_v9 = vrot.slane %v8422_v23, 6 }
0x2bfa   :  { %4912 = vrot.lane.b32.xlu1 %v4911_v22, %s8766_s28  ;;  %v8429_v30 = vsel %vm4902_vm5, %v5268_v21, %v5270_v33 }
0x2bfb   :  { %v8432_v31 = vsel %vm4902_vm5, %v5263_v24, %v5265_v27 }
0x2bfe   :  { %4994 = vrot.lane.b32.xlu1 %v4988_v1, %s8766_s28 }
0x2c6c   :  { %v4913_v32 = vpop.permute.xlu1 %4912 }
0x2c6d   :  { %v4916_v51 = vsel %vm4915_vm6, %v8409_v15, %v4913_v32 }
0x2c70   :  { %v4995_v34 = vpop.permute.xlu1 %4994 }
0x2c71   :  { %v4997_v37 = vsel %vm4992_vm7, %v4988_v1, %v4995_v34 }
0x2c72   :  { %v4998_v38 = vadd.f32 %v4997_v37, %v4916_v51 }
0x2c74   :  { %7338 = vtanh.f32 %v4998_v38  ;;  %v6331_v40 = vmul.f32 -1.442695, %v4998_v38 }
0x2c76   :  { %7340 = vpow2.f32 %v6331_v40 }
0x2c7e   :  { %v7339_v39 = vpop.eup %7338 }
0x2c7f   :  { %5008 = vrot.lane.b32.xlu1 %v7339_v39, %s8763_s26 }
0x2c80   :  { %v7341_v42 = vpop.eup %7340 }
0x2c81   :  { %v5002_v44 = vadd.f32 1.0, %v7341_v42 }
0x2c83   :  { %7342 = vrcp.f32 %v5002_v44 }
0x2c8d   :  { %v7343_v46 = vpop.eup %7342 }
0x2c8e   :  { %v5006_v49 = vmul.f32 0.0, %v7343_v46 }
0x2cf1   :  { %v5009_v43 = vpop.permute.xlu1 %5008 }
0x2cf2   :  { %v5011_v47 = vmul.f32 %v7343_v46, %v5009_v43 }
0x2cf4   :  { %5013 = vrot.lane.b32.xlu1 %v5011_v47, %s8767_s2 }
0x2d66   :  { %v5014_v50 = vpop.permute.xlu1 %5013 }
0x2d67   :  { %v5016_v57 = vadd.f32 %v5014_v50, %v5006_v49 }
0x2d69   :  { %7344 = vtanh.f32 %v5016_v57 }
0x2d73   :  { %v7345_v41 = vpop.eup %7344 }
0x2d74   :  { %5019 = vrot.lane.b32.xlu1 %v7345_v41, %s7446_s19 }
0x2de6   :  { %v5020_v52 = vpop.permute.xlu1 %5019 }
0x2de7   :  { %v8443_v53 = vmul.f32 %v7343_v46, %v5020_v52  ;;  %v5274_v46 = vrot.slane %v8429_v30, 6 }
0x2de9   :  { %5038 = vrot.lane.b32.xlu1 %v8443_v53, %s8768_s6 }
0x2ded   :  { %5033 = vrot.lane.b32.xlu1 %v5032_v54, %s8766_s28 }
0x2e5b   :  { %v8449_v55 = vpop.permute.xlu1 %5038 }
0x2e5c   :  { %6953 = vmatmul.mubr.msk.f32.vlgmr.msra.gmra.mrb[60].mxu1 %vm228_vm2, %v8449_v55 }
0x2e5d   :  { %7187 = vmatpush3.bf16.msra.mxu1 %v8368_v26  ;;  %6966 = vmatprep.mubr.msk.f32.mxu1 %vm7437_vm1, %v7436_v36 }
0x2e5e   :  { %7191 = vmatprep.subr.bf16.mxu1 %v7444_v25 }
0x2e5f   :  { %v5034_v3 = vpop.permute.xlu1 %5033 }
0x2e60   :  { %v5036_v28 = vsel %vm4915_vm6, %v8418_v20, %v5034_v3 }
0x2f2f   :  { %v5108_v56 = vpop.f32.mrb[60].mxu1 }
0x2f30   :  { %5113 = vrot.lane.b32.xlu0 %v5108_v56, %s8766_s28  ;;  %v6954_v58 = vpop.f32.mrb[61].mxu1 }
0x2fa2   :  { %v5114_v4 = vpop.permute.xlu0 %5113 }
0x2fa3   :  { %v5116_v29 = vsel %vm4992_vm7, %v5108_v56, %v5114_v4 }
0x2fa4   :  { %v5117_v6 = vadd.f32 %v5116_v29, %v5036_v28 }
0x2fa6   :  { %7346 = vtanh.f32 %v5117_v6  ;;  %v6333_v59 = vmul.f32 -1.442695, %v5117_v6 }
0x2fa8   :  { %7348 = vpow2.f32 %v6333_v59 }
0x2fb0   :  { %v7347_v7 = vpop.eup %7346 }
0x2fb1   :  { %5127 = vrot.lane.b32.xlu1 %v7347_v7, %s8763_s26 }
0x2fb2   :  { %v7349_v60 = vpop.eup %7348 }
0x2fb3   :  { %v5121_v61 = vadd.f32 1.0, %v7349_v60 }
0x2fb5   :  { %7350 = vrcp.f32 %v5121_v61 }
0x2fbf   :  { %v7351_v62 = vpop.eup %7350 }
0x2fc0   :  { %v5125_v1 = vmul.f32 %v7351_v62, %v5016_v57 }
0x3023   :  { %v5128_v63 = vpop.permute.xlu1 %5127 }
0x3024   :  { %v5130_v0 = vmul.f32 %v7351_v62, %v5128_v63  ;;  %v5385_v63 = vrot.slane %v8432_v31, 6 }
0x3026   :  { %5132 = vrot.lane.b32.xlu0 %v5130_v0, %s8767_s2 }
0x3098   :  { %v5133_v2 = vpop.permute.xlu0 %5132 }
0x3099   :  { %v5135_v5 = vadd.f32 %v5133_v2, %v5125_v1 }
0x309b   :  { %7352 = vtanh.f32 %v5135_v5 }
0x30a5   :  { %v7353_v8 = vpop.eup %7352 }
0x30a6   :  { %5138 = vrot.lane.b32.xlu1 %v7353_v8, %s7446_s19 }
0x30aa   :  { %5154 = vrot.lane.b32.xlu1 %v5153_v9, %s8766_s28 }
0x3118   :  { %v5139_v10 = vpop.permute.xlu1 %5138 }
0x3119   :  { %v8467_v11 = vmul.f32 %v7351_v62, %v5139_v10 }
0x311b   :  { %5159 = vrot.lane.b32.xlu0 %v8467_v11, %s8768_s6 }
0x311c   :  { %v5155_v16 = vpop.permute.xlu1 %5154 }
0x311d   :  { %v5157_v21 = vsel %vm4915_vm6, %v8425_v35, %v5155_v16 }
0x318d   :  { %v8471_v12 = vpop.permute.xlu0 %5159 }
0x318e   :  { %6960 = vmatmul.mubr.msk.f32.vlgmr.msra.gmra.mrb[40].mxu0 %vm228_vm2, %v8471_v12 }
0x318f   :  { %7190 = vmatpush3.bf16.msra.mxu0 %v8368_v26  ;;  %6973 = vmatprep.mubr.msk.f32.mxu0 %vm7437_vm1, %v7436_v36 }
0x3190   :  { %7194 = vmatprep.subr.bf16.mxu0 %v7444_v25 }
0x3261   :  { %v5229_v13 = vpop.f32.mrb[40].mxu0 }
0x3262   :  { %5234 = vrot.lane.b32.xlu0 %v5229_v13, %s8766_s28  ;;  %v6961_v14 = vpop.f32.mrb[41].mxu0 }
0x32d4   :  { %v5235_v18 = vpop.permute.xlu0 %5234 }
0x32d5   :  { %v5237_v22 = vsel %vm4992_vm7, %v5229_v13, %v5235_v18 }
0x32d6   :  { %v5238_v33 = vadd.f32 %v5237_v22, %v5157_v21 }
0x32d8   :  { %7354 = vtanh.f32 %v5238_v33  ;;  %v6335_v27 = vmul.f32 -1.442695, %v5238_v33 }
0x32da   :  { %7356 = vpow2.f32 %v6335_v27 }
0x32e2   :  { %v7355_v24 = vpop.eup %7354 }
0x32e3   :  { %5248 = vrot.lane.b32.xlu1 %v7355_v24, %s8763_s26 }
0x32e4   :  { %v7357_v32 = vpop.eup %7356 }
0x32e5   :  { %v5242_v34 = vadd.f32 1.0, %v7357_v32 }
0x32e7   :  { %7358 = vrcp.f32 %v5242_v34 }
0x32f1   :  { %v7359_v51 = vpop.eup %7358 }
0x32f2   :  { %v5246_v39 = vmul.f32 %v7359_v51, %v5135_v5 }
0x3355   :  { %v5249_v37 = vpop.permute.xlu1 %5248 }
0x3356   :  { %v5251_v38 = vmul.f32 %v7359_v51, %v5249_v37  ;;  %v5496_v37 = vrot.slane %v8425_v35, 6 }
0x3358   :  { %5253 = vrot.lane.b32.xlu0 %v5251_v38, %s8767_s2 }
0x33ca   :  { %v5254_v40 = vpop.permute.xlu0 %5253 }
0x33cb   :  { %v5256_v42 = vadd.f32 %v5254_v40, %v5246_v39 }
0x33cd   :  { %7360 = vtanh.f32 %v5256_v42 }
0x33d7   :  { %v7361_v44 = vpop.eup %7360 }
0x33d8   :  { %5259 = vrot.lane.b32.xlu1 %v7361_v44, %s7446_s19 }
0x33dc   :  { %5275 = vrot.lane.b32.xlu1 %v5274_v46, %s8766_s28 }
0x344a   :  { %v5260_v43 = vpop.permute.xlu1 %5259 }
0x344b   :  { %v8489_v47 = vmul.f32 %v7359_v51, %v5260_v43 }
0x344d   :  { %5280 = vrot.lane.b32.xlu0 %v8489_v47, %s8768_s6  ;;  %v5860_v48 = vrot.slane %v8489_v47, 2 }
0x344e   :  { %v5276_v41 = vpop.permute.xlu1 %5275 }
0x344f   :  { %v5278_v54 = vsel %vm4915_vm6, %v8432_v31, %v5276_v41 }
0x34bf   :  { %v8493_v49 = vpop.permute.xlu0 %5280 }
0x34c0   :  { %6967 = vmatmul.mubr.msk.f32.vlgmr.msra.gmra.mrb[62].mxu1 %vm228_vm2, %v8493_v49 }
0x34c1   :  { %7193 = vmatpush3.bf16.msra.mxu1 %v8368_v26  ;;  %6980 = vmatprep.mubr.msk.f32.mxu1 %vm7437_vm1, %v7436_v36 }
0x34c2   :  { %7197 = vmatprep.subr.bf16.mxu1 %v7444_v25 }
0x3593   :  { %v5350_v50 = vpop.f32.mrb[62].mxu1 }
0x3594   :  { %5355 = vrot.lane.b32.xlu0 %v5350_v50, %s8766_s28  ;;  %v6968_v57 = vpop.f32.mrb[63].mxu1 }
0x3606   :  { %v5356_v52 = vpop.permute.xlu0 %5355 }
0x3607   :  { %v5358_v56 = vsel %vm4992_vm7, %v5350_v50, %v5356_v52 }
0x3608   :  { %v5359_v58 = vadd.f32 %v5358_v56, %v5278_v54 }
0x360a   :  { %7362 = vtanh.f32 %v5359_v58  ;;  %v6337_v4 = vmul.f32 -1.442695, %v5359_v58 }
0x360c   :  { %7364 = vpow2.f32 %v6337_v4 }
0x3614   :  { %v7363_v3 = vpop.eup %7362 }
0x3615   :  { %5369 = vrot.lane.b32.xlu1 %v7363_v3, %s8763_s26 }
0x3616   :  { %v7365_v25 = vpop.eup %7364 }
0x3617   :  { %v5363_v28 = vadd.f32 1.0, %v7365_v25 }
0x3619   :  { %7366 = vrcp.f32 %v5363_v28 }
0x3623   :  { %v7367_v29 = vpop.eup %7366 }
0x3624   :  { %v5367_v59 = vmul.f32 %v7367_v29, %v5256_v42 }
0x3687   :  { %v5370_v6 = vpop.permute.xlu1 %5369 }
0x3688   :  { %v5372_v7 = vmul.f32 %v7367_v29, %v5370_v6 }
0x368a   :  { %5374 = vrot.lane.b32.xlu0 %v5372_v7, %s8767_s2 }
0x36fc   :  { %v5375_v60 = vpop.permute.xlu0 %5374 }
0x36fd   :  { %v5377_v61 = vadd.f32 %v5375_v60, %v5367_v59 }
0x36ff   :  { %7368 = vtanh.f32 %v5377_v61 }
0x3709   :  { %v7369_v62 = vpop.eup %7368 }
0x370a   :  { %5380 = vrot.lane.b32.xlu1 %v7369_v62, %s7446_s19 }
0x370e   :  { %5386 = vrot.lane.b32.xlu1 %v5385_v63, %s8766_s28 }
0x377c   :  { %v5381_v0 = vpop.permute.xlu1 %5380 }
0x377d   :  { %v8511_v1 = vmul.f32 %v7367_v29, %v5381_v0  ;;  %v5607_v29 = vrot.slane %v8418_v20, 6 }
0x377f   :  { %5391 = vrot.lane.b32.xlu0 %v8511_v1, %s8768_s6 }
0x3780   :  { %v5387_v8 = vpop.permute.xlu1 %5386 }
0x3781   :  { %v5389_v10 = vsel %vm4915_vm6, %v8429_v30, %v5387_v8 }
0x37f1   :  { %v8515_v2 = vpop.permute.xlu0 %5391 }
0x37f2   :  { %6974 = vmatmul.mubr.msk.f32.vlgmr.msra.gmra.mrb[42].mxu0 %vm228_vm2, %v8515_v2 }
0x37f3   :  { %7196 = vmatpush3.bf16.msra.mxu0 %v8368_v26  ;;  %6987 = vmatprep.mubr.msk.f32.mxu0 %vm7437_vm1, %v7436_v36 }
0x38c5   :  { %v5461_v5 = vpop.f32.mrb[42].mxu0 }
0x38c6   :  { %5466 = vrot.lane.b32.xlu0 %v5461_v5, %s8766_s28  ;;  %v6975_v31 = vpop.f32.mrb[43].mxu0 }
0x3938   :  { %v5467_v9 = vpop.permute.xlu0 %5466 }
0x3939   :  { %v5469_v13 = vsel %vm4992_vm7, %v5461_v5, %v5467_v9 }
0x393a   :  { %v5470_v14 = vadd.f32 %v5469_v13, %v5389_v10 }
0x393c   :  { %7370 = vtanh.f32 %v5470_v14  ;;  %v6339_v18 = vmul.f32 -1.442695, %v5470_v14 }
0x393e   :  { %7372 = vpow2.f32 %v6339_v18 }
0x3946   :  { %v7371_v16 = vpop.eup %7370 }
0x3947   :  { %5480 = vrot.lane.b32.xlu1 %v7371_v16, %s8763_s26 }
0x3948   :  { %v7373_v21 = vpop.eup %7372 }
0x3949   :  { %v5474_v22 = vadd.f32 1.0, %v7373_v21 }
0x394b   :  { %7374 = vrcp.f32 %v5474_v22 }
0x3955   :  { %v7375_v33 = vpop.eup %7374 }
0x3956   :  { %v5478_v32 = vmul.f32 %v7375_v33, %v5377_v61 }
0x39b9   :  { %v5481_v24 = vpop.permute.xlu1 %5480 }
0x39ba   :  { %v5483_v27 = vmul.f32 %v7375_v33, %v5481_v24 }
0x39bc   :  { %5485 = vrot.lane.b32.xlu0 %v5483_v27, %s8767_s2 }
0x3a2e   :  { %v5486_v30 = vpop.permute.xlu0 %5485 }
0x3a2f   :  { %v5488_v34 = vadd.f32 %v5486_v30, %v5478_v32 }
0x3a31   :  { %7376 = vtanh.f32 %v5488_v34 }
0x3a3b   :  { %v7377_v51 = vpop.eup %7376 }
0x3a3c   :  { %5491 = vrot.lane.b32.xlu1 %v7377_v51, %s7446_s19 }
0x3a40   :  { %5497 = vrot.lane.b32.xlu1 %v5496_v37, %s8766_s28 }
0x3aae   :  { %v5492_v38 = vpop.permute.xlu1 %5491 }
0x3aaf   :  { %v8532_v39 = vmul.f32 %v7375_v33, %v5492_v38  ;;  %v5718_v33 = vrot.slane %v8409_v15, 6 }
0x3ab1   :  { %5502 = vrot.lane.b32.xlu0 %v8532_v39, %s8768_s6 }
0x3ab2   :  { %v5498_v44 = vpop.permute.xlu1 %5497 }
0x3ab3   :  { %v5500_v43 = vsel %vm4915_vm6, %v8422_v23, %v5498_v44 }
0x3b23   :  { %v8536_v40 = vpop.permute.xlu0 %5502 }
0x3b24   :  { %6981 = vmatmul.mubr.msk.f32.vlgmr.msra.gmra.mrb[64].mxu1 %vm228_vm2, %v8536_v40 }
0x3b25   :  { %7199 = vmatpush3.bf16.msra.mxu1 %v8368_v26  ;;  %6994 = vmatprep.mubr.msk.f32.mxu1 %vm7437_vm1, %v7436_v36 }
0x3bf7   :  { %v5572_v42 = vpop.f32.mrb[64].mxu1 }
0x3bf8   :  { %5577 = vrot.lane.b32.xlu0 %v5572_v42, %s8766_s28  ;;  %v6982_v35 = vpop.f32.mrb[65].mxu1 }
0x3c6a   :  { %v5578_v46 = vpop.permute.xlu0 %5577 }
0x3c6b   :  { %v5580_v50 = vsel %vm4992_vm7, %v5572_v42, %v5578_v46 }
0x3c6c   :  { %v5581_v57 = vadd.f32 %v5580_v50, %v5500_v43 }
0x3c6e   :  { %7378 = vtanh.f32 %v5581_v57  ;;  %v6341_v26 = vmul.f32 -1.442695, %v5581_v57 }
0x3c70   :  { %7380 = vpow2.f32 %v6341_v26 }
0x3c78   :  { %v7379_v41 = vpop.eup %7378 }
0x3c79   :  { %5591 = vrot.lane.b32.xlu1 %v7379_v41, %s8763_s26 }
0x3c7a   :  { %v7381_v52 = vpop.eup %7380 }
0x3c7b   :  { %v5585_v54 = vadd.f32 1.0, %v7381_v52  ;;  %v5854_v52 = vrot.slane %v8511_v1, 2  ;;  %v5906_v1 = vld [vmem:[%s8771_s15 + $0x8] sm:$0xff] }
0x3c7d   :  { %7382 = vrcp.f32 %v5585_v54  ;;  %v5874_v54 = vrot.slane %v8443_v53, 2  ;;  %v5905_v53 = vld [vmem:[%s8771_s15] sm:$0xff] }
0x3c87   :  { %v7383_v56 = vpop.eup %7382 }
0x3c88   :  { %v5589_v4 = vmul.f32 %v7383_v56, %v5488_v34 }
0x3ceb   :  { %v5592_v58 = vpop.permute.xlu1 %5591 }
0x3cec   :  { %v5594_v3 = vmul.f32 %v7383_v56, %v5592_v58 }
0x3cee   :  { %5596 = vrot.lane.b32.xlu0 %v5594_v3, %s8767_s2 }
0x3d60   :  { %v5597_v23 = vpop.permute.xlu0 %5596 }
0x3d61   :  { %v5599_v25 = vadd.f32 %v5597_v23, %v5589_v4  ;;  %v7200_v23 = vpack.c.bf16 %v5906_v1, %v5905_v53 }
0x3d63   :  { %7384 = vtanh.f32 %v5599_v25  ;;  %7201 = vmatprep.subr.bf16.mxu0 %v7200_v23 }
0x3d6d   :  { %v7385_v28 = vpop.eup %7384 }
0x3d6e   :  { %5602 = vrot.lane.b32.xlu1 %v7385_v28, %s7446_s19 }
0x3d72   :  { %5608 = vrot.lane.b32.xlu1 %v5607_v29, %s8766_s28 }
0x3de0   :  { %v5603_v6 = vpop.permute.xlu1 %5602 }
0x3de1   :  { %v8553_v7 = vmul.f32 %v7383_v56, %v5603_v6 }
0x3de3   :  { %5613 = vrot.lane.b32.xlu0 %v8553_v7, %s8768_s6  ;;  %v5842_v47 = vrot.slane %v8553_v7, 2 }
0x3de4   :  { %v5609_v62 = vpop.permute.xlu1 %5608 }
0x3de5   :  { %v5611_v20 = vsel %vm4915_vm6, %v8415_v17, %v5609_v62 }
0x3e55   :  { %v8557_v59 = vpop.permute.xlu0 %5613 }
0x3e56   :  { %6988 = vmatmul.mubr.msk.f32.vlgmr.msra.gmra.mrb[44].mxu0 %vm228_vm2, %v8557_v59 }
0x3e57   :  { %7203 = vmatpush3.bf16.msra.mxu0 %v7200_v23 }
0x3f29   :  { %v5683_v60 = vpop.f32.mrb[44].mxu0 }
0x3f2a   :  { %5688 = vrot.lane.b32.xlu0 %v5683_v60, %s8766_s28  ;;  %v6989_v61 = vpop.f32.mrb[45].mxu0 }
0x3f9c   :  { %v5689_v63 = vpop.permute.xlu0 %5688 }
0x3f9d   :  { %v5691_v0 = vsel %vm4992_vm7, %v5683_v60, %v5689_v63 }
0x3f9e   :  { %v5692_v5 = vadd.f32 %v5691_v0, %v5611_v20 }
0x3fa0   :  { %7386 = vtanh.f32 %v5692_v5  ;;  %v6343_v8 = vmul.f32 -1.442695, %v5692_v5 }
0x3fa2   :  { %7388 = vpow2.f32 %v6343_v8 }
0x3faa   :  { %v7387_v31 = vpop.eup %7386 }
0x3fab   :  { %5702 = vrot.lane.b32.xlu1 %v7387_v31, %s8763_s26 }
0x3fac   :  { %v7389_v9 = vpop.eup %7388 }
0x3fad   :  { %v5696_v10 = vadd.f32 1.0, %v7389_v9 }
0x3faf   :  { %7390 = vrcp.f32 %v5696_v10 }
0x3fb9   :  { %v7391_v13 = vpop.eup %7390 }
0x3fba   :  { %v5700_v18 = vmul.f32 %v7391_v13, %v5599_v25  ;;  %v5907_v25 = vld [vmem:[%s8771_s15 + $0x10] sm:$0xff] }
0x401d   :  { %v5703_v14 = vpop.permute.xlu1 %5702 }
0x401e   :  { %v5705_v16 = vmul.f32 %v7391_v13, %v5703_v14 }
0x4020   :  { %5707 = vrot.lane.b32.xlu0 %v5705_v16, %s8767_s2 }
0x4092   :  { %v5708_v17 = vpop.permute.xlu0 %5707 }
0x4093   :  { %v5710_v21 = vadd.f32 %v5708_v17, %v5700_v18 }
0x4095   :  { %7392 = vtanh.f32 %v5710_v21 }
0x409f   :  { %v7393_v22 = vpop.eup %7392 }
0x40a0   :  { %5713 = vrot.lane.b32.xlu1 %v7393_v22, %s7446_s19 }
0x40a4   :  { %5719 = vrot.lane.b32.xlu1 %v5718_v33, %s8766_s28 }
0x4112   :  { %v5714_v24 = vpop.permute.xlu1 %5713 }
0x4113   :  { %v5716_v27 = vmul.f32 %v7391_v13, %v5714_v24 }
0x4115   :  { %5724 = vrot.lane.b32.xlu0 %v5716_v27, %s8768_s6  ;;  %v5836_v26 = vrot.slane %v5716_v27, 2 }
0x4116   :  { %v5720_v51 = vpop.permute.xlu1 %5719 }
0x4117   :  { %v5722_v15 = vsel %vm4915_vm6, %v8412_v19, %v5720_v51  ;;  %v5848_v19 = vrot.slane %v8532_v39, 2  ;;  %v5866_v39 = vrot.slane %v8467_v11, 2  ;;  %v5908_v11 = vld [vmem:[%s8771_s15 + $0x18] sm:$0xff] }
0x4118   :  { %v7204_v28 = vpack.c.bf16 %v5908_v11, %v5907_v25 }
0x411a   :  { %7205 = vmatprep.subr.bf16.mxu0 %v7204_v28 }
0x411b   :  { %7207 = vmatpush3.bf16.msra.mxu0 %v7204_v28 }
0x4187   :  { %v8572_v32 = vpop.permute.xlu0 %5724 }
0x4188   :  { %6995 = vmatmul.mubr.msk.f32.vlgmr.msra.gmra.mrb[66].mxu1 %vm228_vm2, %v8572_v32 }
0x425b   :  { %v5794_v30 = vpop.f32.mrb[66].mxu1 }
0x425c   :  { %5799 = vrot.lane.b32.xlu0 %v5794_v30, %s8766_s28  ;;  %v6996_v34 = vpop.f32.mrb[67].mxu1 }
0x42ce   :  { %v5800_v37 = vpop.permute.xlu0 %5799 }
0x42cf   :  { %v5802_v38 = vsel %vm4992_vm7, %v5794_v30, %v5800_v37 }
0x42d0   :  { %v5803_v42 = vadd.f32 %v5802_v38, %v5722_v15  ;;  %v5994_v38 = vand.u32 127, %v221_v45 }
0x42d2   :  { %7394 = vtanh.f32 %v5803_v42  ;;  %v6345_v44 = vmul.f32 -1.442695, %v5803_v42 }
0x42d4   :  { %7396 = vpow2.f32 %v6345_v44 }
0x42dc   :  { %v7395_v35 = vpop.eup %7394 }
0x42dd   :  { %5813 = vrot.lane.b32.xlu1 %v7395_v35, %s8763_s26 }
0x42de   :  { %v7397_v46 = vpop.eup %7396 }
0x42df   :  { %v5807_v43 = vadd.f32 1.0, %v7397_v46 }
0x42e1   :  { %7398 = vrcp.f32 %v5807_v43 }
0x42eb   :  { %v7399_v50 = vpop.eup %7398 }
0x42ec   :  { %v5811_v56 = vmul.f32 %v7399_v50, %v5710_v21 }
0x434f   :  { %v5814_v57 = vpop.permute.xlu1 %5813 }
0x4350   :  { %v5816_v41 = vmul.f32 %v7399_v50, %v5814_v57 }
0x4352   :  { %5818 = vrot.lane.b32.xlu0 %v5816_v41, %s8767_s2 }
0x4356   :  { %5837 = vrot.lane.b32.xlu0 %v5836_v26, %s8763_s26 }
0x435a   :  { %5861 = vrot.lane.b32.xlu0 %v5860_v48, %s8763_s26 }
0x435e   :  { %5849 = vrot.lane.b32.xlu0 %v5848_v19, %s8763_s26 }
0x4362   :  { %5855 = vrot.lane.b32.xlu0 %v5854_v52, %s8763_s26 }
0x4366   :  { %5875 = vrot.lane.b32.xlu0 %v5874_v54, %s8763_s26 }
0x43c4   :  { %v5819_v58 = vpop.permute.xlu0 %5818 }
0x43c5   :  { %v5821_v3 = vadd.f32 %v5819_v58, %v5811_v56 }
0x43c7   :  { %7400 = vtanh.f32 %v5821_v3 }
0x43c8   :  { %v5838_v60 = vpop.permute.xlu0 %5837 }
0x43c9   :  { %v5840_v0 = vsel %vm228_vm2, %v8471_v12, %v5838_v60 }
0x43ca   :  { %v5880_v9 = vrot.slane %v5840_v0, 6 }
0x43cc   :  { %v5862_v61 = vpop.permute.xlu0 %5861 }
0x43cd   :  { %v5864_v14 = vsel %vm228_vm2, %v8557_v59, %v5862_v61 }
0x43ce   :  { %v5889_v22 = vrot.slane %v5864_v14, 6 }
0x43d0   :  { %v5850_v63 = vpop.permute.xlu0 %5849 }
0x43d1   :  { %v7401_v4 = vpop.eup %7400  ;;  %v5852_v8 = vsel %vm228_vm2, %v8515_v2, %v5850_v63 }
0x43d2   :  { %5824 = vrot.lane.b32.xlu1 %v7401_v4, %s7446_s19  ;;  %v5886_v12 = vrot.slane %v5852_v8, 2 }
0x43d4   :  { %v5856_v5 = vpop.permute.xlu0 %5855 }
0x43d5   :  { %v5858_v2 = vsel %vm228_vm2, %v8536_v40, %v5856_v5 }
0x43d6   :  { %5843 = vrot.lane.b32.xlu1 %v5842_v47, %s8763_s26  ;;  %v6039_v47 = vld [vmem:[%s8773_s18 + $0x8] sm:$0xff] }
0x43d7   :  { %vm6075_vm1 = vcmp.ne.s32.totalorder %v6039_v47, 4294967196 }
0x43d8   :  { %v5876_v33 = vpop.permute.xlu0 %5875 }
0x43da   :  { %5867 = vrot.lane.b32.xlu1 %v5866_v39, %s8763_s26  ;;  %v6038_v39 = vld [vmem:[%s8773_s18] sm:$0xff] }
0x4444   :  { %v5825_v29 = vpop.permute.xlu1 %5824 }
0x4445   :  { %v5827_v6 = vmul.f32 %v7399_v50, %v5825_v29 }
0x4447   :  { %v5830_v7 = vrot.slane %v5827_v6, 2 }
0x4448   :  { %v5844_v62 = vpop.permute.xlu1 %5843 }
0x4449   :  { %5831 = vrot.lane.b32.xlu1 %v5830_v7, %s8763_s26  ;;  %v5846_v31 = vsel %vm228_vm2, %v8493_v49, %v5844_v62 }
0x444a   :  { %v5883_v16 = vrot.slane %v5846_v31, 4  ;;  %v6349_v31 = vsel %vm6075_vm1, 1.0, %v7436_v36 }
0x444c   :  { %v5868_v20 = vpop.permute.xlu1 %5867 }
0x444d   :  { %5871 = vrot.lane.b32.xlu1 %v5827_v6, %s8768_s6  ;;  %v5870_v10 = vsel %vm228_vm2, %v8572_v32, %v5868_v20 }
0x444e   :  { %v5892_v17 = vrot.slane %v5870_v10, 4 }
0x44bb   :  { %v5832_v13 = vpop.permute.xlu1 %5831 }
0x44bc   :  { %v5834_v18 = vsel %vm228_vm2, %v8449_v55, %v5832_v13  ;;  %v5902_v55 = vsel %vm4915_vm6, %v5858_v2, %v5889_v22 }
0x44bd   :  { %v5897_v49 = vsel %vm4915_vm6, %v5834_v18, %v5880_v9  ;;  %v5903_v30 = vsel %vm5898_vm9, %v5902_v55, %v5892_v17  ;;  %v6085_v9 = vsel %vm6035_vm3, %v6349_v31, 0.0 }
0x44be   :  { %v5899_v21 = vsel %vm5898_vm9, %v5897_v49, %v5883_v16 }
0x44bf   :  { %v5872_v24 = vpop.permute.xlu1 %5871  ;;  %v5901_v27 = vsel %vm5900_vm8, %v5899_v21, %v5886_v12 }
0x44c0   :  { %v5878_v59 = vsel %vm228_vm2, %v5872_v24, %v5876_v33  ;;  %7005 = vmatprep.mubr.msk.f32.mxu0 %vm82_vm0, %v5901_v27  ;;  %vm6074_vm2 = vcmp.ne.s32.totalorder %v6038_v39, 4294967196 }
0x44c1   :  { %v5895_v32 = vrot.slane %v5878_v59, 2  ;;  %v6348_v8 = vsel %vm6074_vm2, 1.0, %v7436_v36 }
0x44c2   :  { %v6084_v10 = vsel %vm6035_vm3, %v6348_v8, 0.0 }
0x44c3   :  { %v5904_v34 = vsel %vm5900_vm8, %v5903_v30, %v5895_v32  ;;  %v6086_v13 = vadd.f32 %v6085_v9, %v6084_v10 }
0x44c4   :  { %7006 = vmatmul.mubr.msk.f32.vlgmr.msra.gmra.mrb[46].mxu0 %vm82_vm0, %v5904_v34 }
0x44c5   :  { %v6087_v16 = vrot.slane %v6086_v13, 4 }
0x44c7   :  { %v6088_v17 = vadd.f32 %v6087_v16, %v6086_v13 }
0x44c9   :  { %v6089_v24 = vrot.slane %v6088_v17, 2 }
0x44cb   :  { %v6090_v32 = vadd.f32 %v6089_v24, %v6088_v17 }
0x4597   :  { %v7007_v40 = vpop.f32.mrb[46].mxu0 }
0x4598   :  { %5992 = vst.msk [vmem:[%s8772_s7 + $0x8] sm:$0xff] %vm5990_vm10, %v7007_v40  ;;  %v5981_v51 = vpop.f32.mrb[47].mxu0  ;;  %v5998_v37 = vsel %vm5990_vm10, %v7007_v40, -inf }
0x4599   :  { %5991 = vst.msk [vmem:[%s8772_s7] sm:$0xff] %vm5990_vm10, %v5981_v51  ;;  %5999 = vmax.xlane.f32.xlu0 %v5998_v37  ;;  %v5995_v15 = vsel %vm5990_vm10, %v5981_v51, -inf  ;;  %v6091_v37 = vrot.slane %v6090_v32, 1 }
0x459a   :  { %5996 = vmax.xlane.f32.xlu1 %v5995_v15 }
0x4626   :  { %v8643_v42 = vpop.xlane.xlu0 %5999 }
0x4627   :  { %vm6002_vm11 = vcmp.eq.f32.partialorder %v7007_v40, %v8643_v42  ;;  %v6041_v35 = vsub.f32 %v7007_v40, %v8643_v42  ;;  %v8647_v44 = vpop.xlane.xlu1 %5996 }
0x4628   :  { %v6004_v46 = vsel %vm6002_vm11, %v5994_v38, 5  ;;  %vm6001_vm12 = vcmp.eq.f32.partialorder %v5981_v51, %v8647_v44  ;;  %v6040_v43 = vsub.f32 %v5981_v51, %v8647_v44 }
0x4629   :  { %v6044_v50 = vmul.f32 1.442695, %v6041_v35  ;;  %v6003_v57 = vsel %vm6001_vm12, %v5994_v38, 5  ;;  %v6020_v41 = vsel %vm5990_vm10, %v6004_v46, 2147483647  ;;  %v6092_v35 = vadd.f32 %v6091_v37, %v6090_v32 }
0x462a   :  { %v6042_v26 = vmul.f32 1.442695, %v6040_v43  ;;  %v6022_v48 = vshra.s32 %v6020_v41, 16  ;;  %v6005_v45 = vsel %vm5990_vm10, %v6003_v57, 2147483647  ;;  %v6021_v53 = vand.u32 65535, %v6020_v41 }
0x462b   :  { %7402 = vpow2.f32 %v6044_v50  ;;  %v6007_v52 = vshra.s32 %v6005_v45, 16  ;;  %v6006_v25 = vand.u32 65535, %v6005_v45  ;;  %v6093_v57 = vmax.f32 %v6092_v35, 1.0 }
0x462c   :  { %7404 = vpow2.f32 %v6042_v26  ;;  %v6024_v19 = vcvt.s32.f32 %v6022_v48  ;;  %v6023_v23 = vcvt.s32.f32 %v6021_v53 }
0x462d   :  { %v6009_v54 = vcvt.s32.f32 %v6007_v52  ;;  %v6008_v29 = vcvt.s32.f32 %v6006_v25 }
0x462e   :  { %6025 = vmin.xlane.f32.xlu0 %v6024_v19 }
0x4632   :  { %6010 = vmin.xlane.f32.xlu0 %v6009_v54 }
0x4635   :  { %v7403_v56 = vpop.eup %7402 }
0x4636   :  { %v7405_v58 = vpop.eup %7404  ;;  %v6049_v3 = vsel %vm5990_vm10, %v7403_v56, 0.0 }
0x4637   :  { %6050 = vadd.xlane.f32.xlu1 %v6049_v3  ;;  %v6046_v4 = vsel %vm5990_vm10, %v7405_v58, 0.0 }
0x4638   :  { %6047 = vadd.xlane.f32.xlu0 %v6046_v4 }
0x4648   :  { %6062 = vperm.xlu1 %7221, %v6039_v47  }
0x464e   :  { %6059 = vperm.xlu0 %7220, %v6038_v39  }
0x46bb   :  { %v6026_v1 = vpop.xlane.xlu0 %6025 }
0x46bc   :  { %vm6027_vm13 = vcmp.eq.f32.partialorder %v6024_v19, %v6026_v1  ;;  %v6032_v14 = vcvt.f32.s32 %v6026_v1 }
0x46bd   :  { %v6028_v11 = vsel %vm6027_vm13, %v6023_v23, inf }
0x46be   :  { %6029 = vmin.xlane.f32.xlu1 %v6028_v11  ;;  %v6033_v12 = vshll.u32 %v6032_v14, 16 }
0x46bf   :  { %v6011_v28 = vpop.xlane.xlu0 %6010 }
0x46c0   :  { %vm6012_vm14 = vcmp.eq.f32.partialorder %v6009_v54, %v6011_v28  ;;  %v6017_v49 = vcvt.f32.s32 %v6011_v28 }
0x46c1   :  { %v6013_v6 = vsel %vm6012_vm14, %v6008_v29, inf }
0x46c2   :  { %6014 = vmin.xlane.f32.xlu1 %v6013_v6  ;;  %v6018_v33 = vshll.u32 %v6017_v49, 16 }
0x46c4   :  { %v6051_v7 = vpop.xlane.xlu1 %6050 }
0x46c5   :  { %v6048_v61 = vpop.xlane.xlu0 %6047  ;;  %7406 = vlog2.f32 %v6051_v7 }
0x46c6   :  { %7408 = vlog2.f32 %v6048_v61 }
0x46c7   :  { %7410 = vrcp.f32 %v6093_v57 }
0x46c8   :  { %v6063_v60 = vpop.permute.xlu1 %6062 }
0x46c9   :  { %vm6065_vm15 = vcmp.eq.s32.totalorder %v5994_v38, %v6063_v60 }
0x46ca   :  { %v6067_v62 = vsel %vm6065_vm15, %v7007_v40, 0.0 }
0x46cb   :  { %v6071_v63 = vsel %vm5990_vm10, %v6067_v62, 0.0 }
0x46cc   :  { %6072 = vadd.xlane.f32.xlu0 %v6071_v63 }
0x46cd   :  { %v6060_v20 = vpop.permute.xlu0 %6059 }
0x46ce   :  { %vm6064_vm0 = vcmp.eq.s32.totalorder %v5994_v38, %v6060_v20 }
0x46cf   :  { %v6066_v0 = vsel %vm6064_vm0, %v5981_v51, 0.0  ;;  %v7407_v27 = vpop.eup %7406 }
0x46d0   :  { %v6068_v5 = vsel %vm5990_vm10, %v6066_v0, 0.0  ;;  %v6055_v55 = vmul.f32 0.6931472, %v7407_v27  ;;  %v7409_v30 = vpop.eup %7408 }
0x46d1   :  { %6069 = vadd.xlane.f32.xlu1 %v6068_v5  ;;  %v6053_v34 = vmul.f32 0.6931472, %v7409_v30  ;;  %v7411_v58 = vpop.eup %7410 }
0x46d2   :  { %v6057_v40 = vadd.f32 %v6055_v55, %v8643_v42 }
0x46d3   :  { %v6056_v38 = vadd.f32 %v6053_v34, %v8647_v44 }
0x474b   :  { %v6030_v18 = vpop.xlane.xlu1 %6029 }
0x474c   :  { %v6031_v2 = vcvt.f32.s32 %v6030_v18 }
0x474e   :  { %v6034_v21 = vadd.s32 %v6033_v12, %v6031_v2 }
0x474f   :  { %v6015_v22 = vpop.xlane.xlu1 %6014 }
0x4750   :  { %6037 = vst.msk [vmem:[%s8774_s21 + $0x8] sm:$0xff] %vm6035_vm3, %v6034_v21  ;;  %v6016_v36 = vcvt.f32.s32 %v6015_v22 }
0x4752   :  { %v6019_v59 = vadd.s32 %v6018_v33, %v6016_v36 }
0x4754   :  { %6036 = vst.msk [vmem:[%s8774_s21] sm:$0xff] %vm6035_vm3, %v6019_v59 }
0x4759   :  { %v6073_v51 = vpop.xlane.xlu0 %6072 }
0x475a   :  { %v6081_v15 = vsub.f32 %v6057_v40, %v6073_v51 }
0x475c   :  { %v6083_v43 = vmul.f32 %v6349_v31, %v6081_v15 }
0x475e   :  { %v6070_v46 = vpop.xlane.xlu1 %6069  ;;  %v6095_v26 = vsel %vm6035_vm3, %v6083_v43, 0.0 }
0x475f   :  { %v6080_v50 = vsub.f32 %v6056_v38, %v6070_v46 }
0x4761   :  { %v6082_v41 = vmul.f32 %v6348_v8, %v6080_v50 }
0x4763   :  { %v6094_v48 = vsel %vm6035_vm3, %v6082_v41, 0.0 }
0x4764   :  { %v6096_v45 = vadd.f32 %v6095_v26, %v6094_v48 }
0x4766   :  { %v6097_v19 = vrot.slane %v6096_v45, 4 }
0x4768   :  { %v6098_v52 = vadd.f32 %v6097_v19, %v6096_v45 }
0x476a   :  { %v6099_v42 = vrot.slane %v6098_v52, 2 }
0x476c   :  { %v6100_v54 = vadd.f32 %v6099_v42, %v6098_v52 }
0x476e   :  { %v6101_v56 = vrot.slane %v6100_v54, 1 }
0x4770   :  { %v6102_v44 = vadd.f32 %v6101_v56, %v6100_v54 }
0x4772   :  { %v6104_v3 = vmul.f32 %v7411_v58, %v6102_v44 }
0x4774   :  { %6106 = vst.msk [vmem:[#allocation2] sm:$0x1] %vm6105_vm4, %v6104_v3 }
0x4775   :  { %7423 = shalt.err (!%p7420_p4)
}
0x4776   :  { %s8775_s19 = sld [smem:[#allocation19_spill]] }
0x477c   :  { %s7424_s28 = scalar_lea.hbm %s8775_s19, 16 }
0x477d   :  { %p7425_p5 = scmp.ne.s32.totalorder %s8775_s19, %s7424_s28  ;;  %p7428_p6 = scmp.lt.u32.totalorder %s7424_s28, %s8775_s19 }
0x477f   :  { %p7430_p7 = pnand %p7428_p6, %p7425_p5 }
0x4781   :  { %7433 = shalt.err (!%p7430_p7)
}
0x4782   :  { %6120 = dma.vmem_to_hbm [thread:$0]  %s6118_s16, 16, %s8775_s19, [#allocation3]  }
0x4783   :  { %7434 = dma.done.wait [#allocation3], 16  }
0x4784   :  { %7435 = vsyncadd [#allocation3], 4294967280 }
0x4785   :  { %6128 = vsyncpa [#allocation3], 1 }

</bundles_post_ra>
